<compile_context>
chip_gen: v6e
topology: v6e:2x2x1
jax: 0.10.0
libtpu: 0.0.40
codegen_flags: <defaults>
</compile_context>

<pallas_src>
import functools

import jax
import jax.numpy as jnp
from jax import lax
from jax.experimental import pallas as pl
from jax.experimental.pallas import tpu as pltpu


_VMEM_LIMIT = 32 * 1024 * 1024  # <= scoped VMEM on v5e/v6e/v7x


# ----------------------------- Pallas kernels ------------------------------ #

def _mm_bias_act_kernel(x_ref, w_ref, b_ref, o_ref, *, apply_relu):
    """o = maybe_relu(x @ w + b); x:(TM,K), w:(K,Cout), b:(1,Cout) f32."""
    acc = jnp.dot(x_ref[...], w_ref[...], preferred_element_type=jnp.float32)
    acc = acc + b_ref[...]
    if apply_relu:
        acc = jnp.maximum(acc, 0.0)
    o_ref[...] = acc.astype(o_ref.dtype)


def _conv3x3_s1_kernel(xsh_ref, w_ref, b_ref, o_ref):
    """3x3/stride-1 conv (+ folded-BN bias + ReLU) for one (batch, row-block).

    xsh_ref: (3, Hp, W, Cin)   dx-shifted copies of the padded input, resident
                               per batch element across row blocks.
    w_ref:   (9, Cin, Cout)    BN-scale-folded weights, tap-major (dy*3+dx).
    b_ref:   (1, Cout)         f32 bias (folded BN shift).
    o_ref:   (TH, W, Cout)
    """
    th, wo, cout = o_ref.shape
    cin = xsh_ref.shape[-1]
    r0 = pl.program_id(1) * th
    acc = jnp.zeros((th * wo, cout), jnp.float32)
    for dy in range(3):
        for dx in range(3):
            xblk = xsh_ref[dx, pl.ds(r0 + dy, th), :, :]      # (TH, W, Cin)
            acc = acc + jnp.dot(xblk.reshape(th * wo, cin), w_ref[3 * dy + dx],
                                preferred_element_type=jnp.float32)
    acc = jnp.maximum(acc + b_ref[...], 0.0)
    o_ref[...] = acc.reshape(th, wo, cout).astype(o_ref.dtype)


def _conv3x3_s2_kernel(xsh_ref, w_ref, b_ref, o_ref):
    """3x3/stride-2 conv (+ folded-BN bias + ReLU) for one (batch, row-block).

    xsh_ref: (9, TH, Wo, Cin)  pre-strided tap copies for this row block.
    w_ref:   (9, Cin, Cout)    BN-scale-folded weights, tap-major.
    b_ref:   (1, Cout)         f32 bias.
    o_ref:   (TH, Wo, Cout)
    """
    th, wo, cout = o_ref.shape
    cin = xsh_ref.shape[-1]
    acc = jnp.zeros((th * wo, cout), jnp.float32)
    for t in range(9):
        acc = acc + jnp.dot(xsh_ref[t].reshape(th * wo, cin), w_ref[t],
                            preferred_element_type=jnp.float32)
    acc = jnp.maximum(acc + b_ref[...], 0.0)
    o_ref[...] = acc.reshape(th, wo, cout).astype(o_ref.dtype)


def _pool_concat_conv_kernel(x12_ref, xph_ref, w12_ref, w3_ref, o_ref):
    """o = [x1|x2|maxpool2x2(x)] @ w_final, fused (no bias / activation).

    x12_ref: (TM, 2C) — concatenated layer1/layer2 outputs (already contiguous
             because the stride-2 convs were computed block-diagonally).
    xph_ref: (4, TM, C) pooling phases of the original input.
    w12_ref: (2C, Cout); w3_ref: (C, Cout).
    """
    x3 = jnp.max(xph_ref[...], axis=0)
    acc = jnp.dot(x12_ref[...], w12_ref[...], preferred_element_type=jnp.float32)
    acc = acc + jnp.dot(x3, w3_ref[...], preferred_element_type=jnp.float32)
    o_ref[...] = acc.astype(o_ref.dtype)


# ------------------------------ wrappers ------------------------------------ #

def _pick_row_tile(m):
    """Row tile for matmul-style kernels: prefer >=2 grid steps, 8-aligned."""
    for tm in (512, 256, 128):
        if m >= 2 * tm:
            return tm
    if m >= 128:
        return 128
    return ((m + 7) // 8) * 8


def _pad_rows(x2d, mp):
    m = x2d.shape[0]
    if mp == m:
        return x2d
    return jnp.pad(x2d, ((0, mp - m), (0, 0)))


def _pick_row_block(ho, wo, max_rows=2048):
    """Largest divisor th of ho with th*wo <= max_rows (>=1)."""
    best = 1
    for th in range(1, ho + 1):
        if ho % th == 0 and th * wo <= max_rows:
            best = th
    return best


def matmul_bias_act(x2d, w, bias, *, apply_relu, out_dtype):
    """out = maybe_relu(x2d @ w + bias), one fused Pallas kernel, row-tiled."""
    m, k = x2d.shape
    cout = w.shape[-1]
    tm = _pick_row_tile(m)
    mp = pl.cdiv(m, tm) * tm
    x2d = _pad_rows(x2d, mp)
    out = pl.pallas_call(
        functools.partial(_mm_bias_act_kernel, apply_relu=apply_relu),
        out_shape=jax.ShapeDtypeStruct((mp, cout), out_dtype),
        grid=(mp // tm,),
        in_specs=[
            pl.BlockSpec((tm, k), lambda i: (i, 0)),
            pl.BlockSpec((k, cout), lambda i: (0, 0)),
            pl.BlockSpec((1, cout), lambda i: (0, 0)),
        ],
        out_specs=pl.BlockSpec((tm, cout), lambda i: (i, 0)),
        compiler_params=pltpu.CompilerParams(
            dimension_semantics=("parallel",),
            vmem_limit_bytes=_VMEM_LIMIT),
    )(x2d, w, bias)
    return out[:m] if mp != m else out


def conv3x3_s1_bn_relu(x, w9, bias, *, compute_dtype):
    """3x3 conv (pad=1, stride=1) + folded BN affine + ReLU, NHWC.

    w9: (9, Cin, Cout) f32, BN scale already folded; bias: (1, Cout) f32.
    """
    n, h, w, cin = x.shape
    cout = w9.shape[-1]
    hp = h + 2

    # 3 dx-shifted copies of the spatially padded input (~1.5x input bytes).
    xpad = jnp.pad(x.astype(compute_dtype), ((0, 0), (1, 1), (1, 1), (0, 0)))
    xsh = jnp.stack([xpad[:, :, dx:dx + w, :] for dx in range(3)], axis=0)

    wk = w9.astype(compute_dtype)
    th = _pick_row_block(h, w)
    return pl.pallas_call(
        _conv3x3_s1_kernel,
        out_shape=jax.ShapeDtypeStruct((n, h, w, cout), compute_dtype),
        grid=(n, h // th),
        in_specs=[
            # full padded image of one batch element, resident across row blocks
            pl.BlockSpec((3, None, hp, w, cin), lambda b, r: (0, b, 0, 0, 0)),
            pl.BlockSpec((9, cin, cout), lambda b, r: (0, 0, 0)),
            pl.BlockSpec((1, cout), lambda b, r: (0, 0)),
        ],
        out_specs=pl.BlockSpec((None, th, w, cout), lambda b, r: (b, r, 0, 0)),
        compiler_params=pltpu.CompilerParams(
            dimension_semantics=("parallel", "parallel"),
            vmem_limit_bytes=_VMEM_LIMIT),
    )(xsh, wk, bias)


def conv3x3_s2_bn_relu(x, w9, bias, *, compute_dtype):
    """3x3 conv (pad=1, stride=2) + folded BN affine + ReLU, NHWC.

    Uses 9 pre-strided tap copies (~2.25x input bytes) so rows pipeline with a
    plain BlockSpec (no full-image VMEM residency).
    """
    n, h, w, cin = x.shape
    cout = w9.shape[-1]
    ho, wo = h // 2, w // 2

    xpad = jnp.pad(x.astype(compute_dtype), ((0, 0), (1, 1), (1, 1), (0, 0)))
    taps = []
    for dy in range(3):
        for dx in range(3):
            taps.append(xpad[:, dy:dy + 2 * (ho - 1) + 1:2,
                             dx:dx + 2 * (wo - 1) + 1:2, :])
    xsh = jnp.stack(taps, axis=0)                       # (9, N, Ho, Wo, Cin)

    wk = w9.astype(compute_dtype)
    th = _pick_row_block(ho, wo)
    return pl.pallas_call(
        _conv3x3_s2_kernel,
        out_shape=jax.ShapeDtypeStruct((n, ho, wo, cout), compute_dtype),
        grid=(n, ho // th),
        in_specs=[
            pl.BlockSpec((9, None, th, wo, cin), lambda b, r: (0, b, r, 0, 0)),
            pl.BlockSpec((9, cin, cout), lambda b, r: (0, 0, 0)),
            pl.BlockSpec((1, cout), lambda b, r: (0, 0)),
        ],
        out_specs=pl.BlockSpec((None, th, wo, cout), lambda b, r: (b, r, 0, 0)),
        compiler_params=pltpu.CompilerParams(
            dimension_semantics=("parallel", "parallel"),
            vmem_limit_bytes=_VMEM_LIMIT),
    )(xsh, wk, bias)


def pool_concat_conv(x12, x_in, w_final, *, compute_dtype, out_dtype):
    """Fused MaxPool2d(2,2)(x_in) + concat([x1,x2,pool]) + final 1x1 conv."""
    n, ho, wo, c2 = x12.shape
    c = x_in.shape[-1]
    m = n * ho * wo
    cout = w_final.shape[-1]

    wf = w_final.reshape(3 * c, cout)
    w12 = wf[:c2, :].astype(compute_dtype)              # (2C, Cout)
    w3 = wf[c2:, :].astype(compute_dtype)               # (C, Cout)

    phases = jnp.stack(
        [x_in[:, py::2, px::2, :] for py in (0, 1) for px in (0, 1)], axis=0)
    phases = phases.reshape(4, m, c).astype(compute_dtype)
    x12f = x12.reshape(m, c2).astype(compute_dtype)

    tm = _pick_row_tile(m)
    mp = pl.cdiv(m, tm) * tm
    if mp != m:
        x12f = _pad_rows(x12f, mp)
        phases = jnp.pad(phases, ((0, 0), (0, mp - m), (0, 0)))

    out = pl.pallas_call(
        _pool_concat_conv_kernel,
        out_shape=jax.ShapeDtypeStruct((mp, cout), out_dtype),
        grid=(mp // tm,),
        in_specs=[
            pl.BlockSpec((tm, c2), lambda i: (i, 0)),
            pl.BlockSpec((4, tm, c), lambda i: (0, i, 0)),
            pl.BlockSpec((c2, cout), lambda i: (0, 0)),
            pl.BlockSpec((c, cout), lambda i: (0, 0)),
        ],
        out_specs=pl.BlockSpec((tm, cout), lambda i: (i, 0)),
        compiler_params=pltpu.CompilerParams(
            dimension_semantics=("parallel",),
            vmem_limit_bytes=_VMEM_LIMIT),
    )(x12f, phases, w12, w3)
    out = out[:m] if mp != m else out
    return out.reshape(n, ho, wo, cout)


# ----------------------------- Module forward ------------------------------- #

def downsample_forward(params, x_nchw, compute_dtype=jnp.bfloat16):
    x = jnp.transpose(x_nchw, (0, 2, 3, 1))        # NCHW -> NHWC
    n, h, w, c = x.shape
    cdt = compute_dtype
    xc = x.astype(cdt)

    # Stage 1: merged leading 1x1 convs of layer1/layer2 (same input),
    # Cout = 2C, BN scale folded into weight columns, epilogue = bias + ReLU.
    s10, b10 = params["l1_bn0"]
    s20, b20 = params["l2_bn0"]
    w10 = params["l1_w0"].reshape(c, c) * s10.astype(jnp.float32)[None, :]
    w20 = params["l2_w0"].reshape(c, c) * s20.astype(jnp.float32)[None, :]
    w_merged = jnp.concatenate([w10, w20], axis=1).astype(cdt)      # (C, 2C)
    b_merged = jnp.concatenate([b10, b20]).astype(jnp.float32).reshape(1, 2 * c)
    y12 = matmul_bias_act(xc.reshape(n * h * w, c), w_merged, b_merged,
                          apply_relu=True, out_dtype=cdt)
    y12 = y12.reshape(n, h, w, 2 * c)
    b1 = y12[..., :c]          # layer1 branch after its 1x1 conv
    c1 = y12[..., c:]          # layer2 branch after its 1x1 conv

    # Stage 2: layer1's middle 3x3 stride-1 conv.
    s11, sh11 = params["l1_bn1"]
    w11 = params["l1_w1"].reshape(9, c, c) * s11.astype(jnp.float32).reshape(1, 1, c)
    b2 = conv3x3_s1_bn_relu(b1, w11, sh11.astype(jnp.float32).reshape(1, c),
                            compute_dtype=cdt)

    # Stage 3: the two stride-2 3x3 convs merged into ONE block-diagonal conv
    # over the channel-concatenated input [b2 | c1]; output channels [x1 | x2].
    s12, sh12 = params["l1_bn2"]
    s21, sh21 = params["l2_bn1"]
    wA = params["l1_w2"].reshape(9, c, c) * s12.astype(jnp.float32).reshape(1, 1, c)
    wB = params["l2_w1"].reshape(9, c, c) * s21.astype(jnp.float32).reshape(1, 1, c)
    wm = jnp.zeros((9, 2 * c, 2 * c), jnp.float32)
    wm = wm.at[:, :c, :c].set(wA).at[:, c:, c:].set(wB)
    bm = jnp.concatenate([sh12, sh21]).astype(jnp.float32).reshape(1, 2 * c)
    x12 = conv3x3_s2_bn_relu(jnp.concatenate([b2, c1], axis=-1), wm, bm,
                             compute_dtype=cdt)         # (N, H/2, W/2, 2C)

    # Stage 4: layer3 (MaxPool2d(2,2)) + channel concat + final 1x1: one kernel.
    out = pool_concat_conv(x12, xc, params["w_final"],
                           compute_dtype=cdt, out_dtype=jnp.float32)
    return jnp.transpose(out, (0, 3, 1, 2))        # NHWC -> NCHW


# ------------------------ deterministic parameter init ---------------------- #

def init_params(key, C, dtype=jnp.float32):
    eps = 1e-5
    ks = jax.random.split(key, 11)

    def conv_w(k, kh, kw, cin, cout):
        return 0.1 * jax.random.normal(k, (kh, kw, cin, cout), dtype)  # HWIO

    def bn(k):
        k1, k2 = jax.random.split(k)
        gamma = 1.0 + 0.1 * jax.random.normal(k1, (C,), dtype)
        beta = 0.1 * jax.random.normal(k2, (C,), dtype)
        mean = jnp.zeros((C,), dtype)
        var = jnp.ones((C,), dtype)
        scale = gamma / jnp.sqrt(var + eps)
        shift = beta - mean * scale
        return scale, shift

    return {
        "l1_w0": conv_w(ks[0], 1, 1, C, C), "l1_bn0": bn(ks[1]),
        "l1_w1": conv_w(ks[2], 3, 3, C, C), "l1_bn1": bn(ks[3]),
        "l1_w2": conv_w(ks[4], 3, 3, C, C), "l1_bn2": bn(ks[5]),
        "l2_w0": conv_w(ks[6], 1, 1, C, C), "l2_bn0": bn(ks[7]),
        "l2_w1": conv_w(ks[8], 3, 3, C, C), "l2_bn1": bn(ks[9]),
        "w_final": conv_w(ks[10], 1, 1, 3 * C, C),
    }


# ------------------------------ pure-JAX reference --------------------------- #

def _ref_conv(x, w, stride, pad):
    return lax.conv_general_dilated(
        x, w, window_strides=(stride, stride),
        padding=[(pad, pad), (pad, pad)],
        dimension_numbers=("NHWC", "HWIO", "NHWC"))


def downsample_reference(params, x_nchw):
    x = jnp.transpose(x_nchw, (0, 2, 3, 1))

    def cbr(h, w, bn, stride, pad):
        s, b = bn
        return jnp.maximum(_ref_conv(h, w, stride, pad) * s + b, 0.0)

    x1 = cbr(x,  params["l1_w0"], params["l1_bn0"], 1, 0)
    x1 = cbr(x1, params["l1_w1"], params["l1_bn1"], 1, 1)
    x1 = cbr(x1, params["l1_w2"], params["l1_bn2"], 2, 1)
    x2 = cbr(x,  params["l2_w0"], params["l2_bn0"], 1, 0)
    x2 = cbr(x2, params["l2_w1"], params["l2_bn1"], 2, 1)
    x3 = lax.reduce_window(x, -jnp.inf, lax.max, (1, 2, 2, 1), (1, 2, 2, 1), "VALID")
    xcat = jnp.concatenate([x1, x2, x3], axis=-1)
    out = _ref_conv(xcat, params["w_final"], 1, 0)
    return jnp.transpose(out, (0, 3, 1, 2))


# ----------------------------------- main ------------------------------------ #

if __name__ == "__main__":
    key = jax.random.PRNGKey(0)
    kx, kp = jax.random.split(key)
    N, C, H, W = 2, 4, 16, 16
    x = jax.random.normal(kx, (N, C, H, W), jnp.float32)
    params = init_params(kp, C)

    ref = downsample_reference(params, x)

    # Strict check: f32 compute path must match the pure-JAX reference tightly.
    fwd_f32 = jax.jit(functools.partial(downsample_forward,
                                        compute_dtype=jnp.float32))
    out_f32 = jax.block_until_ready(fwd_f32(params, x))
    assert out_f32.shape == (N, C, H // 2, W // 2), out_f32.shape
    err32 = float(jnp.max(jnp.abs(out_f32 - ref)))
    assert jnp.allclose(out_f32, ref, atol=1e-4, rtol=1e-4), err32

    # Default fast path: bf16 MXU inputs with f32 accumulation.
    fwd_bf16 = jax.jit(downsample_forward)
    out_bf16 = jax.block_until_ready(fwd_bf16(params, x))
    assert out_bf16.shape == (N, C, H // 2, W // 2), out_bf16.shape
    errbf = float(jnp.max(jnp.abs(out_bf16 - ref)))
    tol = 0.05 + 0.1 * float(jnp.max(jnp.abs(ref)))
    assert errbf < tol, (errbf, tol)

    print("KERNEL_OK")
</pallas_src>

<mosaic_0001>
module attributes {stable_mosaic.version = 11 : i64} {
  func.func @_mm_bias_act_kernel(%arg0: i32, %arg1: memref<256x4xf32, #tpu.memory_space<vmem>>, %arg2: memref<4x8xf32, #tpu.memory_space<vmem>>, %arg3: memref<1x8xf32, #tpu.memory_space<vmem>>, %arg4: memref<256x8xf32, #tpu.memory_space<vmem>>) attributes {dimension_semantics = [#tpu.dimension_semantics<parallel>], iteration_bounds = array<i64: 2>, scalar_prefetch = 0 : i64, scratch_operands = 0 : i64, tpu.core_type = #tpu.core_type<tc>, window_params = [{transform_indices = @transform_0, window_bounds = array<i64: 256, 4>}, {pipeline_mode = #tpu.pipeline_mode<synchronous>, transform_indices = @transform_1, window_bounds = array<i64: 4, 8>}, {pipeline_mode = #tpu.pipeline_mode<synchronous>, transform_indices = @transform_2, window_bounds = array<i64: 1, 8>}, {transform_indices = @transform_3, window_bounds = array<i64: 256, 8>}]} {
    %c0 = arith.constant 0 : index
    %c0_0 = arith.constant 0 : index
    %0 = vector.load %arg1[%c0, %c0_0] : memref<256x4xf32, #tpu.memory_space<vmem>>, vector<256x4xf32>
    %c0_1 = arith.constant 0 : index
    %c0_2 = arith.constant 0 : index
    %1 = vector.load %arg2[%c0_1, %c0_2] : memref<4x8xf32, #tpu.memory_space<vmem>>, vector<4x8xf32>
    %cst = arith.constant dense<0.000000e+00> : vector<256x8xf32>
    %2 = tpu.matmul %0, %1, %cst {dimension_numbers = #tpu.dot_dimension_numbers<[1], [0], [0], [1], [0, 0, 1, 1], [], []>} : vector<256x4xf32>, vector<4x8xf32>, vector<256x8xf32> -> vector<256x8xf32>
    %c0_3 = arith.constant 0 : index
    %c0_4 = arith.constant 0 : index
    %3 = vector.load %arg3[%c0_3, %c0_4] : memref<1x8xf32, #tpu.memory_space<vmem>>, vector<1x8xf32>
    %4 = vector.broadcast %3 : vector<1x8xf32> to vector<256x8xf32>
    %5 = arith.addf %2, %4 : vector<256x8xf32>
    %cst_5 = arith.constant 0.000000e+00 : f32
    %6 = vector.broadcast %cst_5 : f32 to vector<256x8xf32>
    %7 = arith.maximumf %5, %6 : vector<256x8xf32>
    %c0_6 = arith.constant 0 : index
    %c0_7 = arith.constant 0 : index
    %8 = vector.load %arg4[%c0_6, %c0_7] : memref<256x8xf32, #tpu.memory_space<vmem>>, vector<256x8xf32>
    tpu.vector_store %arg4[%c0_6, %c0_7], %7 {strides = array<i32>} : memref<256x8xf32, #tpu.memory_space<vmem>>, vector<256x8xf32>,
    return
  }
  func.func @transform_0(%arg0: i32) -> (i32, i32) {
    %c0_i32 = arith.constant 0 : i32
    %c0_i32_0 = arith.constant 0 : i32
    return %arg0, %c0_i32 : i32, i32
  }
  func.func @transform_1(%arg0: i32) -> (i32, i32) {
    %c0_i32 = arith.constant 0 : i32
    %c0_i32_0 = arith.constant 0 : i32
    %c0_i32_1 = arith.constant 0 : i32
    return %c0_i32, %c0_i32_0 : i32, i32
  }
  func.func @transform_2(%arg0: i32) -> (i32, i32) {
    %c0_i32 = arith.constant 0 : i32
    %c0_i32_0 = arith.constant 0 : i32
    %c0_i32_1 = arith.constant 0 : i32
    return %c0_i32, %c0_i32_0 : i32, i32
  }
  func.func @transform_3(%arg0: i32) -> (i32, i32) {
    %c0_i32 = arith.constant 0 : i32
    %c0_i32_0 = arith.constant 0 : i32
    return %arg0, %c0_i32 : i32, i32
  }
}

module attributes {stable_mosaic.version = 11 : i64} {
  func.func @_conv3x3_s1_kernel(%arg0: i32, %arg1: i32, %arg2: memref<3x1x18x16x4xf32, #tpu.memory_space<vmem>>, %arg3: memref<9x4x4xf32, #tpu.memory_space<vmem>>, %arg4: memref<1x4xf32, #tpu.memory_space<vmem>>, %arg5: memref<1x16x16x4xf32, #tpu.memory_space<vmem>>) attributes {dimension_semantics = [#tpu.dimension_semantics<parallel>, #tpu.dimension_semantics<parallel>], iteration_bounds = array<i64: 2, 1>, scalar_prefetch = 0 : i64, scratch_operands = 0 : i64, tpu.core_type = #tpu.core_type<tc>, window_params = [{transform_indices = @transform_0, window_bounds = array<i64: 3, 1, 18, 16, 4>}, {pipeline_mode = #tpu.pipeline_mode<synchronous>, transform_indices = @transform_1, window_bounds = array<i64: 9, 4, 4>}, {pipeline_mode = #tpu.pipeline_mode<synchronous>, transform_indices = @transform_2, window_bounds = array<i64: 1, 4>}, {transform_indices = @transform_3, window_bounds = array<i64: 1, 16, 16, 4>}]} {
    %c16_i32 = arith.constant 16 : i32
    %0 = arith.muli %arg1, %c16_i32 : i32
    %cst = arith.constant 0.000000e+00 : f32
    %1 = vector.broadcast %cst : f32 to vector<256x4xf32>
    %c0_i32 = arith.constant 0 : i32
    %2 = arith.addi %0, %c0_i32 : i32
    %c0 = arith.constant 0 : index
    %c0_0 = arith.constant 0 : index
    %3 = arith.index_cast %2 : i32 to index
    %c0_1 = arith.constant 0 : index
    %c0_2 = arith.constant 0 : index
    %4 = vector.load %arg2[%c0, %c0_0, %3, %c0_1, %c0_2] : memref<3x1x18x16x4xf32, #tpu.memory_space<vmem>>, vector<1x1x16x16x4xf32>
    %5 = vector.shape_cast %4 : vector<1x1x16x16x4xf32> to vector<16x16x4xf32>
    %6 = vector.shape_cast %5 : vector<16x16x4xf32> to vector<256x4xf32>
    %c0_3 = arith.constant 0 : index
    %c0_4 = arith.constant 0 : index
    %c0_5 = arith.constant 0 : index
    %7 = vector.load %arg3[%c0_3, %c0_4, %c0_5] : memref<9x4x4xf32, #tpu.memory_space<vmem>>, vector<1x4x4xf32>
    %8 = vector.shape_cast %7 : vector<1x4x4xf32> to vector<4x4xf32>
    %cst_6 = arith.constant dense<0.000000e+00> : vector<256x4xf32>
    %9 = tpu.matmul %6, %8, %cst_6 {dimension_numbers = #tpu.dot_dimension_numbers<[1], [0], [0], [1], [0, 0, 1, 1], [], []>} : vector<256x4xf32>, vector<4x4xf32>, vector<256x4xf32> -> vector<256x4xf32>
    %10 = arith.addf %1, %9 : vector<256x4xf32>
    %c0_i32_7 = arith.constant 0 : i32
    %11 = arith.addi %0, %c0_i32_7 : i32
    %c1 = arith.constant 1 : index
    %c0_8 = arith.constant 0 : index
    %12 = arith.index_cast %11 : i32 to index
    %c0_9 = arith.constant 0 : index
    %c0_10 = arith.constant 0 : index
    %13 = vector.load %arg2[%c1, %c0_8, %12, %c0_9, %c0_10] : memref<3x1x18x16x4xf32, #tpu.memory_space<vmem>>, vector<1x1x16x16x4xf32>
    %14 = vector.shape_cast %13 : vector<1x1x16x16x4xf32> to vector<16x16x4xf32>
    %15 = vector.shape_cast %14 : vector<16x16x4xf32> to vector<256x4xf32>
    %c1_11 = arith.constant 1 : index
    %c0_12 = arith.constant 0 : index
    %c0_13 = arith.constant 0 : index
    %16 = vector.load %arg3[%c1_11, %c0_12, %c0_13] : memref<9x4x4xf32, #tpu.memory_space<vmem>>, vector<1x4x4xf32>
    %17 = vector.shape_cast %16 : vector<1x4x4xf32> to vector<4x4xf32>
    %cst_14 = arith.constant dense<0.000000e+00> : vector<256x4xf32>
    %18 = tpu.matmul %15, %17, %cst_14 {dimension_numbers = #tpu.dot_dimension_numbers<[1], [0], [0], [1], [0, 0, 1, 1], [], []>} : vector<256x4xf32>, vector<4x4xf32>, vector<256x4xf32> -> vector<256x4xf32>
    %19 = arith.addf %10, %18 : vector<256x4xf32>
    %c0_i32_15 = arith.constant 0 : i32
    %20 = arith.addi %0, %c0_i32_15 : i32
    %c2 = arith.constant 2 : index
    %c0_16 = arith.constant 0 : index
    %21 = arith.index_cast %20 : i32 to index
    %c0_17 = arith.constant 0 : index
    %c0_18 = arith.constant 0 : index
    %22 = vector.load %arg2[%c2, %c0_16, %21, %c0_17, %c0_18] : memref<3x1x18x16x4xf32, #tpu.memory_space<vmem>>, vector<1x1x16x16x4xf32>
    %23 = vector.shape_cast %22 : vector<1x1x16x16x4xf32> to vector<16x16x4xf32>
    %24 = vector.shape_cast %23 : vector<16x16x4xf32> to vector<256x4xf32>
    %c2_19 = arith.constant 2 : index
    %c0_20 = arith.constant 0 : index
    %c0_21 = arith.constant 0 : index
    %25 = vector.load %arg3[%c2_19, %c0_20, %c0_21] : memref<9x4x4xf32, #tpu.memory_space<vmem>>, vector<1x4x4xf32>
    %26 = vector.shape_cast %25 : vector<1x4x4xf32> to vector<4x4xf32>
    %cst_22 = arith.constant dense<0.000000e+00> : vector<256x4xf32>
    %27 = tpu.matmul %24, %26, %cst_22 {dimension_numbers = #tpu.dot_dimension_numbers<[1], [0], [0], [1], [0, 0, 1, 1], [], []>} : vector<256x4xf32>, vector<4x4xf32>, vector<256x4xf32> -> vector<256x4xf32>
    %28 = arith.addf %19, %27 : vector<256x4xf32>
    %c1_i32 = arith.constant 1 : i32
    %29 = arith.addi %0, %c1_i32 : i32
    %c0_23 = arith.constant 0 : index
    %c0_24 = arith.constant 0 : index
    %30 = arith.index_cast %29 : i32 to index
    %c0_25 = arith.constant 0 : index
    %c0_26 = arith.constant 0 : index
    %31 = vector.load %arg2[%c0_23, %c0_24, %30, %c0_25, %c0_26] : memref<3x1x18x16x4xf32, #tpu.memory_space<vmem>>, vector<1x1x16x16x4xf32>
    %32 = vector.shape_cast %31 : vector<1x1x16x16x4xf32> to vector<16x16x4xf32>
    %33 = vector.shape_cast %32 : vector<16x16x4xf32> to vector<256x4xf32>
    %c3 = arith.constant 3 : index
    %c0_27 = arith.constant 0 : index
    %c0_28 = arith.constant 0 : index
    %34 = vector.load %arg3[%c3, %c0_27, %c0_28] : memref<9x4x4xf32, #tpu.memory_space<vmem>>, vector<1x4x4xf32>
    %35 = vector.shape_cast %34 : vector<1x4x4xf32> to vector<4x4xf32>
    %cst_29 = arith.constant dense<0.000000e+00> : vector<256x4xf32>
    %36 = tpu.matmul %33, %35, %cst_29 {dimension_numbers = #tpu.dot_dimension_numbers<[1], [0], [0], [1], [0, 0, 1, 1], [], []>} : vector<256x4xf32>, vector<4x4xf32>, vector<256x4xf32> -> vector<256x4xf32>
    %37 = arith.addf %28, %36 : vector<256x4xf32>
    %c1_i32_30 = arith.constant 1 : i32
    %38 = arith.addi %0, %c1_i32_30 : i32
    %c1_31 = arith.constant 1 : index
    %c0_32 = arith.constant 0 : index
    %39 = arith.index_cast %38 : i32 to index
    %c0_33 = arith.constant 0 : index
    %c0_34 = arith.constant 0 : index
    %40 = vector.load %arg2[%c1_31, %c0_32, %39, %c0_33, %c0_34] : memref<3x1x18x16x4xf32, #tpu.memory_space<vmem>>, vector<1x1x16x16x4xf32>
    %41 = vector.shape_cast %40 : vector<1x1x16x16x4xf32> to vector<16x16x4xf32>
    %42 = vector.shape_cast %41 : vector<16x16x4xf32> to vector<256x4xf32>
    %c4 = arith.constant 4 : index
    %c0_35 = arith.constant 0 : index
    %c0_36 = arith.constant 0 : index
    %43 = vector.load %arg3[%c4, %c0_35, %c0_36] : memref<9x4x4xf32, #tpu.memory_space<vmem>>, vector<1x4x4xf32>
    %44 = vector.shape_cast %43 : vector<1x4x4xf32> to vector<4x4xf32>
    %cst_37 = arith.constant dense<0.000000e+00> : vector<256x4xf32>
    %45 = tpu.matmul %42, %44, %cst_37 {dimension_numbers = #tpu.dot_dimension_numbers<[1], [0], [0], [1], [0, 0, 1, 1], [], []>} : vector<256x4xf32>, vector<4x4xf32>, vector<256x4xf32> -> vector<256x4xf32>
    %46 = arith.addf %37, %45 : vector<256x4xf32>
    %c1_i32_38 = arith.constant 1 : i32
    %47 = arith.addi %0, %c1_i32_38 : i32
    %c2_39 = arith.constant 2 : index
    %c0_40 = arith.constant 0 : index
    %48 = arith.index_cast %47 : i32 to index
    %c0_41 = arith.constant 0 : index
    %c0_42 = arith.constant 0 : index
    %49 = vector.load %arg2[%c2_39, %c0_40, %48, %c0_41, %c0_42] : memref<3x1x18x16x4xf32, #tpu.memory_space<vmem>>, vector<1x1x16x16x4xf32>
    %50 = vector.shape_cast %49 : vector<1x1x16x16x4xf32> to vector<16x16x4xf32>
    %51 = vector.shape_cast %50 : vector<16x16x4xf32> to vector<256x4xf32>
    %c5 = arith.constant 5 : index
    %c0_43 = arith.constant 0 : index
    %c0_44 = arith.constant 0 : index
    %52 = vector.load %arg3[%c5, %c0_43, %c0_44] : memref<9x4x4xf32, #tpu.memory_space<vmem>>, vector<1x4x4xf32>
    %53 = vector.shape_cast %52 : vector<1x4x4xf32> to vector<4x4xf32>
    %cst_45 = arith.constant dense<0.000000e+00> : vector<256x4xf32>
    %54 = tpu.matmul %51, %53, %cst_45 {dimension_numbers = #tpu.dot_dimension_numbers<[1], [0], [0], [1], [0, 0, 1, 1], [], []>} : vector<256x4xf32>, vector<4x4xf32>, vector<256x4xf32> -> vector<256x4xf32>
    %55 = arith.addf %46, %54 : vector<256x4xf32>
    %c2_i32 = arith.constant 2 : i32
    %56 = arith.addi %0, %c2_i32 : i32
    %c0_46 = arith.constant 0 : index
    %c0_47 = arith.constant 0 : index
    %57 = arith.index_cast %56 : i32 to index
    %c0_48 = arith.constant 0 : index
    %c0_49 = arith.constant 0 : index
    %58 = vector.load %arg2[%c0_46, %c0_47, %57, %c0_48, %c0_49] : memref<3x1x18x16x4xf32, #tpu.memory_space<vmem>>, vector<1x1x16x16x4xf32>
    %59 = vector.shape_cast %58 : vector<1x1x16x16x4xf32> to vector<16x16x4xf32>
    %60 = vector.shape_cast %59 : vector<16x16x4xf32> to vector<256x4xf32>
    %c6 = arith.constant 6 : index
    %c0_50 = arith.constant 0 : index
    %c0_51 = arith.constant 0 : index
    %61 = vector.load %arg3[%c6, %c0_50, %c0_51] : memref<9x4x4xf32, #tpu.memory_space<vmem>>, vector<1x4x4xf32>
    %62 = vector.shape_cast %61 : vector<1x4x4xf32> to vector<4x4xf32>
    %cst_52 = arith.constant dense<0.000000e+00> : vector<256x4xf32>
    %63 = tpu.matmul %60, %62, %cst_52 {dimension_numbers = #tpu.dot_dimension_numbers<[1], [0], [0], [1], [0, 0, 1, 1], [], []>} : vector<256x4xf32>, vector<4x4xf32>, vector<256x4xf32> -> vector<256x4xf32>
    %64 = arith.addf %55, %63 : vector<256x4xf32>
    %c2_i32_53 = arith.constant 2 : i32
    %65 = arith.addi %0, %c2_i32_53 : i32
    %c1_54 = arith.constant 1 : index
    %c0_55 = arith.constant 0 : index
    %66 = arith.index_cast %65 : i32 to index
    %c0_56 = arith.constant 0 : index
    %c0_57 = arith.constant 0 : index
    %67 = vector.load %arg2[%c1_54, %c0_55, %66, %c0_56, %c0_57] : memref<3x1x18x16x4xf32, #tpu.memory_space<vmem>>, vector<1x1x16x16x4xf32>
    %68 = vector.shape_cast %67 : vector<1x1x16x16x4xf32> to vector<16x16x4xf32>
    %69 = vector.shape_cast %68 : vector<16x16x4xf32> to vector<256x4xf32>
    %c7 = arith.constant 7 : index
    %c0_58 = arith.constant 0 : index
    %c0_59 = arith.constant 0 : index
    %70 = vector.load %arg3[%c7, %c0_58, %c0_59] : memref<9x4x4xf32, #tpu.memory_space<vmem>>, vector<1x4x4xf32>
    %71 = vector.shape_cast %70 : vector<1x4x4xf32> to vector<4x4xf32>
    %cst_60 = arith.constant dense<0.000000e+00> : vector<256x4xf32>
    %72 = tpu.matmul %69, %71, %cst_60 {dimension_numbers = #tpu.dot_dimension_numbers<[1], [0], [0], [1], [0, 0, 1, 1], [], []>} : vector<256x4xf32>, vector<4x4xf32>, vector<256x4xf32> -> vector<256x4xf32>
    %73 = arith.addf %64, %72 : vector<256x4xf32>
    %c2_i32_61 = arith.constant 2 : i32
    %74 = arith.addi %0, %c2_i32_61 : i32
    %c2_62 = arith.constant 2 : index
    %c0_63 = arith.constant 0 : index
    %75 = arith.index_cast %74 : i32 to index
    %c0_64 = arith.constant 0 : index
    %c0_65 = arith.constant 0 : index
    %76 = vector.load %arg2[%c2_62, %c0_63, %75, %c0_64, %c0_65] : memref<3x1x18x16x4xf32, #tpu.memory_space<vmem>>, vector<1x1x16x16x4xf32>
    %77 = vector.shape_cast %76 : vector<1x1x16x16x4xf32> to vector<16x16x4xf32>
    %78 = vector.shape_cast %77 : vector<16x16x4xf32> to vector<256x4xf32>
    %c8 = arith.constant 8 : index
    %c0_66 = arith.constant 0 : index
    %c0_67 = arith.constant 0 : index
    %79 = vector.load %arg3[%c8, %c0_66, %c0_67] : memref<9x4x4xf32, #tpu.memory_space<vmem>>, vector<1x4x4xf32>
    %80 = vector.shape_cast %79 : vector<1x4x4xf32> to vector<4x4xf32>
    %cst_68 = arith.constant dense<0.000000e+00> : vector<256x4xf32>
    %81 = tpu.matmul %78, %80, %cst_68 {dimension_numbers = #tpu.dot_dimension_numbers<[1], [0], [0], [1], [0, 0, 1, 1], [], []>} : vector<256x4xf32>, vector<4x4xf32>, vector<256x4xf32> -> vector<256x4xf32>
    %82 = arith.addf %73, %81 : vector<256x4xf32>
    %c0_69 = arith.constant 0 : index
    %c0_70 = arith.constant 0 : index
    %83 = vector.load %arg4[%c0_69, %c0_70] : memref<1x4xf32, #tpu.memory_space<vmem>>, vector<1x4xf32>
    %84 = vector.broadcast %83 : vector<1x4xf32> to vector<256x4xf32>
    %85 = arith.addf %82, %84 : vector<256x4xf32>
    %cst_71 = arith.constant 0.000000e+00 : f32
    %86 = vector.broadcast %cst_71 : f32 to vector<256x4xf32>
    %87 = arith.maximumf %85, %86 : vector<256x4xf32>
    %88 = vector.shape_cast %87 : vector<256x4xf32> to vector<16x16x4xf32>
    %c0_72 = arith.constant 0 : index
    %c0_73 = arith.constant 0 : index
    %c0_74 = arith.constant 0 : index
    %c0_75 = arith.constant 0 : index
    %89 = vector.load %arg5[%c0_72, %c0_73, %c0_74, %c0_75] : memref<1x16x16x4xf32, #tpu.memory_space<vmem>>, vector<1x16x16x4xf32>
    %90 = vector.shape_cast %89 : vector<1x16x16x4xf32> to vector<16x16x4xf32>
    %91 = vector.shape_cast %88 : vector<16x16x4xf32> to vector<1x16x16x4xf32>
    tpu.vector_store %arg5[%c0_72, %c0_73, %c0_74, %c0_75], %91 {strides = array<i32>} : memref<1x16x16x4xf32, #tpu.memory_space<vmem>>, vector<1x16x16x4xf32>,
    return
  }
  func.func @transform_0(%arg0: i32, %arg1: i32) -> (i32, i32, i32, i32, i32) {
    %c0_i32 = arith.constant 0 : i32
    %c0_i32_0 = arith.constant 0 : i32
    %c0_i32_1 = arith.constant 0 : i32
    %c0_i32_2 = arith.constant 0 : i32
    %c0_i32_3 = arith.constant 0 : i32
    return %c0_i32, %arg0, %c0_i32_0, %c0_i32_1, %c0_i32_2 : i32, i32, i32, i32, i32
  }
  func.func @transform_1(%arg0: i32, %arg1: i32) -> (i32, i32, i32) {
    %c0_i32 = arith.constant 0 : i32
    %c0_i32_0 = arith.constant 0 : i32
    %c0_i32_1 = arith.constant 0 : i32
    %c0_i32_2 = arith.constant 0 : i32
    return %c0_i32, %c0_i32_0, %c0_i32_1 : i32, i32, i32
  }
  func.func @transform_2(%arg0: i32, %arg1: i32) -> (i32, i32) {
    %c0_i32 = arith.constant 0 : i32
    %c0_i32_0 = arith.constant 0 : i32
    %c0_i32_1 = arith.constant 0 : i32
    return %c0_i32, %c0_i32_0 : i32, i32
  }
  func.func @transform_3(%arg0: i32, %arg1: i32) -> (i32, i32, i32, i32) {
    %c0_i32 = arith.constant 0 : i32
    %c0_i32_0 = arith.constant 0 : i32
    %c0_i32_1 = arith.constant 0 : i32
    return %arg0, %arg1, %c0_i32, %c0_i32_0 : i32, i32, i32, i32
  }
}

module attributes {stable_mosaic.version = 11 : i64} {
  func.func @_conv3x3_s2_kernel(%arg0: i32, %arg1: i32, %arg2: memref<9x1x8x8x8xf32, #tpu.memory_space<vmem>>, %arg3: memref<9x8x8xf32, #tpu.memory_space<vmem>>, %arg4: memref<1x8xf32, #tpu.memory_space<vmem>>, %arg5: memref<1x8x8x8xf32, #tpu.memory_space<vmem>>) attributes {dimension_semantics = [#tpu.dimension_semantics<parallel>, #tpu.dimension_semantics<parallel>], iteration_bounds = array<i64: 2, 1>, scalar_prefetch = 0 : i64, scratch_operands = 0 : i64, tpu.core_type = #tpu.core_type<tc>, window_params = [{transform_indices = @transform_0, window_bounds = array<i64: 9, 1, 8, 8, 8>}, {pipeline_mode = #tpu.pipeline_mode<synchronous>, transform_indices = @transform_1, window_bounds = array<i64: 9, 8, 8>}, {pipeline_mode = #tpu.pipeline_mode<synchronous>, transform_indices = @transform_2, window_bounds = array<i64: 1, 8>}, {transform_indices = @transform_3, window_bounds = array<i64: 1, 8, 8, 8>}]} {
    %cst = arith.constant 0.000000e+00 : f32
    %0 = vector.broadcast %cst : f32 to vector<64x8xf32>
    %c0 = arith.constant 0 : index
    %c0_0 = arith.constant 0 : index
    %c0_1 = arith.constant 0 : index
    %c0_2 = arith.constant 0 : index
    %c0_3 = arith.constant 0 : index
    %1 = vector.load %arg2[%c0, %c0_0, %c0_1, %c0_2, %c0_3] : memref<9x1x8x8x8xf32, #tpu.memory_space<vmem>>, vector<1x1x8x8x8xf32>
    %2 = vector.shape_cast %1 : vector<1x1x8x8x8xf32> to vector<8x8x8xf32>
    %3 = vector.shape_cast %2 : vector<8x8x8xf32> to vector<64x8xf32>
    %c0_4 = arith.constant 0 : index
    %c0_5 = arith.constant 0 : index
    %c0_6 = arith.constant 0 : index
    %4 = vector.load %arg3[%c0_4, %c0_5, %c0_6] : memref<9x8x8xf32, #tpu.memory_space<vmem>>, vector<1x8x8xf32>
    %5 = vector.shape_cast %4 : vector<1x8x8xf32> to vector<8x8xf32>
    %cst_7 = arith.constant dense<0.000000e+00> : vector<64x8xf32>
    %6 = tpu.matmul %3, %5, %cst_7 {dimension_numbers = #tpu.dot_dimension_numbers<[1], [0], [0], [1], [0, 0, 1, 1], [], []>} : vector<64x8xf32>, vector<8x8xf32>, vector<64x8xf32> -> vector<64x8xf32>
    %7 = arith.addf %0, %6 : vector<64x8xf32>
    %c1 = arith.constant 1 : index
    %c0_8 = arith.constant 0 : index
    %c0_9 = arith.constant 0 : index
    %c0_10 = arith.constant 0 : index
    %c0_11 = arith.constant 0 : index
    %8 = vector.load %arg2[%c1, %c0_8, %c0_9, %c0_10, %c0_11] : memref<9x1x8x8x8xf32, #tpu.memory_space<vmem>>, vector<1x1x8x8x8xf32>
    %9 = vector.shape_cast %8 : vector<1x1x8x8x8xf32> to vector<8x8x8xf32>
    %10 = vector.shape_cast %9 : vector<8x8x8xf32> to vector<64x8xf32>
    %c1_12 = arith.constant 1 : index
    %c0_13 = arith.constant 0 : index
    %c0_14 = arith.constant 0 : index
    %11 = vector.load %arg3[%c1_12, %c0_13, %c0_14] : memref<9x8x8xf32, #tpu.memory_space<vmem>>, vector<1x8x8xf32>
    %12 = vector.shape_cast %11 : vector<1x8x8xf32> to vector<8x8xf32>
    %cst_15 = arith.constant dense<0.000000e+00> : vector<64x8xf32>
    %13 = tpu.matmul %10, %12, %cst_15 {dimension_numbers = #tpu.dot_dimension_numbers<[1], [0], [0], [1], [0, 0, 1, 1], [], []>} : vector<64x8xf32>, vector<8x8xf32>, vector<64x8xf32> -> vector<64x8xf32>
    %14 = arith.addf %7, %13 : vector<64x8xf32>
    %c2 = arith.constant 2 : index
    %c0_16 = arith.constant 0 : index
    %c0_17 = arith.constant 0 : index
    %c0_18 = arith.constant 0 : index
    %c0_19 = arith.constant 0 : index
    %15 = vector.load %arg2[%c2, %c0_16, %c0_17, %c0_18, %c0_19] : memref<9x1x8x8x8xf32, #tpu.memory_space<vmem>>, vector<1x1x8x8x8xf32>
    %16 = vector.shape_cast %15 : vector<1x1x8x8x8xf32> to vector<8x8x8xf32>
    %17 = vector.shape_cast %16 : vector<8x8x8xf32> to vector<64x8xf32>
    %c2_20 = arith.constant 2 : index
    %c0_21 = arith.constant 0 : index
    %c0_22 = arith.constant 0 : index
    %18 = vector.load %arg3[%c2_20, %c0_21, %c0_22] : memref<9x8x8xf32, #tpu.memory_space<vmem>>, vector<1x8x8xf32>
    %19 = vector.shape_cast %18 : vector<1x8x8xf32> to vector<8x8xf32>
    %cst_23 = arith.constant dense<0.000000e+00> : vector<64x8xf32>
    %20 = tpu.matmul %17, %19, %cst_23 {dimension_numbers = #tpu.dot_dimension_numbers<[1], [0], [0], [1], [0, 0, 1, 1], [], []>} : vector<64x8xf32>, vector<8x8xf32>, vector<64x8xf32> -> vector<64x8xf32>
    %21 = arith.addf %14, %20 : vector<64x8xf32>
    %c3 = arith.constant 3 : index
    %c0_24 = arith.constant 0 : index
    %c0_25 = arith.constant 0 : index
    %c0_26 = arith.constant 0 : index
    %c0_27 = arith.constant 0 : index
    %22 = vector.load %arg2[%c3, %c0_24, %c0_25, %c0_26, %c0_27] : memref<9x1x8x8x8xf32, #tpu.memory_space<vmem>>, vector<1x1x8x8x8xf32>
    %23 = vector.shape_cast %22 : vector<1x1x8x8x8xf32> to vector<8x8x8xf32>
    %24 = vector.shape_cast %23 : vector<8x8x8xf32> to vector<64x8xf32>
    %c3_28 = arith.constant 3 : index
    %c0_29 = arith.constant 0 : index
    %c0_30 = arith.constant 0 : index
    %25 = vector.load %arg3[%c3_28, %c0_29, %c0_30] : memref<9x8x8xf32, #tpu.memory_space<vmem>>, vector<1x8x8xf32>
    %26 = vector.shape_cast %25 : vector<1x8x8xf32> to vector<8x8xf32>
    %cst_31 = arith.constant dense<0.000000e+00> : vector<64x8xf32>
    %27 = tpu.matmul %24, %26, %cst_31 {dimension_numbers = #tpu.dot_dimension_numbers<[1], [0], [0], [1], [0, 0, 1, 1], [], []>} : vector<64x8xf32>, vector<8x8xf32>, vector<64x8xf32> -> vector<64x8xf32>
    %28 = arith.addf %21, %27 : vector<64x8xf32>
    %c4 = arith.constant 4 : index
    %c0_32 = arith.constant 0 : index
    %c0_33 = arith.constant 0 : index
    %c0_34 = arith.constant 0 : index
    %c0_35 = arith.constant 0 : index
    %29 = vector.load %arg2[%c4, %c0_32, %c0_33, %c0_34, %c0_35] : memref<9x1x8x8x8xf32, #tpu.memory_space<vmem>>, vector<1x1x8x8x8xf32>
    %30 = vector.shape_cast %29 : vector<1x1x8x8x8xf32> to vector<8x8x8xf32>
    %31 = vector.shape_cast %30 : vector<8x8x8xf32> to vector<64x8xf32>
    %c4_36 = arith.constant 4 : index
    %c0_37 = arith.constant 0 : index
    %c0_38 = arith.constant 0 : index
    %32 = vector.load %arg3[%c4_36, %c0_37, %c0_38] : memref<9x8x8xf32, #tpu.memory_space<vmem>>, vector<1x8x8xf32>
    %33 = vector.shape_cast %32 : vector<1x8x8xf32> to vector<8x8xf32>
    %cst_39 = arith.constant dense<0.000000e+00> : vector<64x8xf32>
    %34 = tpu.matmul %31, %33, %cst_39 {dimension_numbers = #tpu.dot_dimension_numbers<[1], [0], [0], [1], [0, 0, 1, 1], [], []>} : vector<64x8xf32>, vector<8x8xf32>, vector<64x8xf32> -> vector<64x8xf32>
    %35 = arith.addf %28, %34 : vector<64x8xf32>
    %c5 = arith.constant 5 : index
    %c0_40 = arith.constant 0 : index
    %c0_41 = arith.constant 0 : index
    %c0_42 = arith.constant 0 : index
    %c0_43 = arith.constant 0 : index
    %36 = vector.load %arg2[%c5, %c0_40, %c0_41, %c0_42, %c0_43] : memref<9x1x8x8x8xf32, #tpu.memory_space<vmem>>, vector<1x1x8x8x8xf32>
    %37 = vector.shape_cast %36 : vector<1x1x8x8x8xf32> to vector<8x8x8xf32>
    %38 = vector.shape_cast %37 : vector<8x8x8xf32> to vector<64x8xf32>
    %c5_44 = arith.constant 5 : index
    %c0_45 = arith.constant 0 : index
    %c0_46 = arith.constant 0 : index
    %39 = vector.load %arg3[%c5_44, %c0_45, %c0_46] : memref<9x8x8xf32, #tpu.memory_space<vmem>>, vector<1x8x8xf32>
    %40 = vector.shape_cast %39 : vector<1x8x8xf32> to vector<8x8xf32>
    %cst_47 = arith.constant dense<0.000000e+00> : vector<64x8xf32>
    %41 = tpu.matmul %38, %40, %cst_47 {dimension_numbers = #tpu.dot_dimension_numbers<[1], [0], [0], [1], [0, 0, 1, 1], [], []>} : vector<64x8xf32>, vector<8x8xf32>, vector<64x8xf32> -> vector<64x8xf32>
    %42 = arith.addf %35, %41 : vector<64x8xf32>
    %c6 = arith.constant 6 : index
    %c0_48 = arith.constant 0 : index
    %c0_49 = arith.constant 0 : index
    %c0_50 = arith.constant 0 : index
    %c0_51 = arith.constant 0 : index
    %43 = vector.load %arg2[%c6, %c0_48, %c0_49, %c0_50, %c0_51] : memref<9x1x8x8x8xf32, #tpu.memory_space<vmem>>, vector<1x1x8x8x8xf32>
    %44 = vector.shape_cast %43 : vector<1x1x8x8x8xf32> to vector<8x8x8xf32>
    %45 = vector.shape_cast %44 : vector<8x8x8xf32> to vector<64x8xf32>
    %c6_52 = arith.constant 6 : index
    %c0_53 = arith.constant 0 : index
    %c0_54 = arith.constant 0 : index
    %46 = vector.load %arg3[%c6_52, %c0_53, %c0_54] : memref<9x8x8xf32, #tpu.memory_space<vmem>>, vector<1x8x8xf32>
    %47 = vector.shape_cast %46 : vector<1x8x8xf32> to vector<8x8xf32>
    %cst_55 = arith.constant dense<0.000000e+00> : vector<64x8xf32>
    %48 = tpu.matmul %45, %47, %cst_55 {dimension_numbers = #tpu.dot_dimension_numbers<[1], [0], [0], [1], [0, 0, 1, 1], [], []>} : vector<64x8xf32>, vector<8x8xf32>, vector<64x8xf32> -> vector<64x8xf32>
    %49 = arith.addf %42, %48 : vector<64x8xf32>
    %c7 = arith.constant 7 : index
    %c0_56 = arith.constant 0 : index
    %c0_57 = arith.constant 0 : index
    %c0_58 = arith.constant 0 : index
    %c0_59 = arith.constant 0 : index
    %50 = vector.load %arg2[%c7, %c0_56, %c0_57, %c0_58, %c0_59] : memref<9x1x8x8x8xf32, #tpu.memory_space<vmem>>, vector<1x1x8x8x8xf32>
    %51 = vector.shape_cast %50 : vector<1x1x8x8x8xf32> to vector<8x8x8xf32>
    %52 = vector.shape_cast %51 : vector<8x8x8xf32> to vector<64x8xf32>
    %c7_60 = arith.constant 7 : index
    %c0_61 = arith.constant 0 : index
    %c0_62 = arith.constant 0 : index
    %53 = vector.load %arg3[%c7_60, %c0_61, %c0_62] : memref<9x8x8xf32, #tpu.memory_space<vmem>>, vector<1x8x8xf32>
    %54 = vector.shape_cast %53 : vector<1x8x8xf32> to vector<8x8xf32>
    %cst_63 = arith.constant dense<0.000000e+00> : vector<64x8xf32>
    %55 = tpu.matmul %52, %54, %cst_63 {dimension_numbers = #tpu.dot_dimension_numbers<[1], [0], [0], [1], [0, 0, 1, 1], [], []>} : vector<64x8xf32>, vector<8x8xf32>, vector<64x8xf32> -> vector<64x8xf32>
    %56 = arith.addf %49, %55 : vector<64x8xf32>
    %c8 = arith.constant 8 : index
    %c0_64 = arith.constant 0 : index
    %c0_65 = arith.constant 0 : index
    %c0_66 = arith.constant 0 : index
    %c0_67 = arith.constant 0 : index
    %57 = vector.load %arg2[%c8, %c0_64, %c0_65, %c0_66, %c0_67] : memref<9x1x8x8x8xf32, #tpu.memory_space<vmem>>, vector<1x1x8x8x8xf32>
    %58 = vector.shape_cast %57 : vector<1x1x8x8x8xf32> to vector<8x8x8xf32>
    %59 = vector.shape_cast %58 : vector<8x8x8xf32> to vector<64x8xf32>
    %c8_68 = arith.constant 8 : index
    %c0_69 = arith.constant 0 : index
    %c0_70 = arith.constant 0 : index
    %60 = vector.load %arg3[%c8_68, %c0_69, %c0_70] : memref<9x8x8xf32, #tpu.memory_space<vmem>>, vector<1x8x8xf32>
    %61 = vector.shape_cast %60 : vector<1x8x8xf32> to vector<8x8xf32>
    %cst_71 = arith.constant dense<0.000000e+00> : vector<64x8xf32>
    %62 = tpu.matmul %59, %61, %cst_71 {dimension_numbers = #tpu.dot_dimension_numbers<[1], [0], [0], [1], [0, 0, 1, 1], [], []>} : vector<64x8xf32>, vector<8x8xf32>, vector<64x8xf32> -> vector<64x8xf32>
    %63 = arith.addf %56, %62 : vector<64x8xf32>
    %c0_72 = arith.constant 0 : index
    %c0_73 = arith.constant 0 : index
    %64 = vector.load %arg4[%c0_72, %c0_73] : memref<1x8xf32, #tpu.memory_space<vmem>>, vector<1x8xf32>
    %65 = vector.broadcast %64 : vector<1x8xf32> to vector<64x8xf32>
    %66 = arith.addf %63, %65 : vector<64x8xf32>
    %cst_74 = arith.constant 0.000000e+00 : f32
    %67 = vector.broadcast %cst_74 : f32 to vector<64x8xf32>
    %68 = arith.maximumf %66, %67 : vector<64x8xf32>
    %69 = vector.shape_cast %68 : vector<64x8xf32> to vector<8x8x8xf32>
    %c0_75 = arith.constant 0 : index
    %c0_76 = arith.constant 0 : index
    %c0_77 = arith.constant 0 : index
    %c0_78 = arith.constant 0 : index
    %70 = vector.load %arg5[%c0_75, %c0_76, %c0_77, %c0_78] : memref<1x8x8x8xf32, #tpu.memory_space<vmem>>, vector<1x8x8x8xf32>
    %71 = vector.shape_cast %70 : vector<1x8x8x8xf32> to vector<8x8x8xf32>
    %72 = vector.shape_cast %69 : vector<8x8x8xf32> to vector<1x8x8x8xf32>
    tpu.vector_store %arg5[%c0_75, %c0_76, %c0_77, %c0_78], %72 {strides = array<i32>} : memref<1x8x8x8xf32, #tpu.memory_space<vmem>>, vector<1x8x8x8xf32>,
    return
  }
  func.func @transform_0(%arg0: i32, %arg1: i32) -> (i32, i32, i32, i32, i32) {
    %c0_i32 = arith.constant 0 : i32
    %c0_i32_0 = arith.constant 0 : i32
    %c0_i32_1 = arith.constant 0 : i32
    %c0_i32_2 = arith.constant 0 : i32
    return %c0_i32, %arg0, %arg1, %c0_i32_0, %c0_i32_1 : i32, i32, i32, i32, i32
  }
  func.func @transform_1(%arg0: i32, %arg1: i32) -> (i32, i32, i32) {
    %c0_i32 = arith.constant 0 : i32
    %c0_i32_0 = arith.constant 0 : i32
    %c0_i32_1 = arith.constant 0 : i32
    %c0_i32_2 = arith.constant 0 : i32
    return %c0_i32, %c0_i32_0, %c0_i32_1 : i32, i32, i32
  }
  func.func @transform_2(%arg0: i32, %arg1: i32) -> (i32, i32) {
    %c0_i32 = arith.constant 0 : i32
    %c0_i32_0 = arith.constant 0 : i32
    %c0_i32_1 = arith.constant 0 : i32
    return %c0_i32, %c0_i32_0 : i32, i32
  }
  func.func @transform_3(%arg0: i32, %arg1: i32) -> (i32, i32, i32, i32) {
    %c0_i32 = arith.constant 0 : i32
    %c0_i32_0 = arith.constant 0 : i32
    %c0_i32_1 = arith.constant 0 : i32
    return %arg0, %arg1, %c0_i32, %c0_i32_0 : i32, i32, i32, i32
  }
}

module attributes {stable_mosaic.version = 11 : i64} {
  func.func @_pool_concat_conv_kernel(%arg0: i32, %arg1: memref<128x8xf32, #tpu.memory_space<vmem>>, %arg2: memref<4x128x4xf32, #tpu.memory_space<vmem>>, %arg3: memref<8x4xf32, #tpu.memory_space<vmem>>, %arg4: memref<4x4xf32, #tpu.memory_space<vmem>>, %arg5: memref<128x4xf32, #tpu.memory_space<vmem>>) attributes {dimension_semantics = [#tpu.dimension_semantics<parallel>], iteration_bounds = array<i64: 1>, scalar_prefetch = 0 : i64, scratch_operands = 0 : i64, tpu.core_type = #tpu.core_type<tc>, window_params = [{transform_indices = @transform_0, window_bounds = array<i64: 128, 8>}, {transform_indices = @transform_1, window_bounds = array<i64: 4, 128, 4>}, {pipeline_mode = #tpu.pipeline_mode<synchronous>, transform_indices = @transform_2, window_bounds = array<i64: 8, 4>}, {pipeline_mode = #tpu.pipeline_mode<synchronous>, transform_indices = @transform_3, window_bounds = array<i64: 4, 4>}, {transform_indices = @transform_4, window_bounds = array<i64: 128, 4>}]} {
    %c0 = arith.constant 0 : index
    %c0_0 = arith.constant 0 : index
    %c0_1 = arith.constant 0 : index
    %0 = vector.load %arg2[%c0, %c0_0, %c0_1] : memref<4x128x4xf32, #tpu.memory_space<vmem>>, vector<4x128x4xf32>
    %cst = arith.constant dense<0xFF800000> : vector<128x4xf32>
    %1 = vector.multi_reduction <maximumf>, %0, %cst [0] : vector<4x128x4xf32> to vector<128x4xf32>
    %c0_2 = arith.constant 0 : index
    %c0_3 = arith.constant 0 : index
    %2 = vector.load %arg1[%c0_2, %c0_3] : memref<128x8xf32, #tpu.memory_space<vmem>>, vector<128x8xf32>
    %c0_4 = arith.constant 0 : index
    %c0_5 = arith.constant 0 : index
    %3 = vector.load %arg3[%c0_4, %c0_5] : memref<8x4xf32, #tpu.memory_space<vmem>>, vector<8x4xf32>
    %cst_6 = arith.constant dense<0.000000e+00> : vector<128x4xf32>
    %4 = tpu.matmul %2, %3, %cst_6 {dimension_numbers = #tpu.dot_dimension_numbers<[1], [0], [0], [1], [0, 0, 1, 1], [], []>} : vector<128x8xf32>, vector<8x4xf32>, vector<128x4xf32> -> vector<128x4xf32>
    %c0_7 = arith.constant 0 : index
    %c0_8 = arith.constant 0 : index
    %5 = vector.load %arg4[%c0_7, %c0_8] : memref<4x4xf32, #tpu.memory_space<vmem>>, vector<4x4xf32>
    %cst_9 = arith.constant dense<0.000000e+00> : vector<128x4xf32>
    %6 = tpu.matmul %1, %5, %cst_9 {dimension_numbers = #tpu.dot_dimension_numbers<[1], [0], [0], [1], [0, 0, 1, 1], [], []>} : vector<128x4xf32>, vector<4x4xf32>, vector<128x4xf32> -> vector<128x4xf32>
    %7 = arith.addf %4, %6 : vector<128x4xf32>
    %c0_10 = arith.constant 0 : index
    %c0_11 = arith.constant 0 : index
    %8 = vector.load %arg5[%c0_10, %c0_11] : memref<128x4xf32, #tpu.memory_space<vmem>>, vector<128x4xf32>
    tpu.vector_store %arg5[%c0_10, %c0_11], %7 {strides = array<i32>} : memref<128x4xf32, #tpu.memory_space<vmem>>, vector<128x4xf32>,
    return
  }
  func.func @transform_0(%arg0: i32) -> (i32, i32) {
    %c0_i32 = arith.constant 0 : i32
    %c0_i32_0 = arith.constant 0 : i32
    return %arg0, %c0_i32 : i32, i32
  }
  func.func @transform_1(%arg0: i32) -> (i32, i32, i32) {
    %c0_i32 = arith.constant 0 : i32
    %c0_i32_0 = arith.constant 0 : i32
    %c0_i32_1 = arith.constant 0 : i32
    return %c0_i32, %arg0, %c0_i32_0 : i32, i32, i32
  }
  func.func @transform_2(%arg0: i32) -> (i32, i32) {
    %c0_i32 = arith.constant 0 : i32
    %c0_i32_0 = arith.constant 0 : i32
    %c0_i32_1 = arith.constant 0 : i32
    return %c0_i32, %c0_i32_0 : i32, i32
  }
  func.func @transform_3(%arg0: i32) -> (i32, i32) {
    %c0_i32 = arith.constant 0 : i32
    %c0_i32_0 = arith.constant 0 : i32
    %c0_i32_1 = arith.constant 0 : i32
    return %c0_i32, %c0_i32_0 : i32, i32
  }
  func.func @transform_4(%arg0: i32) -> (i32, i32) {
    %c0_i32 = arith.constant 0 : i32
    %c0_i32_0 = arith.constant 0 : i32
    return %arg0, %c0_i32 : i32, i32
  }
}

</mosaic_0001>

<bundles_post_ra>
// kernel: downsample_forward.4
= control target key start
LH: loop header
LB: loop body
LE: loop exit
PB: predicated region body
PF: predicated region fallthrough
CT: control target
= control target key end

     0   :  { %s827_s12 = smov 0   ;;  %s1023_s0 = inlined_call_operand.vmem [shape: f32[512,4], index: 0, kind: input, shape index: {}]   ;;  %s1024_s1 = inlined_call_operand.vmem [shape: f32[4,8], index: 1, kind: input, shape index: {}]   ;;  %s1025_s2 = inlined_call_operand.vmem [shape: f32[1,8], index: 2, kind: input, shape index: {}]   ;;  %s1026_s3 = inlined_call_operand.vmem [shape: f32[512,8], index: 3, kind: output, shape index: {}]  }
   0x1 LB: > { %s661_s13 = sadd.s32 4294967295, %s805_s12   ;;  %p665_p0 = scmp.ge.s32.totalorder %s805_s12, 1  ;;  %s805_s12 = sphi %s827_s12, %s13_s12  }
   0x2   : > { %p138_p1 = scmp.lt.s32.totalorder %s805_s12, 3 }
   0x4   : > { %p139_p2 = pnand %p665_p0, %p138_p1 }
   0x5   : > { %s666_s16 = sshll.u32 (!%p139_p2), %s661_s13, 5 }
   0x6   : > { %142 = sbr.rel (%p139_p2) target bundleno = 245 (0xf5), region = 32  ;;  %p163_p3 = scmp.lt.s32.totalorder (!%p139_p2), %s666_s16, 63 }
   0xb   : > { %v206_v0 = vld [vmem:[%s1024_s1] sm:$0xf]  ;;  %vm311_vm0 = vcmask 1043456   ;;  %s1028_s16 = smov (!%p163_p3, %s666_s16), 63  ;;  %vm214_vm1 = vcmask 31744   ;;  %vm572_vm2 = vcmask 64512  }
   0xc   : > { %739 = vmatprep.subr.msk.mxu0 %vm311_vm0, %v206_v0  ;;  %789 = vmatprep.subr.msk.mxu1 %vm311_vm0, %v206_v0  ;;  %s667_s17 = sshll.u32 %s1028_s16, 3  ;;  %v915_v33 = vld [vmem:[%s1025_s2] ss:$0 sm:$0xff] }
   0xd   : > { %740 = vmatpush3.msk.msra.mxu0 %vm311_vm0, %v206_v0  ;;  %790 = vmatpush3.msk.msra.mxu1 %vm311_vm0, %v206_v0  ;;  %s846_s20 = scalar_lea.vmem %s1023_s0, %s667_s17  ;;  %s924_s25 = scalar_lea.vmem %s1026_s3, %s667_s17 }
   0xe   : > { %v174_v1 = vld [vmem:[%s846_s20] sm:$0xff]  ;;  %v175_v3 = vld [vmem:[%s846_s20 + $0x8] sm:$0xff]  ;;  %v176_v5 = vld [vmem:[%s846_s20 + $0x10] sm:$0xff] }
   0xf   : > { %v190_v2 = vld [vmem:[%s846_s20 + $0x80] sm:$0xff]  ;;  %741 = vmatprep.mubr.msk.f32.mxu0 %vm214_vm1, %v174_v1  ;;  %v191_v4 = vld [vmem:[%s846_s20 + $0x88] sm:$0xff]  ;;  %v192_v6 = vld [vmem:[%s846_s20 + $0x90] sm:$0xff] }
  0x10   : > { %765 = vmatprep.mubr.msk.f32.mxu1 %vm214_vm1, %v190_v2  ;;  %742 = vmatmul.mubr.msk.f32.vlgmr.msra.gmra.mxu0 %vm214_vm1, %v175_v3  ;;  %v177_v7 = vld [vmem:[%s846_s20 + $0x18] sm:$0xff]  ;;  %v178_v9 = vld [vmem:[%s846_s20 + $0x20] sm:$0xff]  ;;  %v179_v11 = vld [vmem:[%s846_s20 + $0x28] sm:$0xff] }
  0x11   : > { %766 = vmatmul.mubr.msk.f32.vlgmr.msra.gmra.mxu1 %vm214_vm1, %v191_v4  ;;  %744 = vmatprep.mubr.msk.f32.mxu0 %vm214_vm1, %v176_v5  ;;  %v193_v8 = vld [vmem:[%s846_s20 + $0x98] sm:$0xff]  ;;  %v194_v10 = vld [vmem:[%s846_s20 + $0xa0] sm:$0xff]  ;;  %v195_v12 = vld [vmem:[%s846_s20 + $0xa8] sm:$0xff] }
  0x12   : > { %768 = vmatprep.mubr.msk.f32.mxu1 %vm214_vm1, %v192_v6  ;;  %v180_v13 = vld [vmem:[%s846_s20 + $0x30] sm:$0xff]  ;;  %v181_v15 = vld [vmem:[%s846_s20 + $0x38] sm:$0xff]  ;;  %v182_v17 = vld [vmem:[%s846_s20 + $0x40] sm:$0xff] }
  0x13   : > { %v196_v14 = vld [vmem:[%s846_s20 + $0xb0] sm:$0xff]  ;;  %v197_v16 = vld [vmem:[%s846_s20 + $0xb8] sm:$0xff]  ;;  %v198_v18 = vld [vmem:[%s846_s20 + $0xc0] sm:$0xff] }
  0x14   : > { %745 = vmatmul.mubr.msk.f32.gmra.mxu0 %vm214_vm1, %v177_v7  ;;  %v183_v19 = vld [vmem:[%s846_s20 + $0x48] sm:$0xff]  ;;  %v184_v21 = vld [vmem:[%s846_s20 + $0x50] sm:$0xff]  ;;  %v185_v23 = vld [vmem:[%s846_s20 + $0x58] sm:$0xff] }
  0x15   : > { %769 = vmatmul.mubr.msk.f32.gmra.mxu1 %vm214_vm1, %v193_v8  ;;  %747 = vmatprep.mubr.msk.f32.mxu0 %vm214_vm1, %v178_v9  ;;  %v199_v20 = vld [vmem:[%s846_s20 + $0xc8] sm:$0xff]  ;;  %v200_v22 = vld [vmem:[%s846_s20 + $0xd0] sm:$0xff]  ;;  %v201_v24 = vld [vmem:[%s846_s20 + $0xd8] sm:$0xff] }
  0x16   : > { %771 = vmatprep.mubr.msk.f32.mxu1 %vm214_vm1, %v194_v10  ;;  %v186_v25 = vld [vmem:[%s846_s20 + $0x60] sm:$0xff]  ;;  %v187_v27 = vld [vmem:[%s846_s20 + $0x68] sm:$0xff]  ;;  %v188_v29 = vld [vmem:[%s846_s20 + $0x70] sm:$0xff] }
  0x17   : > { %v202_v26 = vld [vmem:[%s846_s20 + $0xe0] sm:$0xff]  ;;  %v203_v28 = vld [vmem:[%s846_s20 + $0xe8] sm:$0xff]  ;;  %v204_v30 = vld [vmem:[%s846_s20 + $0xf0] sm:$0xff] }
  0x18   : > { %748 = vmatmul.mubr.msk.f32.gmra.mxu0 %vm214_vm1, %v179_v11  ;;  %v189_v31 = vld [vmem:[%s846_s20 + $0x78] sm:$0xff] }
  0x19   : > { %772 = vmatmul.mubr.msk.f32.gmra.mxu1 %vm214_vm1, %v195_v12  ;;  %750 = vmatprep.mubr.msk.f32.mxu0 %vm214_vm1, %v180_v13  ;;  %v205_v32 = vld [vmem:[%s846_s20 + $0xf8] sm:$0xff] }
  0x1a   : > { %774 = vmatprep.mubr.msk.f32.mxu1 %vm214_vm1, %v196_v14 }
  0x1c   : > { %751 = vmatmul.mubr.msk.f32.gmra.mxu0 %vm214_vm1, %v181_v15 }
  0x1d   : > { %775 = vmatmul.mubr.msk.f32.gmra.mxu1 %vm214_vm1, %v197_v16  ;;  %753 = vmatprep.mubr.msk.f32.mxu0 %vm214_vm1, %v182_v17 }
  0x1e   : > { %777 = vmatprep.mubr.msk.f32.mxu1 %vm214_vm1, %v198_v18 }
  0x20   : > { %754 = vmatmul.mubr.msk.f32.gmra.mxu0 %vm214_vm1, %v183_v19 }
  0x21   : > { %778 = vmatmul.mubr.msk.f32.gmra.mxu1 %vm214_vm1, %v199_v20  ;;  %756 = vmatprep.mubr.msk.f32.mxu0 %vm214_vm1, %v184_v21 }
  0x22   : > { %780 = vmatprep.mubr.msk.f32.mxu1 %vm214_vm1, %v200_v22 }
  0x24   : > { %757 = vmatmul.mubr.msk.f32.gmra.mxu0 %vm214_vm1, %v185_v23 }
  0x25   : > { %781 = vmatmul.mubr.msk.f32.gmra.mxu1 %vm214_vm1, %v201_v24  ;;  %759 = vmatprep.mubr.msk.f32.mxu0 %vm214_vm1, %v186_v25 }
  0x26   : > { %783 = vmatprep.mubr.msk.f32.mxu1 %vm214_vm1, %v202_v26 }
  0x28   : > { %760 = vmatmul.mubr.msk.f32.gmra.mxu0 %vm214_vm1, %v187_v27 }
  0x29   : > { %784 = vmatmul.mubr.msk.f32.gmra.mxu1 %vm214_vm1, %v203_v28  ;;  %762 = vmatprep.mubr.msk.f32.mxu0 %vm214_vm1, %v188_v29 }
  0x2a   : > { %786 = vmatprep.mubr.msk.f32.mxu1 %vm214_vm1, %v204_v30 }
  0x2c   : > { %763 = vmatmul.mubr.msk.f32.gmra.mxu0 %vm214_vm1, %v189_v31 }
  0x2d   : > { %787 = vmatmul.mubr.msk.f32.gmra.mxu1 %vm214_vm1, %v205_v32 }
  0xd0   : > { %v743_v34 = vpop.f32.mrf.mxu0 }
  0xd1   : > { %v767_v35 = vpop.f32.mrf.mxu1  ;;  %v387_v36 = vadd.f32 %v743_v34, %v915_v33 }
  0xd2   : > { %v467_v37 = vadd.f32 %v767_v35, %v915_v33  ;;  %v381_v38 = vpop.f32.mrf.mxu0 }
  0xd3   : > { %v461_v39 = vpop.f32.mrf.mxu1  ;;  %v541_v40 = vmax.f32 %v387_v36, 0.0  ;;  %v382_v42 = vadd.f32 %v915_v33, %v381_v38 }
  0xd4   : > { %v557_v41 = vmax.f32 %v467_v37, 0.0  ;;  %v462_v43 = vadd.f32 %v915_v33, %v461_v39  ;;  %v746_v44 = vpop.f32.mrf.mxu0 }
  0xd5   : > { %v770_v45 = vpop.f32.mrf.mxu1  ;;  %574 = vst.msk [vmem:[%s924_s25 + $0x8] sm:$0xff] %vm572_vm2, %v541_v40  ;;  %v540_v46 = vmax.f32 %v382_v42, 0.0  ;;  %v397_v48 = vadd.f32 %v746_v44, %v915_v33 }
  0xd6   : > { %590 = vst.msk [vmem:[%s924_s25 + $0x88] sm:$0xff] %vm572_vm2, %v557_v41  ;;  %v556_v47 = vmax.f32 %v462_v43, 0.0  ;;  %v477_v49 = vadd.f32 %v770_v45, %v915_v33  ;;  %v391_v50 = vpop.f32.mrf.mxu0 }
  0xd7   : > { %v471_v51 = vpop.f32.mrf.mxu1  ;;  %573 = vst.msk [vmem:[%s924_s25] sm:$0xff] %vm572_vm2, %v540_v46  ;;  %v543_v52 = vmax.f32 %v397_v48, 0.0  ;;  %v392_v54 = vadd.f32 %v915_v33, %v391_v50 }
  0xd8   : > { %589 = vst.msk [vmem:[%s924_s25 + $0x80] sm:$0xff] %vm572_vm2, %v556_v47  ;;  %v559_v53 = vmax.f32 %v477_v49, 0.0  ;;  %v472_v55 = vadd.f32 %v915_v33, %v471_v51  ;;  %v749_v56 = vpop.f32.mrf.mxu0 }
  0xd9   : > { %v773_v57 = vpop.f32.mrf.mxu1  ;;  %576 = vst.msk [vmem:[%s924_s25 + $0x18] sm:$0xff] %vm572_vm2, %v543_v52  ;;  %v542_v58 = vmax.f32 %v392_v54, 0.0  ;;  %v407_v60 = vadd.f32 %v749_v56, %v915_v33 }
  0xda   : > { %592 = vst.msk [vmem:[%s924_s25 + $0x98] sm:$0xff] %vm572_vm2, %v559_v53  ;;  %v558_v59 = vmax.f32 %v472_v55, 0.0  ;;  %v487_v61 = vadd.f32 %v773_v57, %v915_v33  ;;  %v401_v62 = vpop.f32.mrf.mxu0 }
  0xdb   : > { %v481_v63 = vpop.f32.mrf.mxu1  ;;  %575 = vst.msk [vmem:[%s924_s25 + $0x10] sm:$0xff] %vm572_vm2, %v542_v58  ;;  %v545_v0 = vmax.f32 %v407_v60, 0.0  ;;  %v402_v2 = vadd.f32 %v915_v33, %v401_v62 }
  0xdc   : > { %591 = vst.msk [vmem:[%s924_s25 + $0x90] sm:$0xff] %vm572_vm2, %v558_v59  ;;  %v561_v1 = vmax.f32 %v487_v61, 0.0  ;;  %v482_v3 = vadd.f32 %v915_v33, %v481_v63  ;;  %v752_v4 = vpop.f32.mrf.mxu0 }
  0xdd   : > { %v776_v5 = vpop.f32.mrf.mxu1  ;;  %578 = vst.msk [vmem:[%s924_s25 + $0x28] sm:$0xff] %vm572_vm2, %v545_v0  ;;  %v544_v6 = vmax.f32 %v402_v2, 0.0  ;;  %v417_v8 = vadd.f32 %v752_v4, %v915_v33 }
  0xde   : > { %594 = vst.msk [vmem:[%s924_s25 + $0xa8] sm:$0xff] %vm572_vm2, %v561_v1  ;;  %v560_v7 = vmax.f32 %v482_v3, 0.0  ;;  %v497_v9 = vadd.f32 %v776_v5, %v915_v33  ;;  %v411_v10 = vpop.f32.mrf.mxu0 }
  0xdf   : > { %v491_v11 = vpop.f32.mrf.mxu1  ;;  %577 = vst.msk [vmem:[%s924_s25 + $0x20] sm:$0xff] %vm572_vm2, %v544_v6  ;;  %v547_v12 = vmax.f32 %v417_v8, 0.0  ;;  %v412_v14 = vadd.f32 %v915_v33, %v411_v10 }
  0xe0   : > { %593 = vst.msk [vmem:[%s924_s25 + $0xa0] sm:$0xff] %vm572_vm2, %v560_v7  ;;  %v563_v13 = vmax.f32 %v497_v9, 0.0  ;;  %v492_v15 = vadd.f32 %v915_v33, %v491_v11  ;;  %v755_v16 = vpop.f32.mrf.mxu0 }
  0xe1   : > { %v779_v17 = vpop.f32.mrf.mxu1  ;;  %580 = vst.msk [vmem:[%s924_s25 + $0x38] sm:$0xff] %vm572_vm2, %v547_v12  ;;  %v546_v18 = vmax.f32 %v412_v14, 0.0  ;;  %v427_v20 = vadd.f32 %v755_v16, %v915_v33 }
  0xe2   : > { %596 = vst.msk [vmem:[%s924_s25 + $0xb8] sm:$0xff] %vm572_vm2, %v563_v13  ;;  %v562_v19 = vmax.f32 %v492_v15, 0.0  ;;  %v507_v21 = vadd.f32 %v779_v17, %v915_v33  ;;  %v421_v22 = vpop.f32.mrf.mxu0 }
  0xe3   : > { %v501_v23 = vpop.f32.mrf.mxu1  ;;  %579 = vst.msk [vmem:[%s924_s25 + $0x30] sm:$0xff] %vm572_vm2, %v546_v18  ;;  %v549_v24 = vmax.f32 %v427_v20, 0.0  ;;  %v422_v26 = vadd.f32 %v915_v33, %v421_v22 }
  0xe4   : > { %595 = vst.msk [vmem:[%s924_s25 + $0xb0] sm:$0xff] %vm572_vm2, %v562_v19  ;;  %v565_v25 = vmax.f32 %v507_v21, 0.0  ;;  %v502_v27 = vadd.f32 %v915_v33, %v501_v23  ;;  %v758_v28 = vpop.f32.mrf.mxu0 }
  0xe5   : > { %v782_v29 = vpop.f32.mrf.mxu1  ;;  %582 = vst.msk [vmem:[%s924_s25 + $0x48] sm:$0xff] %vm572_vm2, %v549_v24  ;;  %v548_v30 = vmax.f32 %v422_v26, 0.0  ;;  %v437_v32 = vadd.f32 %v758_v28, %v915_v33 }
  0xe6   : > { %598 = vst.msk [vmem:[%s924_s25 + $0xc8] sm:$0xff] %vm572_vm2, %v565_v25  ;;  %v564_v31 = vmax.f32 %v502_v27, 0.0  ;;  %v517_v34 = vadd.f32 %v782_v29, %v915_v33  ;;  %v431_v35 = vpop.f32.mrf.mxu0 }
  0xe7   : > { %v511_v36 = vpop.f32.mrf.mxu1  ;;  %581 = vst.msk [vmem:[%s924_s25 + $0x40] sm:$0xff] %vm572_vm2, %v548_v30  ;;  %v551_v37 = vmax.f32 %v437_v32, 0.0  ;;  %v432_v39 = vadd.f32 %v915_v33, %v431_v35 }
  0xe8   : > { %597 = vst.msk [vmem:[%s924_s25 + $0xc0] sm:$0xff] %vm572_vm2, %v564_v31  ;;  %v567_v38 = vmax.f32 %v517_v34, 0.0  ;;  %v512_v40 = vadd.f32 %v915_v33, %v511_v36  ;;  %v761_v41 = vpop.f32.mrf.mxu0 }
  0xe9   : > { %v785_v42 = vpop.f32.mrf.mxu1  ;;  %584 = vst.msk [vmem:[%s924_s25 + $0x58] sm:$0xff] %vm572_vm2, %v551_v37  ;;  %v550_v43 = vmax.f32 %v432_v39, 0.0  ;;  %v447_v45 = vadd.f32 %v761_v41, %v915_v33 }
  0xea   : > { %600 = vst.msk [vmem:[%s924_s25 + $0xd8] sm:$0xff] %vm572_vm2, %v567_v38  ;;  %v566_v44 = vmax.f32 %v512_v40, 0.0  ;;  %v527_v46 = vadd.f32 %v785_v42, %v915_v33  ;;  %v441_v47 = vpop.f32.mrf.mxu0 }
  0xeb   : > { %v521_v48 = vpop.f32.mrf.mxu1  ;;  %583 = vst.msk [vmem:[%s924_s25 + $0x50] sm:$0xff] %vm572_vm2, %v550_v43  ;;  %v553_v49 = vmax.f32 %v447_v45, 0.0  ;;  %v442_v51 = vadd.f32 %v915_v33, %v441_v47 }
  0xec   : > { %599 = vst.msk [vmem:[%s924_s25 + $0xd0] sm:$0xff] %vm572_vm2, %v566_v44  ;;  %v569_v50 = vmax.f32 %v527_v46, 0.0  ;;  %v522_v52 = vadd.f32 %v915_v33, %v521_v48  ;;  %v764_v53 = vpop.f32.mrf.mxu0 }
  0xed   : > { %v788_v54 = vpop.f32.mrf.mxu1  ;;  %586 = vst.msk [vmem:[%s924_s25 + $0x68] sm:$0xff] %vm572_vm2, %v553_v49  ;;  %v552_v55 = vmax.f32 %v442_v51, 0.0  ;;  %v457_v57 = vadd.f32 %v764_v53, %v915_v33 }
  0xee   : > { %602 = vst.msk [vmem:[%s924_s25 + $0xe8] sm:$0xff] %vm572_vm2, %v569_v50  ;;  %v568_v56 = vmax.f32 %v522_v52, 0.0  ;;  %v537_v58 = vadd.f32 %v788_v54, %v915_v33  ;;  %v451_v59 = vpop.f32.mrf.mxu0 }
  0xef   : > { %v531_v60 = vpop.f32.mrf.mxu1  ;;  %585 = vst.msk [vmem:[%s924_s25 + $0x60] sm:$0xff] %vm572_vm2, %v552_v55  ;;  %v555_v61 = vmax.f32 %v457_v57, 0.0  ;;  %v452_v63 = vadd.f32 %v915_v33, %v451_v59 }
  0xf0   : > { %601 = vst.msk [vmem:[%s924_s25 + $0xe0] sm:$0xff] %vm572_vm2, %v568_v56  ;;  %v571_v62 = vmax.f32 %v537_v58, 0.0  ;;  %v532_v0 = vadd.f32 %v915_v33, %v531_v60 }
  0xf1   : > { %588 = vst.msk [vmem:[%s924_s25 + $0x78] sm:$0xff] %vm572_vm2, %v555_v61  ;;  %v554_v1 = vmax.f32 %v452_v63, 0.0 }
  0xf2   : > { %604 = vst.msk [vmem:[%s924_s25 + $0xf8] sm:$0xff] %vm572_vm2, %v571_v62  ;;  %v570_v2 = vmax.f32 %v532_v0, 0.0 }
  0xf3   : > { %587 = vst.msk [vmem:[%s924_s25 + $0x70] sm:$0xff] %vm572_vm2, %v554_v1 }
  0xf4   : > { %603 = vst.msk [vmem:[%s924_s25 + $0xf0] sm:$0xff] %vm572_vm2, %v570_v2 }
  0xf5 PF: > { %s13_s12 = sadd.s32 1, %s805_s12  }
  0xf6   : > { %p10_p4 = scmp.ge.s32.totalorder %s13_s12, 4  }
  0xf8   :  { %12 = sbr.rel (!%p10_p4) target bundleno = 1 (0x1), region = 62 }

// kernel: downsample_forward.5
= control target key start
LH: loop header
LB: loop body
LE: loop exit
PB: predicated region body
PF: predicated region fallthrough
CT: control target
= control target key end

     0   :  { %s5781_s12 = smov 0   ;;  %s5783_s13 = smov 0   ;;  %s7581_s0 = inlined_call_operand.vmem [shape: f32[3,2,18,16,4], index: 0, kind: input, shape index: {}]   ;;  %s7582_s1 = inlined_call_operand.vmem [shape: f32[9,4,4], index: 1, kind: input, shape index: {}]   ;;  %s7583_s2 = inlined_call_operand.vmem [shape: f32[1,4], index: 2, kind: input, shape index: {}]   ;;  %s7584_s3 = inlined_call_operand.vmem [shape: f32[2,16,16,4], index: 3, kind: output, shape index: {}]  }
   0x1   :  { %s5785_s14 = smov 0   ;;  %s5787_s15 = smov 0  }
   0x2   :  { %s5789_s16 = smov 0  }
   0x3 LB: > { %s25_s17 = sadd.s32 1, %s5755_s15  ;;  %p39_p1 = scmp.ne.s32.totalorder %s5747_s13, %s5743_s12  ;;  %s5759_s16 = sphi %s5789_s16, %s13_s16   ;;  %s5755_s15 = sphi %s5787_s15, %s7816_s15   ;;  %s5751_s14 = sphi %s5785_s14, %s7815_s14   ;;  %s5747_s13 = sphi %s5783_s13, %s7814_s13   ;;  %s5743_s12 = sphi %s5781_s12, %s7813_s12  }
   0x4   : > { %p27_p0 = scmp.ge.s32.totalorder %s25_s17, 2  ;;  %p40_p2 = scmp.eq.s32.totalorder %s5759_s16, 0 }
   0x5   : > { %s32_s19 = sadd.s32 1, %s5747_s13  ;;  %p4359_p5 = scmp.ge.s32.totalorder %s5759_s16, 2 }
   0x6   : > { %s7818_s17 = smov (%p27_p0, %s25_s17), 0  ;;  %p41_p3 = por %p40_p2, %p39_p1 }
   0x7   : > { %s29_s18 = ssub.s32 %s5755_s15, %s7818_s17  ;;  %141 = sbr.rel (%p4359_p5) target bundleno = 71 (0x47), region = 24 }
   0x8   : > { %p30_p4 = scmp.eq.s32.totalorder %s29_s18, 0 }
   0xa   : > { %s5816_s20 = scalar_select %p30_p4, %s5747_s13, %s32_s19  }
   0xc   : > { %144 = sbr.rel (!%p41_p3) target bundleno = 71 (0x47), region = 28  ;;  %s146_s21 = sand.u32 (%p41_p3), 1, %s5747_s13  }
   0xd   : > { %s5679_s22 = smul.u32 (%p41_p3), 288, %s5755_s15 }
   0xe   : > { %s5678_s23 = smul.u32 (%p41_p3), 864, %s146_s21 }
   0xf   : > { %s5824_s26 = scalar_lea.vmem (%p41_p3), %s7581_s0, %s5679_s22 }
  0x10   : > { %v394_v0 = vld [vmem:[%s5824_s26] sm:$0xff] (%p41_p3)  ;;  %v396_v1 = vld [vmem:[%s5824_s26 + $0x8] sm:$0xff] (%p41_p3)  ;;  %v398_v2 = vld [vmem:[%s5824_s26 + $0x10] sm:$0xff] (%p41_p3)  ;;  %s5829_s27 = scalar_lea.vmem (%p41_p3), [#allocation2], %s5678_s23 }
  0x11   : > { %395 = vst [vmem:[%s5829_s27] sm:$0xff] %v394_v0  ;;  %397 = vst [vmem:[%s5829_s27 + $0x8] sm:$0xff] %v396_v1  ;;  %v400_v3 = vld [vmem:[%s5824_s26 + $0x18] sm:$0xff]  ;;  %v402_v4 = vld [vmem:[%s5824_s26 + $0x20] sm:$0xff] }
  0x12   : > { %399 = vst [vmem:[%s5829_s27 + $0x10] sm:$0xff] %v398_v2  ;;  %v404_v5 = vld [vmem:[%s5824_s26 + $0x28] sm:$0xff]  ;;  %401 = vst [vmem:[%s5829_s27 + $0x18] sm:$0xff] %v400_v3  ;;  %v406_v6 = vld [vmem:[%s5824_s26 + $0x30] sm:$0xff] }
  0x13   : > { %403 = vst [vmem:[%s5829_s27 + $0x20] sm:$0xff] %v402_v4  ;;  %405 = vst [vmem:[%s5829_s27 + $0x28] sm:$0xff] %v404_v5  ;;  %v408_v7 = vld [vmem:[%s5824_s26 + $0x38] sm:$0xff]  ;;  %v410_v8 = vld [vmem:[%s5824_s26 + $0x40] sm:$0xff] }
  0x14   : > { %407 = vst [vmem:[%s5829_s27 + $0x30] sm:$0xff] %v406_v6  ;;  %409 = vst [vmem:[%s5829_s27 + $0x38] sm:$0xff] %v408_v7  ;;  %v412_v9 = vld [vmem:[%s5824_s26 + $0x48] sm:$0xff]  ;;  %v414_v10 = vld [vmem:[%s5824_s26 + $0x50] sm:$0xff] }
  0x15   : > { %411 = vst [vmem:[%s5829_s27 + $0x40] sm:$0xff] %v410_v8  ;;  %v416_v11 = vld [vmem:[%s5824_s26 + $0x58] sm:$0xff]  ;;  %413 = vst [vmem:[%s5829_s27 + $0x48] sm:$0xff] %v412_v9  ;;  %v418_v12 = vld [vmem:[%s5824_s26 + $0x60] sm:$0xff] }
  0x16   : > { %415 = vst [vmem:[%s5829_s27 + $0x50] sm:$0xff] %v414_v10  ;;  %417 = vst [vmem:[%s5829_s27 + $0x58] sm:$0xff] %v416_v11  ;;  %v420_v13 = vld [vmem:[%s5824_s26 + $0x68] sm:$0xff]  ;;  %v422_v14 = vld [vmem:[%s5824_s26 + $0x70] sm:$0xff] }
  0x17   : > { %419 = vst [vmem:[%s5829_s27 + $0x60] sm:$0xff] %v418_v12  ;;  %421 = vst [vmem:[%s5829_s27 + $0x68] sm:$0xff] %v420_v13  ;;  %v424_v15 = vld [vmem:[%s5824_s26 + $0x78] sm:$0xff]  ;;  %v426_v16 = vld [vmem:[%s5824_s26 + $0x80] sm:$0xff] }
  0x18   : > { %423 = vst [vmem:[%s5829_s27 + $0x70] sm:$0xff] %v422_v14  ;;  %v428_v17 = vld [vmem:[%s5824_s26 + $0x88] sm:$0xff]  ;;  %425 = vst [vmem:[%s5829_s27 + $0x78] sm:$0xff] %v424_v15  ;;  %v430_v18 = vld [vmem:[%s5824_s26 + $0x90] sm:$0xff] }
  0x19   : > { %427 = vst [vmem:[%s5829_s27 + $0x80] sm:$0xff] %v426_v16  ;;  %429 = vst [vmem:[%s5829_s27 + $0x88] sm:$0xff] %v428_v17  ;;  %v432_v19 = vld [vmem:[%s5824_s26 + $0x98] sm:$0xff]  ;;  %v434_v20 = vld [vmem:[%s5824_s26 + $0xa0] sm:$0xff] }
  0x1a   : > { %431 = vst [vmem:[%s5829_s27 + $0x90] sm:$0xff] %v430_v18  ;;  %433 = vst [vmem:[%s5829_s27 + $0x98] sm:$0xff] %v432_v19  ;;  %v436_v21 = vld [vmem:[%s5824_s26 + $0xa8] sm:$0xff]  ;;  %v438_v22 = vld [vmem:[%s5824_s26 + $0xb0] sm:$0xff] }
  0x1b   : > { %435 = vst [vmem:[%s5829_s27 + $0xa0] sm:$0xff] %v434_v20  ;;  %v440_v23 = vld [vmem:[%s5824_s26 + $0xb8] sm:$0xff]  ;;  %437 = vst [vmem:[%s5829_s27 + $0xa8] sm:$0xff] %v436_v21  ;;  %v442_v24 = vld [vmem:[%s5824_s26 + $0xc0] sm:$0xff] }
  0x1c   : > { %439 = vst [vmem:[%s5829_s27 + $0xb0] sm:$0xff] %v438_v22  ;;  %441 = vst [vmem:[%s5829_s27 + $0xb8] sm:$0xff] %v440_v23  ;;  %v444_v25 = vld [vmem:[%s5824_s26 + $0xc8] sm:$0xff]  ;;  %v446_v26 = vld [vmem:[%s5824_s26 + $0xd0] sm:$0xff] }
  0x1d   : > { %443 = vst [vmem:[%s5829_s27 + $0xc0] sm:$0xff] %v442_v24  ;;  %445 = vst [vmem:[%s5829_s27 + $0xc8] sm:$0xff] %v444_v25  ;;  %v448_v27 = vld [vmem:[%s5824_s26 + $0xd8] sm:$0xff]  ;;  %v450_v28 = vld [vmem:[%s5824_s26 + $0xe0] sm:$0xff] }
  0x1e   : > { %447 = vst [vmem:[%s5829_s27 + $0xd0] sm:$0xff] %v446_v26  ;;  %v452_v29 = vld [vmem:[%s5824_s26 + $0xe8] sm:$0xff]  ;;  %449 = vst [vmem:[%s5829_s27 + $0xd8] sm:$0xff] %v448_v27  ;;  %v454_v30 = vld [vmem:[%s5824_s26 + $0xf0] sm:$0xff] }
  0x1f   : > { %451 = vst [vmem:[%s5829_s27 + $0xe0] sm:$0xff] %v450_v28  ;;  %453 = vst [vmem:[%s5829_s27 + $0xe8] sm:$0xff] %v452_v29  ;;  %v456_v31 = vld [vmem:[%s5824_s26 + $0xf8] sm:$0xff]  ;;  %v458_v32 = vld [vmem:[%s5824_s26 + $0x100] sm:$0xff] }
  0x20   : > { %455 = vst [vmem:[%s5829_s27 + $0xf0] sm:$0xff] %v454_v30  ;;  %457 = vst [vmem:[%s5829_s27 + $0xf8] sm:$0xff] %v456_v31  ;;  %v460_v33 = vld [vmem:[%s5824_s26 + $0x108] sm:$0xff]  ;;  %v462_v34 = vld [vmem:[%s5824_s26 + $0x110] sm:$0xff] }
  0x21   : > { %459 = vst [vmem:[%s5829_s27 + $0x100] sm:$0xff] %v458_v32  ;;  %v464_v35 = vld [vmem:[%s5824_s26 + $0x118] sm:$0xff]  ;;  %461 = vst [vmem:[%s5829_s27 + $0x108] sm:$0xff] %v460_v33  ;;  %v466_v36 = vld [vmem:[%s5824_s26 + $0x240] sm:$0xff] }
  0x22   : > { %463 = vst [vmem:[%s5829_s27 + $0x110] sm:$0xff] %v462_v34  ;;  %465 = vst [vmem:[%s5829_s27 + $0x118] sm:$0xff] %v464_v35  ;;  %v468_v37 = vld [vmem:[%s5824_s26 + $0x248] sm:$0xff]  ;;  %v470_v38 = vld [vmem:[%s5824_s26 + $0x250] sm:$0xff] }
  0x23   : > { %467 = vst [vmem:[%s5829_s27 + $0x120] sm:$0xff] %v466_v36  ;;  %469 = vst [vmem:[%s5829_s27 + $0x128] sm:$0xff] %v468_v37  ;;  %v472_v39 = vld [vmem:[%s5824_s26 + $0x258] sm:$0xff]  ;;  %v474_v40 = vld [vmem:[%s5824_s26 + $0x260] sm:$0xff] }
  0x24   : > { %471 = vst [vmem:[%s5829_s27 + $0x130] sm:$0xff] %v470_v38  ;;  %v476_v41 = vld [vmem:[%s5824_s26 + $0x268] sm:$0xff]  ;;  %473 = vst [vmem:[%s5829_s27 + $0x138] sm:$0xff] %v472_v39  ;;  %v478_v42 = vld [vmem:[%s5824_s26 + $0x270] sm:$0xff] }
  0x25   : > { %475 = vst [vmem:[%s5829_s27 + $0x140] sm:$0xff] %v474_v40  ;;  %477 = vst [vmem:[%s5829_s27 + $0x148] sm:$0xff] %v476_v41  ;;  %v480_v43 = vld [vmem:[%s5824_s26 + $0x278] sm:$0xff]  ;;  %v482_v44 = vld [vmem:[%s5824_s26 + $0x280] sm:$0xff] }
  0x26   : > { %479 = vst [vmem:[%s5829_s27 + $0x150] sm:$0xff] %v478_v42  ;;  %481 = vst [vmem:[%s5829_s27 + $0x158] sm:$0xff] %v480_v43  ;;  %v484_v45 = vld [vmem:[%s5824_s26 + $0x288] sm:$0xff]  ;;  %v486_v46 = vld [vmem:[%s5824_s26 + $0x290] sm:$0xff] }
  0x27   : > { %483 = vst [vmem:[%s5829_s27 + $0x160] sm:$0xff] %v482_v44  ;;  %v488_v47 = vld [vmem:[%s5824_s26 + $0x298] sm:$0xff]  ;;  %485 = vst [vmem:[%s5829_s27 + $0x168] sm:$0xff] %v484_v45  ;;  %v490_v48 = vld [vmem:[%s5824_s26 + $0x2a0] sm:$0xff] }
  0x28   : > { %487 = vst [vmem:[%s5829_s27 + $0x170] sm:$0xff] %v486_v46  ;;  %489 = vst [vmem:[%s5829_s27 + $0x178] sm:$0xff] %v488_v47  ;;  %v492_v49 = vld [vmem:[%s5824_s26 + $0x2a8] sm:$0xff]  ;;  %v494_v50 = vld [vmem:[%s5824_s26 + $0x2b0] sm:$0xff] }
  0x29   : > { %491 = vst [vmem:[%s5829_s27 + $0x180] sm:$0xff] %v490_v48  ;;  %493 = vst [vmem:[%s5829_s27 + $0x188] sm:$0xff] %v492_v49  ;;  %v496_v51 = vld [vmem:[%s5824_s26 + $0x2b8] sm:$0xff]  ;;  %v498_v52 = vld [vmem:[%s5824_s26 + $0x2c0] sm:$0xff] }
  0x2a   : > { %495 = vst [vmem:[%s5829_s27 + $0x190] sm:$0xff] %v494_v50  ;;  %v500_v53 = vld [vmem:[%s5824_s26 + $0x2c8] sm:$0xff]  ;;  %497 = vst [vmem:[%s5829_s27 + $0x198] sm:$0xff] %v496_v51  ;;  %v502_v54 = vld [vmem:[%s5824_s26 + $0x2d0] sm:$0xff] }
  0x2b   : > { %499 = vst [vmem:[%s5829_s27 + $0x1a0] sm:$0xff] %v498_v52  ;;  %501 = vst [vmem:[%s5829_s27 + $0x1a8] sm:$0xff] %v500_v53  ;;  %v504_v55 = vld [vmem:[%s5824_s26 + $0x2d8] sm:$0xff]  ;;  %v506_v56 = vld [vmem:[%s5824_s26 + $0x2e0] sm:$0xff] }
  0x2c   : > { %503 = vst [vmem:[%s5829_s27 + $0x1b0] sm:$0xff] %v502_v54  ;;  %505 = vst [vmem:[%s5829_s27 + $0x1b8] sm:$0xff] %v504_v55  ;;  %v508_v57 = vld [vmem:[%s5824_s26 + $0x2e8] sm:$0xff]  ;;  %v510_v58 = vld [vmem:[%s5824_s26 + $0x2f0] sm:$0xff] }
  0x2d   : > { %507 = vst [vmem:[%s5829_s27 + $0x1c0] sm:$0xff] %v506_v56  ;;  %v512_v59 = vld [vmem:[%s5824_s26 + $0x2f8] sm:$0xff]  ;;  %509 = vst [vmem:[%s5829_s27 + $0x1c8] sm:$0xff] %v508_v57  ;;  %v514_v60 = vld [vmem:[%s5824_s26 + $0x300] sm:$0xff] }
  0x2e   : > { %511 = vst [vmem:[%s5829_s27 + $0x1d0] sm:$0xff] %v510_v58  ;;  %513 = vst [vmem:[%s5829_s27 + $0x1d8] sm:$0xff] %v512_v59  ;;  %v516_v61 = vld [vmem:[%s5824_s26 + $0x308] sm:$0xff]  ;;  %v518_v62 = vld [vmem:[%s5824_s26 + $0x310] sm:$0xff] }
  0x2f   : > { %515 = vst [vmem:[%s5829_s27 + $0x1e0] sm:$0xff] %v514_v60  ;;  %517 = vst [vmem:[%s5829_s27 + $0x1e8] sm:$0xff] %v516_v61  ;;  %v520_v63 = vld [vmem:[%s5824_s26 + $0x318] sm:$0xff]  ;;  %v522_v0 = vld [vmem:[%s5824_s26 + $0x320] sm:$0xff] }
  0x30   : > { %519 = vst [vmem:[%s5829_s27 + $0x1f0] sm:$0xff] %v518_v62  ;;  %v524_v1 = vld [vmem:[%s5824_s26 + $0x328] sm:$0xff]  ;;  %521 = vst [vmem:[%s5829_s27 + $0x1f8] sm:$0xff] %v520_v63  ;;  %v526_v2 = vld [vmem:[%s5824_s26 + $0x330] sm:$0xff] }
  0x31   : > { %523 = vst [vmem:[%s5829_s27 + $0x200] sm:$0xff] %v522_v0  ;;  %525 = vst [vmem:[%s5829_s27 + $0x208] sm:$0xff] %v524_v1  ;;  %v528_v3 = vld [vmem:[%s5824_s26 + $0x338] sm:$0xff]  ;;  %v530_v4 = vld [vmem:[%s5824_s26 + $0x340] sm:$0xff] }
  0x32   : > { %527 = vst [vmem:[%s5829_s27 + $0x210] sm:$0xff] %v526_v2  ;;  %529 = vst [vmem:[%s5829_s27 + $0x218] sm:$0xff] %v528_v3  ;;  %v532_v5 = vld [vmem:[%s5824_s26 + $0x348] sm:$0xff]  ;;  %v534_v6 = vld [vmem:[%s5824_s26 + $0x350] sm:$0xff] }
  0x33   : > { %531 = vst [vmem:[%s5829_s27 + $0x220] sm:$0xff] %v530_v4  ;;  %v536_v7 = vld [vmem:[%s5824_s26 + $0x358] sm:$0xff]  ;;  %533 = vst [vmem:[%s5829_s27 + $0x228] sm:$0xff] %v532_v5  ;;  %v538_v8 = vld [vmem:[%s5824_s26 + $0x480] sm:$0xff] }
  0x34   : > { %535 = vst [vmem:[%s5829_s27 + $0x230] sm:$0xff] %v534_v6  ;;  %537 = vst [vmem:[%s5829_s27 + $0x238] sm:$0xff] %v536_v7  ;;  %v540_v9 = vld [vmem:[%s5824_s26 + $0x488] sm:$0xff]  ;;  %v542_v10 = vld [vmem:[%s5824_s26 + $0x490] sm:$0xff] }
  0x35   : > { %539 = vst [vmem:[%s5829_s27 + $0x240] sm:$0xff] %v538_v8  ;;  %541 = vst [vmem:[%s5829_s27 + $0x248] sm:$0xff] %v540_v9  ;;  %v544_v11 = vld [vmem:[%s5824_s26 + $0x498] sm:$0xff]  ;;  %v546_v12 = vld [vmem:[%s5824_s26 + $0x4a0] sm:$0xff] }
  0x36   : > { %543 = vst [vmem:[%s5829_s27 + $0x250] sm:$0xff] %v542_v10  ;;  %v548_v13 = vld [vmem:[%s5824_s26 + $0x4a8] sm:$0xff]  ;;  %545 = vst [vmem:[%s5829_s27 + $0x258] sm:$0xff] %v544_v11  ;;  %v550_v14 = vld [vmem:[%s5824_s26 + $0x4b0] sm:$0xff] }
  0x37   : > { %547 = vst [vmem:[%s5829_s27 + $0x260] sm:$0xff] %v546_v12  ;;  %549 = vst [vmem:[%s5829_s27 + $0x268] sm:$0xff] %v548_v13  ;;  %v552_v15 = vld [vmem:[%s5824_s26 + $0x4b8] sm:$0xff]  ;;  %v554_v16 = vld [vmem:[%s5824_s26 + $0x4c0] sm:$0xff] }
  0x38   : > { %551 = vst [vmem:[%s5829_s27 + $0x270] sm:$0xff] %v550_v14  ;;  %553 = vst [vmem:[%s5829_s27 + $0x278] sm:$0xff] %v552_v15  ;;  %v556_v17 = vld [vmem:[%s5824_s26 + $0x4c8] sm:$0xff]  ;;  %v558_v18 = vld [vmem:[%s5824_s26 + $0x4d0] sm:$0xff] }
  0x39   : > { %555 = vst [vmem:[%s5829_s27 + $0x280] sm:$0xff] %v554_v16  ;;  %v560_v19 = vld [vmem:[%s5824_s26 + $0x4d8] sm:$0xff]  ;;  %557 = vst [vmem:[%s5829_s27 + $0x288] sm:$0xff] %v556_v17  ;;  %v562_v20 = vld [vmem:[%s5824_s26 + $0x4e0] sm:$0xff] }
  0x3a   : > { %559 = vst [vmem:[%s5829_s27 + $0x290] sm:$0xff] %v558_v18  ;;  %561 = vst [vmem:[%s5829_s27 + $0x298] sm:$0xff] %v560_v19  ;;  %v564_v21 = vld [vmem:[%s5824_s26 + $0x4e8] sm:$0xff]  ;;  %v566_v22 = vld [vmem:[%s5824_s26 + $0x4f0] sm:$0xff] }
  0x3b   : > { %563 = vst [vmem:[%s5829_s27 + $0x2a0] sm:$0xff] %v562_v20  ;;  %565 = vst [vmem:[%s5829_s27 + $0x2a8] sm:$0xff] %v564_v21  ;;  %v568_v23 = vld [vmem:[%s5824_s26 + $0x4f8] sm:$0xff]  ;;  %v570_v24 = vld [vmem:[%s5824_s26 + $0x500] sm:$0xff] }
  0x3c   : > { %567 = vst [vmem:[%s5829_s27 + $0x2b0] sm:$0xff] %v566_v22  ;;  %v572_v25 = vld [vmem:[%s5824_s26 + $0x508] sm:$0xff]  ;;  %569 = vst [vmem:[%s5829_s27 + $0x2b8] sm:$0xff] %v568_v23  ;;  %v574_v26 = vld [vmem:[%s5824_s26 + $0x510] sm:$0xff] }
  0x3d   : > { %571 = vst [vmem:[%s5829_s27 + $0x2c0] sm:$0xff] %v570_v24  ;;  %573 = vst [vmem:[%s5829_s27 + $0x2c8] sm:$0xff] %v572_v25  ;;  %v576_v27 = vld [vmem:[%s5824_s26 + $0x518] sm:$0xff]  ;;  %v578_v28 = vld [vmem:[%s5824_s26 + $0x520] sm:$0xff] }
  0x3e   : > { %575 = vst [vmem:[%s5829_s27 + $0x2d0] sm:$0xff] %v574_v26  ;;  %577 = vst [vmem:[%s5829_s27 + $0x2d8] sm:$0xff] %v576_v27  ;;  %v580_v29 = vld [vmem:[%s5824_s26 + $0x528] sm:$0xff]  ;;  %v582_v30 = vld [vmem:[%s5824_s26 + $0x530] sm:$0xff] }
  0x3f   : > { %579 = vst [vmem:[%s5829_s27 + $0x2e0] sm:$0xff] %v578_v28  ;;  %v584_v31 = vld [vmem:[%s5824_s26 + $0x538] sm:$0xff]  ;;  %581 = vst [vmem:[%s5829_s27 + $0x2e8] sm:$0xff] %v580_v29  ;;  %v586_v32 = vld [vmem:[%s5824_s26 + $0x540] sm:$0xff] }
  0x40   : > { %583 = vst [vmem:[%s5829_s27 + $0x2f0] sm:$0xff] %v582_v30  ;;  %585 = vst [vmem:[%s5829_s27 + $0x2f8] sm:$0xff] %v584_v31  ;;  %v588_v33 = vld [vmem:[%s5824_s26 + $0x548] sm:$0xff]  ;;  %v590_v34 = vld [vmem:[%s5824_s26 + $0x550] sm:$0xff] }
  0x41   : > { %587 = vst [vmem:[%s5829_s27 + $0x300] sm:$0xff] %v586_v32  ;;  %589 = vst [vmem:[%s5829_s27 + $0x308] sm:$0xff] %v588_v33  ;;  %v592_v35 = vld [vmem:[%s5824_s26 + $0x558] sm:$0xff]  ;;  %v594_v36 = vld [vmem:[%s5824_s26 + $0x560] sm:$0xff] }
  0x42   : > { %591 = vst [vmem:[%s5829_s27 + $0x310] sm:$0xff] %v590_v34  ;;  %v596_v37 = vld [vmem:[%s5824_s26 + $0x568] sm:$0xff]  ;;  %593 = vst [vmem:[%s5829_s27 + $0x318] sm:$0xff] %v592_v35  ;;  %v598_v38 = vld [vmem:[%s5824_s26 + $0x570] sm:$0xff] }
  0x43   : > { %595 = vst [vmem:[%s5829_s27 + $0x320] sm:$0xff] %v594_v36  ;;  %597 = vst [vmem:[%s5829_s27 + $0x328] sm:$0xff] %v596_v37  ;;  %v600_v39 = vld [vmem:[%s5824_s26 + $0x578] sm:$0xff]  ;;  %v602_v40 = vld [vmem:[%s5824_s26 + $0x580] sm:$0xff] }
  0x44   : > { %599 = vst [vmem:[%s5829_s27 + $0x330] sm:$0xff] %v598_v38  ;;  %601 = vst [vmem:[%s5829_s27 + $0x338] sm:$0xff] %v600_v39  ;;  %v604_v41 = vld [vmem:[%s5824_s26 + $0x588] sm:$0xff]  ;;  %v606_v42 = vld [vmem:[%s5824_s26 + $0x590] sm:$0xff] }
  0x45   : > { %603 = vst [vmem:[%s5829_s27 + $0x340] sm:$0xff] %v602_v40  ;;  %v608_v43 = vld [vmem:[%s5824_s26 + $0x598] sm:$0xff]  ;;  %605 = vst [vmem:[%s5829_s27 + $0x348] sm:$0xff] %v604_v41 }
  0x46   : > { %607 = vst [vmem:[%s5829_s27 + $0x350] sm:$0xff] %v606_v42  ;;  %609 = vst [vmem:[%s5829_s27 + $0x358] sm:$0xff] %v608_v43 }
  0x47 PF: > { %p4361_p6 = scmp.ge.s32.totalorder %s5759_s16, 1  ;;  %p614_p7 = scmp.lt.s32.totalorder %s5759_s16, 3 }
  0x49   : > { %p615_p8 = pnand %p4361_p6, %p614_p7 }
  0x4b   : > { %618 = sbr.rel (%p615_p8) target bundleno = 575 (0x23f), region = 66 }
  0x50   : > { %v4396_v44 = vld [vmem:[%s7582_s1 + $0x4] sm:$0xf]  ;;  %vm829_vm0 = vcmask 1043456   ;;  %s621_s30 = sand.u32 1, %s5743_s12   ;;  %v695_v45 = vld [vmem:[%s7582_s1] sm:$0xf] }
  0x51   : > { %5676 = vmatprep.subr.msk.mxu1 %vm829_vm0, %v4396_v44  ;;  %5226 = vmatprep.subr.msk.mxu0 %vm829_vm0, %v4396_v44  ;;  %s5680_s4 = smul.u32 864, %s621_s30  ;;  %v4495_v46 = vld [vmem:[%s7582_s1 + $0x8] sm:$0xf]  ;;  %vm732_vm1 = vcmask 31744   ;;  %v6087_v53 = vld [vmem:[%s7582_s1 + $0xc] sm:$0xf] }
  0x52   : > { %5677 = vmatpush3.msk.msra.mxu1 %vm829_vm0, %v4396_v44  ;;  %5227 = vmatpush3.msk.msra.mxu0 %vm829_vm0, %v4396_v44  ;;  %v6092_v54 = vld [vmem:[%s7582_s1 + $0x10] sm:$0xf]  ;;  %v6251_v23 = vld [vmem:[%s7582_s1 + $0x14] sm:$0xf]  ;;  %v6256_v24 = vld [vmem:[%s7582_s1 + $0x18] sm:$0xf] }
  0x53   : > { %5276 = vmatprep.subr.msk.mxu1 %vm829_vm0, %v695_v45  ;;  %5326 = vmatprep.subr.msk.mxu0 %vm829_vm0, %v4495_v46  ;;  %s6062_s9 = scalar_lea.vmem [#allocation2], %s5680_s4  ;;  %p650_p9 = scmp.lt.s32.totalorder %s5751_s14, 1 }
  0x54   : > { %v4364_v47 = vld [vmem:[%s6062_s9 + $0x120] sm:$0xff]  ;;  %v4365_v49 = vld [vmem:[%s6062_s9 + $0x128] sm:$0xff]  ;;  %v6076_v51 = vld [vmem:[%s6062_s9 + $0x130] sm:$0xff] }
  0x55   : > { %v6066_v48 = vld [vmem:[%s6062_s9 + $0x1a0] sm:$0xff]  ;;  %5228 = vmatprep.mubr.msk.f32.mxu0 %vm732_vm1, %v4364_v47  ;;  %v6073_v50 = vld [vmem:[%s6062_s9 + $0x1a8] sm:$0xff]  ;;  %v6079_v52 = vld [vmem:[%s6062_s9 + $0x1b0] sm:$0xff]  ;;  %s7820_s14 = smov (!%p650_p9, %s5751_s14), 1 }
  0x56   : > { %5252 = vmatprep.mubr.msk.f32.mxu1 %vm732_vm1, %v6066_v48  ;;  %5229 = vmatmul.mubr.msk.f32.vlgmr.msra.gmra.mxu0 %vm732_vm1, %v4365_v49  ;;  %v6097_v55 = vld [vmem:[%s6062_s9 + $0x138] sm:$0xff]  ;;  %v6107_v57 = vld [vmem:[%s6062_s9 + $0x140] sm:$0xff]  ;;  %v6125_v59 = vld [vmem:[%s6062_s9 + $0x148] sm:$0xff]  ;;  %s4928_s30 = sshll.u32 %s7820_s14, 8 }
  0x57   : > { %5253 = vmatmul.mubr.msk.f32.vlgmr.msra.gmra.mxu1 %vm732_vm1, %v6073_v50  ;;  %5327 = vmatpush3.msk.msra.mxu0 %vm829_vm0, %v4495_v46  ;;  %v6100_v56 = vld [vmem:[%s6062_s9 + $0x1b8] sm:$0xff]  ;;  %v6110_v58 = vld [vmem:[%s6062_s9 + $0x1c0] sm:$0xff]  ;;  %v6128_v60 = vld [vmem:[%s6062_s9 + $0x1c8] sm:$0xff]  ;;  %s7392_s5 = scalar_lea.vmem %s7584_s3, %s4928_s30 }
  0x58   : > { %5277 = vmatpush3.msk.msra.mxu1 %vm829_vm0, %v695_v45  ;;  %5231 = vmatprep.mubr.msk.f32.mxu0 %vm732_vm1, %v6076_v51  ;;  %v6131_v61 = vld [vmem:[%s6062_s9 + $0x150] sm:$0xff]  ;;  %v6145_v63 = vld [vmem:[%s6062_s9 + $0x158] sm:$0xff]  ;;  %v6151_v1 = vld [vmem:[%s6062_s9 + $0x160] sm:$0xff] }
  0x59   : > { %5255 = vmatprep.mubr.msk.f32.mxu1 %vm732_vm1, %v6079_v52  ;;  %5376 = vmatprep.subr.msk.mxu1 %vm829_vm0, %v6087_v53  ;;  %v6134_v62 = vld [vmem:[%s6062_s9 + $0x1d0] sm:$0xff]  ;;  %v6148_v0 = vld [vmem:[%s6062_s9 + $0x1d8] sm:$0xff]  ;;  %v6154_v2 = vld [vmem:[%s6062_s9 + $0x1e0] sm:$0xff] }
  0x5a   : > { %5426 = vmatprep.subr.msk.mxu0 %vm829_vm0, %v6092_v54  ;;  %5232 = vmatmul.mubr.msk.f32.gmra.mxu0 %vm732_vm1, %v6097_v55  ;;  %v6165_v3 = vld [vmem:[%s6062_s9 + $0x168] sm:$0xff]  ;;  %v6171_v5 = vld [vmem:[%s6062_s9 + $0x170] sm:$0xff]  ;;  %v6185_v7 = vld [vmem:[%s6062_s9 + $0x178] sm:$0xff] }
  0x5b   : > { %5256 = vmatmul.mubr.msk.f32.gmra.mxu1 %vm732_vm1, %v6100_v56  ;;  %5234 = vmatprep.mubr.msk.f32.mxu0 %vm732_vm1, %v6107_v57  ;;  %v6168_v4 = vld [vmem:[%s6062_s9 + $0x1e8] sm:$0xff]  ;;  %v6174_v6 = vld [vmem:[%s6062_s9 + $0x1f0] sm:$0xff]  ;;  %v6188_v8 = vld [vmem:[%s6062_s9 + $0x1f8] sm:$0xff] }
  0x5c   : > { %5258 = vmatprep.mubr.msk.f32.mxu1 %vm732_vm1, %v6110_v58  ;;  %v6191_v9 = vld [vmem:[%s6062_s9 + $0x180] sm:$0xff]  ;;  %v6205_v11 = vld [vmem:[%s6062_s9 + $0x188] sm:$0xff]  ;;  %v6211_v13 = vld [vmem:[%s6062_s9 + $0x190] sm:$0xff] }
  0x5d   : > { %v6194_v10 = vld [vmem:[%s6062_s9 + $0x200] sm:$0xff]  ;;  %v6208_v12 = vld [vmem:[%s6062_s9 + $0x208] sm:$0xff]  ;;  %v6214_v14 = vld [vmem:[%s6062_s9 + $0x210] sm:$0xff] }
  0x5e   : > { %5235 = vmatmul.mubr.msk.f32.gmra.mxu0 %vm732_vm1, %v6125_v59  ;;  %v6225_v15 = vld [vmem:[%s6062_s9 + $0x198] sm:$0xff]  ;;  %v663_v17 = vld [vmem:[%s6062_s9] sm:$0xff]  ;;  %v664_v19 = vld [vmem:[%s6062_s9 + $0x8] sm:$0xff] }
  0x5f   : > { %5259 = vmatmul.mubr.msk.f32.gmra.mxu1 %vm732_vm1, %v6128_v60  ;;  %5237 = vmatprep.mubr.msk.f32.mxu0 %vm732_vm1, %v6131_v61  ;;  %v6228_v16 = vld [vmem:[%s6062_s9 + $0x218] sm:$0xff]  ;;  %v4463_v18 = vld [vmem:[%s6062_s9 + $0x240] sm:$0xff]  ;;  %v4464_v20 = vld [vmem:[%s6062_s9 + $0x248] sm:$0xff] }
  0x60   : > { %5261 = vmatprep.mubr.msk.f32.mxu1 %vm732_vm1, %v6134_v62  ;;  %7645 = vst [vmem:[#allocation3_spill] sm:$0xff] %v6228_v16  ;;  %v6241_v21 = vld [vmem:[%s6062_s9 + $0x10] sm:$0xff]  ;;  %v6263_v25 = vld [vmem:[%s6062_s9 + $0x18] sm:$0xff]  ;;  %v6273_v27 = vld [vmem:[%s6062_s9 + $0x20] sm:$0xff] }
  0x61   : > { %v6244_v22 = vld [vmem:[%s6062_s9 + $0x250] sm:$0xff]  ;;  %v6266_v26 = vld [vmem:[%s6062_s9 + $0x258] sm:$0xff]  ;;  %v6276_v28 = vld [vmem:[%s6062_s9 + $0x260] sm:$0xff] }
  0x62   : > { %5238 = vmatmul.mubr.msk.f32.gmra.mxu0 %vm732_vm1, %v6145_v63  ;;  %7646 = vst [vmem:[#allocation4_spill] sm:$0xff] %v6244_v22  ;;  %7647 = vst [vmem:[#allocation5_spill] sm:$0xff] %v6266_v26  ;;  %v6291_v29 = vld [vmem:[%s6062_s9 + $0x28] sm:$0xff]  ;;  %v6297_v31 = vld [vmem:[%s6062_s9 + $0x30] sm:$0xff] }
  0x63   : > { %5262 = vmatmul.mubr.msk.f32.gmra.mxu1 %vm732_vm1, %v6148_v0  ;;  %5240 = vmatprep.mubr.msk.f32.mxu0 %vm732_vm1, %v6151_v1  ;;  %7648 = vst [vmem:[#allocation6_spill] sm:$0xff] %v6276_v28  ;;  %v6294_v30 = vld [vmem:[%s6062_s9 + $0x268] sm:$0xff]  ;;  %v6300_v32 = vld [vmem:[%s6062_s9 + $0x270] sm:$0xff]  ;;  %v6311_v33 = vld [vmem:[%s6062_s9 + $0x38] sm:$0xff] }
  0x64   : > { %5264 = vmatprep.mubr.msk.f32.mxu1 %vm732_vm1, %v6154_v2  ;;  %7649 = vst [vmem:[#allocation7_spill] sm:$0xff] %v6294_v30  ;;  %7650 = vst [vmem:[#allocation8_spill] sm:$0xff] %v6300_v32  ;;  %v6314_v34 = vld [vmem:[%s6062_s9 + $0x278] sm:$0xff]  ;;  %v6317_v35 = vld [vmem:[%s6062_s9 + $0x40] sm:$0xff] }
  0x65   : > { %7651 = vst [vmem:[#allocation9_spill] sm:$0xff] %v6314_v34  ;;  %v6320_v36 = vld [vmem:[%s6062_s9 + $0x280] sm:$0xff]  ;;  %v6331_v37 = vld [vmem:[%s6062_s9 + $0x48] sm:$0xff]  ;;  %v6337_v39 = vld [vmem:[%s6062_s9 + $0x50] sm:$0xff] }
  0x66   : > { %5241 = vmatmul.mubr.msk.f32.gmra.mxu0 %vm732_vm1, %v6165_v3  ;;  %7652 = vst [vmem:[#allocation10_spill] sm:$0xff] %v6320_v36  ;;  %v6334_v38 = vld [vmem:[%s6062_s9 + $0x288] sm:$0xff]  ;;  %v6340_v40 = vld [vmem:[%s6062_s9 + $0x290] sm:$0xff]  ;;  %v6351_v41 = vld [vmem:[%s6062_s9 + $0x58] sm:$0xff] }
  0x67   : > { %5265 = vmatmul.mubr.msk.f32.gmra.mxu1 %vm732_vm1, %v6168_v4  ;;  %5243 = vmatprep.mubr.msk.f32.mxu0 %vm732_vm1, %v6171_v5  ;;  %7653 = vst [vmem:[#allocation11_spill] sm:$0xff] %v6334_v38  ;;  %7654 = vst [vmem:[#allocation12_spill] sm:$0xff] %v6340_v40  ;;  %v6354_v42 = vld [vmem:[%s6062_s9 + $0x298] sm:$0xff]  ;;  %v6357_v43 = vld [vmem:[%s6062_s9 + $0x60] sm:$0xff] }
  0x68   : > { %5267 = vmatprep.mubr.msk.f32.mxu1 %vm732_vm1, %v6174_v6  ;;  %7655 = vst [vmem:[#allocation13_spill] sm:$0xff] %v6354_v42  ;;  %v6360_v44 = vld [vmem:[%s6062_s9 + $0x2a0] sm:$0xff]  ;;  %v6371_v45 = vld [vmem:[%s6062_s9 + $0x68] sm:$0xff]  ;;  %v6377_v47 = vld [vmem:[%s6062_s9 + $0x70] sm:$0xff] }
  0x69   : > { %7656 = vst [vmem:[#allocation14_spill] sm:$0xff] %v6360_v44  ;;  %v6374_v46 = vld [vmem:[%s6062_s9 + $0x2a8] sm:$0xff]  ;;  %v6380_v49 = vld [vmem:[%s6062_s9 + $0x2b0] sm:$0xff] }
  0x6a   : > { %5244 = vmatmul.mubr.msk.f32.gmra.mxu0 %vm732_vm1, %v6185_v7  ;;  %7657 = vst [vmem:[#allocation15_spill] sm:$0xff] %v6374_v46  ;;  %7658 = vst [vmem:[#allocation16_spill] sm:$0xff] %v6380_v49 }
  0x6b   : > { %5268 = vmatmul.mubr.msk.f32.gmra.mxu1 %vm732_vm1, %v6188_v8  ;;  %5246 = vmatprep.mubr.msk.f32.mxu0 %vm732_vm1, %v6191_v9 }
  0x6c   : > { %5270 = vmatprep.mubr.msk.f32.mxu1 %vm732_vm1, %v6194_v10 }
  0x6e   : > { %5247 = vmatmul.mubr.msk.f32.gmra.mxu0 %vm732_vm1, %v6205_v11 }
  0x6f   : > { %5271 = vmatmul.mubr.msk.f32.gmra.mxu1 %vm732_vm1, %v6208_v12  ;;  %5249 = vmatprep.mubr.msk.f32.mxu0 %vm732_vm1, %v6211_v13 }
  0x70   : > { %5273 = vmatprep.mubr.msk.f32.mxu1 %vm732_vm1, %v6214_v14 }
  0x72   : > { %5250 = vmatmul.mubr.msk.f32.gmra.mxu0 %vm732_vm1, %v6225_v15 }
  0x73   : > { %5274 = vmatmul.mubr.msk.f32.gmra.mxu1 %vm732_vm1, %v6228_v16  ;;  %5328 = vmatprep.mubr.msk.f32.mxu0 %vm732_vm1, %v4463_v18  ;;  %v6400_v18 = vld [vmem:[%s6062_s9 + $0x2c0] sm:$0xff]  ;;  %v6540_v16 = vld [vmem:[%s6062_s9 + $0x330] sm:$0xff] }
  0x74   : > { %5278 = vmatprep.mubr.msk.f32.mxu1 %vm732_vm1, %v663_v17  ;;  %v6397_v17 = vld [vmem:[%s6062_s9 + $0x80] sm:$0xff]  ;;  %7660 = vst [vmem:[#allocation18_spill] sm:$0xff] %v6400_v18  ;;  %7674 = vst [vmem:[#allocation32_spill] sm:$0xff] %v6540_v16 }
  0x76   : > { %5329 = vmatmul.mubr.msk.f32.vlgmr.msra.gmra.mxu0 %vm732_vm1, %v4464_v20  ;;  %v6414_v20 = vld [vmem:[%s6062_s9 + $0x2c8] sm:$0xff] }
  0x77   : > { %5279 = vmatmul.mubr.msk.f32.vlgmr.msra.gmra.mxu1 %vm732_vm1, %v664_v19  ;;  %5427 = vmatpush3.msk.msra.mxu0 %vm829_vm0, %v6092_v54  ;;  %v6394_v54 = vld [vmem:[%s6062_s9 + $0x2b8] sm:$0xff]  ;;  %v6411_v19 = vld [vmem:[%s6062_s9 + $0x88] sm:$0xff]  ;;  %7661 = vst [vmem:[#allocation19_spill] sm:$0xff] %v6414_v20 }
  0x78   : > { %5377 = vmatpush3.msk.msra.mxu1 %vm829_vm0, %v6087_v53  ;;  %5281 = vmatprep.mubr.msk.f32.mxu1 %vm732_vm1, %v6241_v21  ;;  %v6391_v53 = vld [vmem:[%s6062_s9 + $0x78] sm:$0xff]  ;;  %7659 = vst [vmem:[#allocation17_spill] sm:$0xff] %v6394_v54 }
  0x79   : > { %5331 = vmatprep.mubr.msk.f32.mxu0 %vm732_vm1, %v6244_v22  ;;  %5476 = vmatprep.subr.msk.mxu1 %vm829_vm0, %v6251_v23  ;;  %v6537_v22 = vld [vmem:[%s6062_s9 + $0xf0] sm:$0xff] }
  0x7a   : > { %5526 = vmatprep.subr.msk.mxu0 %vm829_vm0, %v6256_v24  ;;  %5332 = vmatmul.mubr.msk.f32.gmra.mxu0 %vm732_vm1, %v6266_v26  ;;  %v6520_v26 = vld [vmem:[%s6062_s9 + $0x320] sm:$0xff] }
  0x7b   : > { %5282 = vmatmul.mubr.msk.f32.gmra.mxu1 %vm732_vm1, %v6263_v25  ;;  %5334 = vmatprep.mubr.msk.f32.mxu0 %vm732_vm1, %v6276_v28  ;;  %v6517_v28 = vld [vmem:[%s6062_s9 + $0xe0] sm:$0xff]  ;;  %7672 = vst [vmem:[#allocation30_spill] sm:$0xff] %v6520_v26 }
  0x7c   : > { %5284 = vmatprep.mubr.msk.f32.mxu1 %vm732_vm1, %v6273_v27 }
  0x7e   : > { %5335 = vmatmul.mubr.msk.f32.gmra.mxu0 %vm732_vm1, %v6294_v30  ;;  %v6500_v30 = vld [vmem:[%s6062_s9 + $0x310] sm:$0xff] }
  0x7f   : > { %5285 = vmatmul.mubr.msk.f32.gmra.mxu1 %vm732_vm1, %v6291_v29  ;;  %5337 = vmatprep.mubr.msk.f32.mxu0 %vm732_vm1, %v6300_v32  ;;  %v6497_v32 = vld [vmem:[%s6062_s9 + $0xd0] sm:$0xff]  ;;  %7670 = vst [vmem:[#allocation28_spill] sm:$0xff] %v6500_v30 }
  0x80   : > { %5287 = vmatprep.mubr.msk.f32.mxu1 %vm732_vm1, %v6297_v31 }
  0x82   : > { %5338 = vmatmul.mubr.msk.f32.gmra.mxu0 %vm732_vm1, %v6314_v34  ;;  %v6480_v34 = vld [vmem:[%s6062_s9 + $0x300] sm:$0xff] }
  0x83   : > { %5288 = vmatmul.mubr.msk.f32.gmra.mxu1 %vm732_vm1, %v6311_v33  ;;  %5340 = vmatprep.mubr.msk.f32.mxu0 %vm732_vm1, %v6320_v36  ;;  %v6477_v36 = vld [vmem:[%s6062_s9 + $0xc0] sm:$0xff]  ;;  %7668 = vst [vmem:[#allocation26_spill] sm:$0xff] %v6480_v34 }
  0x84   : > { %5290 = vmatprep.mubr.msk.f32.mxu1 %vm732_vm1, %v6317_v35 }
  0x86   : > { %5341 = vmatmul.mubr.msk.f32.gmra.mxu0 %vm732_vm1, %v6334_v38  ;;  %v6460_v38 = vld [vmem:[%s6062_s9 + $0x2f0] sm:$0xff] }
  0x87   : > { %5291 = vmatmul.mubr.msk.f32.gmra.mxu1 %vm732_vm1, %v6331_v37  ;;  %5343 = vmatprep.mubr.msk.f32.mxu0 %vm732_vm1, %v6340_v40  ;;  %v6457_v40 = vld [vmem:[%s6062_s9 + $0xb0] sm:$0xff]  ;;  %7666 = vst [vmem:[#allocation24_spill] sm:$0xff] %v6460_v38 }
  0x88   : > { %5293 = vmatprep.mubr.msk.f32.mxu1 %vm732_vm1, %v6337_v39 }
  0x8a   : > { %5344 = vmatmul.mubr.msk.f32.gmra.mxu0 %vm732_vm1, %v6354_v42  ;;  %v6440_v42 = vld [vmem:[%s6062_s9 + $0x2e0] sm:$0xff] }
  0x8b   : > { %5294 = vmatmul.mubr.msk.f32.gmra.mxu1 %vm732_vm1, %v6351_v41  ;;  %5346 = vmatprep.mubr.msk.f32.mxu0 %vm732_vm1, %v6360_v44  ;;  %v6437_v44 = vld [vmem:[%s6062_s9 + $0xa0] sm:$0xff]  ;;  %7664 = vst [vmem:[#allocation22_spill] sm:$0xff] %v6440_v42 }
  0x8c   : > { %5296 = vmatprep.mubr.msk.f32.mxu1 %vm732_vm1, %v6357_v43 }
  0x8e   : > { %5347 = vmatmul.mubr.msk.f32.gmra.mxu0 %vm732_vm1, %v6374_v46  ;;  %v6420_v46 = vld [vmem:[%s6062_s9 + $0x2d0] sm:$0xff] }
  0x8f   : > { %5297 = vmatmul.mubr.msk.f32.gmra.mxu1 %vm732_vm1, %v6371_v45  ;;  %5349 = vmatprep.mubr.msk.f32.mxu0 %vm732_vm1, %v6380_v49  ;;  %v6417_v49 = vld [vmem:[%s6062_s9 + $0x90] sm:$0xff]  ;;  %7662 = vst [vmem:[#allocation20_spill] sm:$0xff] %v6420_v46 }
  0x90   : > { %5299 = vmatprep.mubr.msk.f32.mxu1 %vm732_vm1, %v6377_v47 }
  0x92   : > { %5350 = vmatmul.mubr.msk.f32.gmra.mxu0 %vm732_vm1, %v6394_v54  ;;  %v6434_v54 = vld [vmem:[%s6062_s9 + $0x2d8] sm:$0xff] }
  0x93   : > { %5300 = vmatmul.mubr.msk.f32.gmra.mxu1 %vm732_vm1, %v6391_v53  ;;  %5352 = vmatprep.mubr.msk.f32.mxu0 %vm732_vm1, %v6400_v18  ;;  %v6431_v18 = vld [vmem:[%s6062_s9 + $0x98] sm:$0xff]  ;;  %7663 = vst [vmem:[#allocation21_spill] sm:$0xff] %v6434_v54 }
  0x94   : > { %5302 = vmatprep.mubr.msk.f32.mxu1 %vm732_vm1, %v6397_v17 }
  0x96   : > { %5353 = vmatmul.mubr.msk.f32.gmra.mxu0 %vm732_vm1, %v6414_v20  ;;  %v6454_v20 = vld [vmem:[%s6062_s9 + $0x2e8] sm:$0xff] }
  0x97   : > { %5303 = vmatmul.mubr.msk.f32.gmra.mxu1 %vm732_vm1, %v6411_v19  ;;  %5355 = vmatprep.mubr.msk.f32.mxu0 %vm732_vm1, %v6420_v46  ;;  %v6451_v46 = vld [vmem:[%s6062_s9 + $0xa8] sm:$0xff]  ;;  %7665 = vst [vmem:[#allocation23_spill] sm:$0xff] %v6454_v20 }
  0x98   : > { %5305 = vmatprep.mubr.msk.f32.mxu1 %vm732_vm1, %v6417_v49 }
  0x9a   : > { %5356 = vmatmul.mubr.msk.f32.gmra.mxu0 %vm732_vm1, %v6434_v54  ;;  %v6474_v54 = vld [vmem:[%s6062_s9 + $0x2f8] sm:$0xff] }
  0x9b   : > { %5306 = vmatmul.mubr.msk.f32.gmra.mxu1 %vm732_vm1, %v6431_v18  ;;  %5358 = vmatprep.mubr.msk.f32.mxu0 %vm732_vm1, %v6440_v42  ;;  %v6471_v42 = vld [vmem:[%s6062_s9 + $0xb8] sm:$0xff]  ;;  %7667 = vst [vmem:[#allocation25_spill] sm:$0xff] %v6474_v54 }
  0x9c   : > { %5308 = vmatprep.mubr.msk.f32.mxu1 %vm732_vm1, %v6437_v44 }
  0x9e   : > { %5359 = vmatmul.mubr.msk.f32.gmra.mxu0 %vm732_vm1, %v6454_v20  ;;  %v6494_v20 = vld [vmem:[%s6062_s9 + $0x308] sm:$0xff] }
  0x9f   : > { %5309 = vmatmul.mubr.msk.f32.gmra.mxu1 %vm732_vm1, %v6451_v46  ;;  %5361 = vmatprep.mubr.msk.f32.mxu0 %vm732_vm1, %v6460_v38  ;;  %v6491_v38 = vld [vmem:[%s6062_s9 + $0xc8] sm:$0xff]  ;;  %7669 = vst [vmem:[#allocation27_spill] sm:$0xff] %v6494_v20 }
  0xa0   : > { %5311 = vmatprep.mubr.msk.f32.mxu1 %vm732_vm1, %v6457_v40 }
  0xa2   : > { %5362 = vmatmul.mubr.msk.f32.gmra.mxu0 %vm732_vm1, %v6474_v54  ;;  %v6514_v54 = vld [vmem:[%s6062_s9 + $0x318] sm:$0xff] }
  0xa3   : > { %5312 = vmatmul.mubr.msk.f32.gmra.mxu1 %vm732_vm1, %v6471_v42  ;;  %5364 = vmatprep.mubr.msk.f32.mxu0 %vm732_vm1, %v6480_v34  ;;  %v6511_v34 = vld [vmem:[%s6062_s9 + $0xd8] sm:$0xff]  ;;  %7671 = vst [vmem:[#allocation29_spill] sm:$0xff] %v6514_v54 }
  0xa4   : > { %5314 = vmatprep.mubr.msk.f32.mxu1 %vm732_vm1, %v6477_v36 }
  0xa6   : > { %5365 = vmatmul.mubr.msk.f32.gmra.mxu0 %vm732_vm1, %v6494_v20  ;;  %v6534_v20 = vld [vmem:[%s6062_s9 + $0x328] sm:$0xff] }
  0xa7   : > { %5315 = vmatmul.mubr.msk.f32.gmra.mxu1 %vm732_vm1, %v6491_v38  ;;  %5367 = vmatprep.mubr.msk.f32.mxu0 %vm732_vm1, %v6500_v30  ;;  %v6531_v30 = vld [vmem:[%s6062_s9 + $0xe8] sm:$0xff]  ;;  %7673 = vst [vmem:[#allocation31_spill] sm:$0xff] %v6534_v20 }
  0xa8   : > { %5317 = vmatprep.mubr.msk.f32.mxu1 %vm732_vm1, %v6497_v32 }
  0xaa   : > { %5368 = vmatmul.mubr.msk.f32.gmra.mxu0 %vm732_vm1, %v6514_v54  ;;  %v6554_v54 = vld [vmem:[%s6062_s9 + $0x338] sm:$0xff] }
  0xab   : > { %5318 = vmatmul.mubr.msk.f32.gmra.mxu1 %vm732_vm1, %v6511_v34  ;;  %5370 = vmatprep.mubr.msk.f32.mxu0 %vm732_vm1, %v6520_v26  ;;  %v6551_v26 = vld [vmem:[%s6062_s9 + $0xf8] sm:$0xff]  ;;  %7675 = vst [vmem:[#allocation33_spill] sm:$0xff] %v6554_v54 }
  0xac   : > { %5320 = vmatprep.mubr.msk.f32.mxu1 %vm732_vm1, %v6517_v28 }
  0xae   : > { %5371 = vmatmul.mubr.msk.f32.gmra.mxu0 %vm732_vm1, %v6534_v20 }
  0xaf   : > { %5321 = vmatmul.mubr.msk.f32.gmra.mxu1 %vm732_vm1, %v6531_v30  ;;  %5373 = vmatprep.mubr.msk.f32.mxu0 %vm732_vm1, %v6540_v16  ;;  %v6571_v16 = vld [vmem:[%s7582_s1 + $0x1c] sm:$0xf] }
  0xb0   : > { %5323 = vmatprep.mubr.msk.f32.mxu1 %vm732_vm1, %v6537_v22 }
  0xb2   : > { %5374 = vmatmul.mubr.msk.f32.gmra.mxu0 %vm732_vm1, %v6554_v54  ;;  %v6576_v54 = vld [vmem:[%s7582_s1 + $0x20] sm:$0xf] }
  0xb3   : > { %5324 = vmatmul.mubr.msk.f32.gmra.mxu1 %vm732_vm1, %v6551_v26  ;;  %5428 = vmatprep.mubr.msk.f32.mxu0 %vm732_vm1, %v6076_v51  ;;  %v7677_v51 = vld [vmem:[#allocation3_spill] sm:$0xff] }
  0xb4   : > { %5378 = vmatprep.mubr.msk.f32.mxu1 %vm732_vm1, %v6241_v21 }
  0xb6   : > { %5429 = vmatmul.mubr.msk.f32.vlgmr.msra.gmra.mxu0 %vm732_vm1, %v6097_v55  ;;  %v6712_v55 = vld [vmem:[%s6062_s9 + $0x228] sm:$0xff] }
  0xb7   : > { %5379 = vmatmul.mubr.msk.f32.vlgmr.msra.gmra.mxu1 %vm732_vm1, %v6263_v25  ;;  %5527 = vmatpush3.msk.msra.mxu0 %vm829_vm0, %v6256_v24  ;;  %7678 = vst [vmem:[#allocation3_spill] sm:$0xff] %v6712_v55  ;;  %v7696_v24 = vld [vmem:[#allocation21_spill] sm:$0xff]  ;;  %v7697_v25 = vld [vmem:[#allocation22_spill] sm:$0xff] }
  0xb8   : > { %5477 = vmatpush3.msk.msra.mxu1 %vm829_vm0, %v6251_v23  ;;  %5381 = vmatprep.mubr.msk.f32.mxu1 %vm732_vm1, %v6273_v27 }
  0xb9   : > { %5431 = vmatprep.mubr.msk.f32.mxu0 %vm732_vm1, %v6107_v57  ;;  %5576 = vmatprep.subr.msk.mxu1 %vm829_vm0, %v6571_v16 }
  0xba   : > { %5626 = vmatprep.subr.msk.mxu0 %vm829_vm0, %v6576_v54  ;;  %5432 = vmatmul.mubr.msk.f32.gmra.mxu0 %vm732_vm1, %v6125_v59 }
  0xbb   : > { %5382 = vmatmul.mubr.msk.f32.gmra.mxu1 %vm732_vm1, %v6291_v29  ;;  %5434 = vmatprep.mubr.msk.f32.mxu0 %vm732_vm1, %v6131_v61 }
  0xbc   : > { %5384 = vmatprep.mubr.msk.f32.mxu1 %vm732_vm1, %v6297_v31 }
  0xbe   : > { %5435 = vmatmul.mubr.msk.f32.gmra.mxu0 %vm732_vm1, %v6145_v63 }
  0xbf   : > { %5385 = vmatmul.mubr.msk.f32.gmra.mxu1 %vm732_vm1, %v6311_v33  ;;  %5437 = vmatprep.mubr.msk.f32.mxu0 %vm732_vm1, %v6151_v1 }
  0xc0   : > { %5387 = vmatprep.mubr.msk.f32.mxu1 %vm732_vm1, %v6317_v35 }
  0xc2   : > { %5438 = vmatmul.mubr.msk.f32.gmra.mxu0 %vm732_vm1, %v6165_v3 }
  0xc3   : > { %5388 = vmatmul.mubr.msk.f32.gmra.mxu1 %vm732_vm1, %v6331_v37  ;;  %5440 = vmatprep.mubr.msk.f32.mxu0 %vm732_vm1, %v6171_v5 }
  0xc4   : > { %5390 = vmatprep.mubr.msk.f32.mxu1 %vm732_vm1, %v6337_v39 }
  0xc6   : > { %5441 = vmatmul.mubr.msk.f32.gmra.mxu0 %vm732_vm1, %v6185_v7 }
  0xc7   : > { %5391 = vmatmul.mubr.msk.f32.gmra.mxu1 %vm732_vm1, %v6351_v41  ;;  %5443 = vmatprep.mubr.msk.f32.mxu0 %vm732_vm1, %v6191_v9  ;;  %v7688_v9 = vld [vmem:[#allocation13_spill] sm:$0xff] }
  0xc8   : > { %5393 = vmatprep.mubr.msk.f32.mxu1 %vm732_vm1, %v6357_v43 }
  0xca   : > { %5444 = vmatmul.mubr.msk.f32.gmra.mxu0 %vm732_vm1, %v6205_v11  ;;  %v7690_v11 = vld [vmem:[#allocation15_spill] sm:$0xff] }
  0xcb   : > { %5394 = vmatmul.mubr.msk.f32.gmra.mxu1 %vm732_vm1, %v6371_v45  ;;  %5446 = vmatprep.mubr.msk.f32.mxu0 %vm732_vm1, %v6211_v13  ;;  %v7692_v13 = vld [vmem:[#allocation17_spill] sm:$0xff] }
  0xcc   : > { %5396 = vmatprep.mubr.msk.f32.mxu1 %vm732_vm1, %v6377_v47 }
  0xce   : > { %5447 = vmatmul.mubr.msk.f32.gmra.mxu0 %vm732_vm1, %v6225_v15  ;;  %v7694_v15 = vld [vmem:[#allocation19_spill] sm:$0xff] }
  0xcf   : > { %5397 = vmatmul.mubr.msk.f32.gmra.mxu1 %vm732_vm1, %v6391_v53  ;;  %5449 = vmatprep.mubr.msk.f32.mxu0 %vm732_vm1, %v6066_v48  ;;  %v6695_v48 = vld [vmem:[%s6062_s9 + $0x100] sm:$0xff] }
  0xd0   : > { %5399 = vmatprep.mubr.msk.f32.mxu1 %vm732_vm1, %v6397_v17 }
  0xd2   : > { %5450 = vmatmul.mubr.msk.f32.gmra.mxu0 %vm732_vm1, %v6073_v50  ;;  %v6698_v50 = vld [vmem:[%s6062_s9 + $0x220] sm:$0xff] }
  0xd3   : > { %5400 = vmatmul.mubr.msk.f32.gmra.mxu1 %vm732_vm1, %v6411_v19  ;;  %5452 = vmatprep.mubr.msk.f32.mxu0 %vm732_vm1, %v6079_v52  ;;  %7676 = vst [vmem:[#allocation34_spill] sm:$0xff] %v6698_v50  ;;  %v6709_v52 = vld [vmem:[%s6062_s9 + $0x108] sm:$0xff] }
  0xd4   : > { %5402 = vmatprep.mubr.msk.f32.mxu1 %vm732_vm1, %v6417_v49 }
  0xd6   : > { %5453 = vmatmul.mubr.msk.f32.gmra.mxu0 %vm732_vm1, %v6100_v56  ;;  %v7679_v56 = vld [vmem:[#allocation4_spill] sm:$0xff] }
  0xd7   : > { %5403 = vmatmul.mubr.msk.f32.gmra.mxu1 %vm732_vm1, %v6431_v18  ;;  %5455 = vmatprep.mubr.msk.f32.mxu0 %vm732_vm1, %v6110_v58  ;;  %v7680_v58 = vld [vmem:[#allocation5_spill] sm:$0xff] }
  0xd8   : > { %5405 = vmatprep.mubr.msk.f32.mxu1 %vm732_vm1, %v6437_v44 }
  0xda   : > { %5456 = vmatmul.mubr.msk.f32.gmra.mxu0 %vm732_vm1, %v6128_v60  ;;  %v7681_v60 = vld [vmem:[#allocation6_spill] sm:$0xff] }
  0xdb   : > { %5406 = vmatmul.mubr.msk.f32.gmra.mxu1 %vm732_vm1, %v6451_v46  ;;  %5458 = vmatprep.mubr.msk.f32.mxu0 %vm732_vm1, %v6134_v62  ;;  %v7682_v62 = vld [vmem:[#allocation7_spill] sm:$0xff] }
  0xdc   : > { %5408 = vmatprep.mubr.msk.f32.mxu1 %vm732_vm1, %v6457_v40 }
  0xde   : > { %5459 = vmatmul.mubr.msk.f32.gmra.mxu0 %vm732_vm1, %v6148_v0  ;;  %v7683_v0 = vld [vmem:[#allocation8_spill] sm:$0xff] }
  0xdf   : > { %5409 = vmatmul.mubr.msk.f32.gmra.mxu1 %vm732_vm1, %v6471_v42  ;;  %5461 = vmatprep.mubr.msk.f32.mxu0 %vm732_vm1, %v6154_v2  ;;  %v7684_v2 = vld [vmem:[#allocation9_spill] sm:$0xff] }
  0xe0   : > { %5411 = vmatprep.mubr.msk.f32.mxu1 %vm732_vm1, %v6477_v36 }
  0xe2   : > { %5462 = vmatmul.mubr.msk.f32.gmra.mxu0 %vm732_vm1, %v6168_v4  ;;  %v7685_v4 = vld [vmem:[#allocation10_spill] sm:$0xff] }
  0xe3   : > { %5412 = vmatmul.mubr.msk.f32.gmra.mxu1 %vm732_vm1, %v6491_v38  ;;  %5464 = vmatprep.mubr.msk.f32.mxu0 %vm732_vm1, %v6174_v6  ;;  %v7686_v6 = vld [vmem:[#allocation11_spill] sm:$0xff] }
  0xe4   : > { %5414 = vmatprep.mubr.msk.f32.mxu1 %vm732_vm1, %v6497_v32 }
  0xe6   : > { %5465 = vmatmul.mubr.msk.f32.gmra.mxu0 %vm732_vm1, %v6188_v8  ;;  %v7687_v8 = vld [vmem:[#allocation12_spill] sm:$0xff] }
  0xe7   : > { %5415 = vmatmul.mubr.msk.f32.gmra.mxu1 %vm732_vm1, %v6511_v34  ;;  %5467 = vmatprep.mubr.msk.f32.mxu0 %vm732_vm1, %v6194_v10  ;;  %v7689_v10 = vld [vmem:[#allocation14_spill] sm:$0xff] }
  0xe8   : > { %5417 = vmatprep.mubr.msk.f32.mxu1 %vm732_vm1, %v6517_v28 }
  0xea   : > { %5468 = vmatmul.mubr.msk.f32.gmra.mxu0 %vm732_vm1, %v6208_v12  ;;  %v7691_v12 = vld [vmem:[#allocation16_spill] sm:$0xff] }
  0xeb   : > { %5418 = vmatmul.mubr.msk.f32.gmra.mxu1 %vm732_vm1, %v6531_v30  ;;  %5470 = vmatprep.mubr.msk.f32.mxu0 %vm732_vm1, %v6214_v14  ;;  %v7693_v14 = vld [vmem:[#allocation18_spill] sm:$0xff] }
  0xec   : > { %5420 = vmatprep.mubr.msk.f32.mxu1 %vm732_vm1, %v6537_v22 }
  0xee   : > { %5471 = vmatmul.mubr.msk.f32.gmra.mxu0 %vm732_vm1, %v7677_v51 }
  0xef   : > { %5421 = vmatmul.mubr.msk.f32.gmra.mxu1 %vm732_vm1, %v6551_v26  ;;  %5473 = vmatprep.mubr.msk.f32.mxu0 %vm732_vm1, %v6698_v50  ;;  %v4757_v50 = vld [vmem:[%s6062_s9 + $0x110] sm:$0xff] }
  0xf0   : > { %5423 = vmatprep.mubr.msk.f32.mxu1 %vm732_vm1, %v6695_v48 }
  0xf2   : > { %5474 = vmatmul.mubr.msk.f32.gmra.mxu0 %vm732_vm1, %v6712_v55  ;;  %v6887_v55 = vld [vmem:[%s6062_s9 + $0x340] sm:$0xff] }
  0xf3   : > { %5424 = vmatmul.mubr.msk.f32.gmra.mxu1 %vm732_vm1, %v6709_v52  ;;  %5528 = vmatprep.mubr.msk.f32.mxu0 %vm732_vm1, %v6273_v27  ;;  %7711 = vst [vmem:[#allocation8_spill] sm:$0xff] %v6887_v55 }
  0xf4   : > { %5478 = vmatprep.mubr.msk.f32.mxu1 %vm732_vm1, %v7679_v56 }
  0xf6   : > { %5529 = vmatmul.mubr.msk.f32.vlgmr.msra.gmra.mxu0 %vm732_vm1, %v6291_v29 }
  0xf7   : > { %5479 = vmatmul.mubr.msk.f32.vlgmr.msra.gmra.mxu1 %vm732_vm1, %v7680_v58  ;;  %5627 = vmatpush3.msk.msra.mxu0 %vm829_vm0, %v6576_v54 }
  0xf8   : > { %5577 = vmatpush3.msk.msra.mxu1 %vm829_vm0, %v6571_v16  ;;  %5481 = vmatprep.mubr.msk.f32.mxu1 %vm732_vm1, %v7681_v60  ;;  %v7695_v16 = vld [vmem:[#allocation20_spill] sm:$0xff] }
  0xf9   : > { %5531 = vmatprep.mubr.msk.f32.mxu0 %vm732_vm1, %v6297_v31 }
  0xfa   : > { %5532 = vmatmul.mubr.msk.f32.gmra.mxu0 %vm732_vm1, %v6311_v33 }
  0xfb   : > { %5482 = vmatmul.mubr.msk.f32.gmra.mxu1 %vm732_vm1, %v7682_v62  ;;  %5534 = vmatprep.mubr.msk.f32.mxu0 %vm732_vm1, %v6317_v35  ;;  %v7698_v35 = vld [vmem:[#allocation23_spill] sm:$0xff] }
  0xfc   : > { %5484 = vmatprep.mubr.msk.f32.mxu1 %vm732_vm1, %v7683_v0 }
  0xfe   : > { %5535 = vmatmul.mubr.msk.f32.gmra.mxu0 %vm732_vm1, %v6331_v37  ;;  %v7699_v37 = vld [vmem:[#allocation24_spill] sm:$0xff] }
  0xff   : > { %5485 = vmatmul.mubr.msk.f32.gmra.mxu1 %vm732_vm1, %v7684_v2  ;;  %5537 = vmatprep.mubr.msk.f32.mxu0 %vm732_vm1, %v6337_v39 }
 0x100   : > { %5487 = vmatprep.mubr.msk.f32.mxu1 %vm732_vm1, %v7685_v4 }
 0x102   : > { %5538 = vmatmul.mubr.msk.f32.gmra.mxu0 %vm732_vm1, %v6351_v41 }
 0x103   : > { %5488 = vmatmul.mubr.msk.f32.gmra.mxu1 %vm732_vm1, %v7686_v6  ;;  %5540 = vmatprep.mubr.msk.f32.mxu0 %vm732_vm1, %v6357_v43 }
 0x104   : > { %5490 = vmatprep.mubr.msk.f32.mxu1 %vm732_vm1, %v7687_v8 }
 0x106   : > { %5541 = vmatmul.mubr.msk.f32.gmra.mxu0 %vm732_vm1, %v6371_v45 }
 0x107   : > { %5491 = vmatmul.mubr.msk.f32.gmra.mxu1 %vm732_vm1, %v7688_v9  ;;  %5543 = vmatprep.mubr.msk.f32.mxu0 %vm732_vm1, %v6377_v47 }
 0x108   : > { %5493 = vmatprep.mubr.msk.f32.mxu1 %vm732_vm1, %v7689_v10 }
 0x10a   : > { %5544 = vmatmul.mubr.msk.f32.gmra.mxu0 %vm732_vm1, %v6391_v53 }
 0x10b   : > { %5494 = vmatmul.mubr.msk.f32.gmra.mxu1 %vm732_vm1, %v7690_v11  ;;  %5546 = vmatprep.mubr.msk.f32.mxu0 %vm732_vm1, %v6397_v17 }
 0x10c   : > { %5496 = vmatprep.mubr.msk.f32.mxu1 %vm732_vm1, %v7691_v12 }
 0x10e   : > { %5547 = vmatmul.mubr.msk.f32.gmra.mxu0 %vm732_vm1, %v6411_v19 }
 0x10f   : > { %5497 = vmatmul.mubr.msk.f32.gmra.mxu1 %vm732_vm1, %v7692_v13  ;;  %5549 = vmatprep.mubr.msk.f32.mxu0 %vm732_vm1, %v6417_v49  ;;  %v7702_v49 = vld [vmem:[#allocation27_spill] sm:$0xff] }
 0x110   : > { %5499 = vmatprep.mubr.msk.f32.mxu1 %vm732_vm1, %v7693_v14 }
 0x112   : > { %5550 = vmatmul.mubr.msk.f32.gmra.mxu0 %vm732_vm1, %v6431_v18  ;;  %v7705_v18 = vld [vmem:[#allocation29_spill] sm:$0xff] }
 0x113   : > { %5500 = vmatmul.mubr.msk.f32.gmra.mxu1 %vm732_vm1, %v7694_v15  ;;  %5552 = vmatprep.mubr.msk.f32.mxu0 %vm732_vm1, %v6437_v44  ;;  %v7700_v44 = vld [vmem:[#allocation25_spill] sm:$0xff] }
 0x114   : > { %5502 = vmatprep.mubr.msk.f32.mxu1 %vm732_vm1, %v7695_v16 }
 0x116   : > { %v6790_v21 = vpop.f32.mrf.mxu0  ;;  %5553 = vmatmul.mubr.msk.f32.gmra.mxu0 %vm732_vm1, %v6451_v46 }
 0x117   : > { %v6792_v23 = vpop.f32.mrf.mxu1  ;;  %5503 = vmatmul.mubr.msk.f32.gmra.mxu1 %vm732_vm1, %v7696_v24  ;;  %5555 = vmatprep.mubr.msk.f32.mxu0 %vm732_vm1, %v6457_v40 }
 0x118   : > { %5505 = vmatprep.mubr.msk.f32.mxu1 %vm732_vm1, %v7697_v25  ;;  %v6802_v27 = vpop.f32.mrf.mxu0 }
 0x119   : > { %v6804_v29 = vpop.f32.mrf.mxu1 }
 0x11a   : > { %v6806_v31 = vpop.f32.mrf.mxu0  ;;  %5556 = vmatmul.mubr.msk.f32.gmra.mxu0 %vm732_vm1, %v6471_v42  ;;  %v7701_v42 = vld [vmem:[#allocation26_spill] sm:$0xff] }
 0x11b   : > { %v6808_v33 = vpop.f32.mrf.mxu1  ;;  %5506 = vmatmul.mubr.msk.f32.gmra.mxu1 %vm732_vm1, %v7698_v35  ;;  %5558 = vmatprep.mubr.msk.f32.mxu0 %vm732_vm1, %v6477_v36 }
 0x11c   : > { %5508 = vmatprep.mubr.msk.f32.mxu1 %vm732_vm1, %v7699_v37  ;;  %v6818_v39 = vpop.f32.mrf.mxu0 }
 0x11d   : > { %v6820_v40 = vpop.f32.mrf.mxu1 }
 0x11e   : > { %v6822_v41 = vpop.f32.mrf.mxu0  ;;  %5559 = vmatmul.mubr.msk.f32.gmra.mxu0 %vm732_vm1, %v6491_v38  ;;  %v7703_v38 = vld [vmem:[#allocation28_spill] sm:$0xff] }
 0x11f   : > { %v6824_v43 = vpop.f32.mrf.mxu1  ;;  %5509 = vmatmul.mubr.msk.f32.gmra.mxu1 %vm732_vm1, %v7700_v44  ;;  %5561 = vmatprep.mubr.msk.f32.mxu0 %vm732_vm1, %v6497_v32 }
 0x120   : > { %5511 = vmatprep.mubr.msk.f32.mxu1 %vm732_vm1, %v7701_v42  ;;  %v6834_v36 = vpop.f32.mrf.mxu0 }
 0x121   : > { %v6836_v45 = vpop.f32.mrf.mxu1 }
 0x122   : > { %v6838_v46 = vpop.f32.mrf.mxu0  ;;  %5562 = vmatmul.mubr.msk.f32.gmra.mxu0 %vm732_vm1, %v6511_v34  ;;  %v7706_v34 = vld [vmem:[#allocation30_spill] sm:$0xff] }
 0x123   : > { %v6840_v47 = vpop.f32.mrf.mxu1  ;;  %5512 = vmatmul.mubr.msk.f32.gmra.mxu1 %vm732_vm1, %v7702_v49  ;;  %5564 = vmatprep.mubr.msk.f32.mxu0 %vm732_vm1, %v6517_v28 }
 0x124   : > { %5514 = vmatprep.mubr.msk.f32.mxu1 %vm732_vm1, %v7703_v38  ;;  %v6850_v32 = vpop.f32.mrf.mxu0 }
 0x125   : > { %v6852_v53 = vpop.f32.mrf.mxu1 }
 0x126   : > { %v6854_v54 = vpop.f32.mrf.mxu0  ;;  %5565 = vmatmul.mubr.msk.f32.gmra.mxu0 %vm732_vm1, %v6531_v30  ;;  %v7709_v30 = vld [vmem:[#allocation32_spill] sm:$0xff] }
 0x127   : > { %v6856_v17 = vpop.f32.mrf.mxu1  ;;  %5515 = vmatmul.mubr.msk.f32.gmra.mxu1 %vm732_vm1, %v7705_v18  ;;  %5567 = vmatprep.mubr.msk.f32.mxu0 %vm732_vm1, %v6537_v22 }
 0x128   : > { %7704 = vst [vmem:[#allocation4_spill] sm:$0xff] %v6856_v17  ;;  %5517 = vmatprep.mubr.msk.f32.mxu1 %vm732_vm1, %v7706_v34  ;;  %v6866_v28 = vpop.f32.mrf.mxu0  ;;  %v7713_v17 = vld [vmem:[#allocation33_spill] sm:$0xff] }
 0x129   : > { %v6868_v19 = vpop.f32.mrf.mxu1 }
 0x12a   : > { %7707 = vst [vmem:[#allocation5_spill] sm:$0xff] %v6868_v19  ;;  %v6870_v51 = vpop.f32.mrf.mxu0  ;;  %5568 = vmatmul.mubr.msk.f32.gmra.mxu0 %vm732_vm1, %v6551_v26  ;;  %v6902_v26 = vld [vmem:[%s6062_s9 + $0x348] sm:$0xff] }
 0x12b   : > { %v6872_v56 = vpop.f32.mrf.mxu1  ;;  %5518 = vmatmul.mubr.msk.f32.gmra.mxu1 %vm732_vm1, %v6534_v20  ;;  %5570 = vmatprep.mubr.msk.f32.mxu0 %vm732_vm1, %v6695_v48  ;;  %7714 = vst [vmem:[#allocation10_spill] sm:$0xff] %v6902_v26  ;;  %v4758_v48 = vld [vmem:[%s6062_s9 + $0x118] sm:$0xff] }
 0x12c   : > { %7708 = vst [vmem:[#allocation6_spill] sm:$0xff] %v6872_v56  ;;  %5520 = vmatprep.mubr.msk.f32.mxu1 %vm732_vm1, %v7709_v30  ;;  %v6882_v22 = vpop.f32.mrf.mxu0 }
 0x12d   : > { %v6884_v58 = vpop.f32.mrf.mxu1 }
 0x12e   : > { %7710 = vst [vmem:[#allocation7_spill] sm:$0xff] %v6884_v58  ;;  %v6890_v56 = vpop.f32.mrf.mxu0  ;;  %5571 = vmatmul.mubr.msk.f32.gmra.mxu0 %vm732_vm1, %v6709_v52 }
 0x12f   : > { %v6892_v19 = vpop.f32.mrf.mxu1  ;;  %5521 = vmatmul.mubr.msk.f32.gmra.mxu1 %vm732_vm1, %v7713_v17  ;;  %5573 = vmatprep.mubr.msk.f32.mxu0 %vm732_vm1, %v4757_v50 }
 0x130   : > { %7712 = vst [vmem:[#allocation9_spill] sm:$0xff] %v6892_v19  ;;  %5523 = vmatprep.mubr.msk.f32.mxu1 %vm732_vm1, %v6887_v55  ;;  %v6905_v30 = vpop.f32.mrf.mxu0 }
 0x131   : > { %v6907_v58 = vpop.f32.mrf.mxu1 }
 0x132   : > { %7715 = vst [vmem:[#allocation11_spill] sm:$0xff] %v6907_v58  ;;  %v6909_v20 = vpop.f32.mrf.mxu0  ;;  %5574 = vmatmul.mubr.msk.f32.gmra.mxu0 %vm732_vm1, %v4758_v48 }
 0x133   : > { %v6911_v19 = vpop.f32.mrf.mxu1  ;;  %5524 = vmatmul.mubr.msk.f32.gmra.mxu1 %vm732_vm1, %v6902_v26  ;;  %5628 = vmatprep.mubr.msk.f32.mxu0 %vm732_vm1, %v7681_v60 }
 0x134   : > { %7716 = vst [vmem:[#allocation12_spill] sm:$0xff] %v6911_v19  ;;  %5578 = vmatprep.mubr.msk.f32.mxu1 %vm732_vm1, %v6107_v57  ;;  %v6920_v50 = vpop.f32.mrf.mxu0 }
 0x135   : > { %v6922_v52 = vpop.f32.mrf.mxu1 }
 0x136   : > { %7717 = vst [vmem:[#allocation13_spill] sm:$0xff] %v6922_v52  ;;  %v5330_v58 = vpop.f32.mrf.mxu0  ;;  %5629 = vmatmul.mubr.msk.f32.vlgmr.msra.gmra.mxu0 %vm732_vm1, %v7682_v62 }
 0x137   : > { %v5280_v17 = vpop.f32.mrf.mxu1  ;;  %5579 = vmatmul.mubr.msk.f32.vlgmr.msra.gmra.mxu1 %vm732_vm1, %v6125_v59  ;;  %5631 = vmatprep.mubr.msk.f32.mxu0 %vm732_vm1, %v7683_v0 }
 0x138   : > { %v1229_v48 = vadd.f32 %v5280_v17, %v6790_v21  ;;  %5581 = vmatprep.mubr.msk.f32.mxu1 %vm732_vm1, %v6131_v61  ;;  %v1583_v60 = vpop.f32.mrf.mxu0  ;;  %v4803_v17 = vld [vmem:[%s6062_s9 + $0x190] sm:$0xff] }
 0x139   : > { %v1223_v57 = vpop.f32.mrf.mxu1 }
 0x13a   : > { %v6933_v19 = vadd.f32 %v5330_v58, %v1229_v48  ;;  %v1224_v52 = vadd.f32 %v1223_v57, %v6802_v27  ;;  %v5333_v55 = vpop.f32.mrf.mxu0  ;;  %5632 = vmatmul.mubr.msk.f32.gmra.mxu0 %vm732_vm1, %v7684_v2 }
 0x13b   : > { %v5283_v26 = vpop.f32.mrf.mxu1  ;;  %5582 = vmatmul.mubr.msk.f32.gmra.mxu1 %vm732_vm1, %v6145_v63  ;;  %5634 = vmatprep.mubr.msk.f32.mxu0 %vm732_vm1, %v7685_v4 }
 0x13c   : > { %v6940_v59 = vadd.f32 %v1583_v60, %v1224_v52  ;;  %v1239_v61 = vadd.f32 %v5283_v26, %v6806_v31  ;;  %5584 = vmatprep.mubr.msk.f32.mxu1 %vm732_vm1, %v6151_v1  ;;  %v1593_v0 = vpop.f32.mrf.mxu0  ;;  %v4801_v31 = vld [vmem:[%s6062_s9 + $0x180] sm:$0xff]  ;;  %v4804_v60 = vld [vmem:[%s6062_s9 + $0x198] sm:$0xff] }
 0x13d   : > { %v1233_v62 = vpop.f32.mrf.mxu1 }
 0x13e   : > { %v6947_v21 = vadd.f32 %v5333_v55, %v1239_v61  ;;  %v1234_v63 = vadd.f32 %v1233_v62, %v6818_v39  ;;  %v5336_v58 = vpop.f32.mrf.mxu0  ;;  %5635 = vmatmul.mubr.msk.f32.gmra.mxu0 %vm732_vm1, %v7686_v6  ;;  %v4805_v62 = vld [vmem:[%s6062_s9 + $0x1a0] sm:$0xff] }
 0x13f   : > { %v5286_v27 = vpop.f32.mrf.mxu1  ;;  %5585 = vmatmul.mubr.msk.f32.gmra.mxu1 %vm732_vm1, %v6165_v3  ;;  %5637 = vmatprep.mubr.msk.f32.mxu0 %vm732_vm1, %v7687_v8 }
 0x140   : > { %v6954_v2 = vadd.f32 %v1593_v0, %v1234_v63  ;;  %v1249_v1 = vadd.f32 %v5286_v27, %v6822_v41  ;;  %5587 = vmatprep.mubr.msk.f32.mxu1 %vm732_vm1, %v6171_v5  ;;  %v1603_v4 = vpop.f32.mrf.mxu0  ;;  %v4802_v41 = vld [vmem:[%s6062_s9 + $0x188] sm:$0xff] }
 0x141   : > { %v1243_v55 = vpop.f32.mrf.mxu1 }
 0x142   : > { %v6962_v39 = vadd.f32 %v5336_v58, %v1249_v1  ;;  %v1244_v3 = vadd.f32 %v1243_v55, %v6834_v36  ;;  %v5339_v26 = vpop.f32.mrf.mxu0  ;;  %5638 = vmatmul.mubr.msk.f32.gmra.mxu0 %vm732_vm1, %v7688_v9  ;;  %v4806_v58 = vld [vmem:[%s6062_s9 + $0x1a8] sm:$0xff]  ;;  %v4807_v55 = vld [vmem:[%s6062_s9 + $0x1b0] sm:$0xff] }
 0x143   : > { %v5289_v6 = vpop.f32.mrf.mxu1  ;;  %5588 = vmatmul.mubr.msk.f32.gmra.mxu1 %vm732_vm1, %v6185_v7  ;;  %5640 = vmatprep.mubr.msk.f32.mxu0 %vm732_vm1, %v7689_v10 }
 0x144   : > { %v6969_v5 = vadd.f32 %v1603_v4, %v1244_v3  ;;  %v1259_v8 = vadd.f32 %v5289_v6, %v6838_v46  ;;  %5590 = vmatprep.mubr.msk.f32.mxu1 %vm732_vm1, %v4801_v31  ;;  %v1613_v52 = vpop.f32.mrf.mxu0  ;;  %v4808_v6 = vld [vmem:[%s6062_s9 + $0x1b8] sm:$0xff] }
 0x145   : > { %v1253_v36 = vpop.f32.mrf.mxu1 }
 0x146   : > { %v6977_v48 = vadd.f32 %v5339_v26, %v1259_v8  ;;  %v1254_v7 = vadd.f32 %v1253_v36, %v6850_v32  ;;  %v5342_v57 = vpop.f32.mrf.mxu0  ;;  %5641 = vmatmul.mubr.msk.f32.gmra.mxu0 %vm732_vm1, %v7690_v11  ;;  %v4809_v8 = vld [vmem:[%s6062_s9 + $0x1c0] sm:$0xff] }
 0x147   : > { %v5292_v9 = vpop.f32.mrf.mxu1  ;;  %5591 = vmatmul.mubr.msk.f32.gmra.mxu1 %vm732_vm1, %v4802_v41  ;;  %5643 = vmatprep.mubr.msk.f32.mxu0 %vm732_vm1, %v7691_v12 }
 0x148   : > { %v6983_v46 = vadd.f32 %v1613_v52, %v1254_v7  ;;  %v1269_v10 = vadd.f32 %v5292_v9, %v6854_v54  ;;  %5593 = vmatprep.mubr.msk.f32.mxu1 %vm732_vm1, %v4803_v17  ;;  %v1623_v32 = vpop.f32.mrf.mxu0  ;;  %v4810_v17 = vld [vmem:[%s6062_s9 + $0x1c8] sm:$0xff]  ;;  %v4811_v9 = vld [vmem:[%s6062_s9 + $0x1d0] sm:$0xff] }
 0x149   : > { %v1263_v61 = vpop.f32.mrf.mxu1 }
 0x14a   : > { %v6991_v0 = vadd.f32 %v5342_v57, %v1269_v10  ;;  %v1264_v63 = vadd.f32 %v1263_v61, %v6866_v28  ;;  %v5345_v27 = vpop.f32.mrf.mxu0  ;;  %5644 = vmatmul.mubr.msk.f32.gmra.mxu0 %vm732_vm1, %v7692_v13  ;;  %v4812_v61 = vld [vmem:[%s6062_s9 + $0x1d8] sm:$0xff] }
 0x14b   : > { %v5295_v11 = vpop.f32.mrf.mxu1  ;;  %5594 = vmatmul.mubr.msk.f32.gmra.mxu1 %vm732_vm1, %v4804_v60  ;;  %5646 = vmatprep.mubr.msk.f32.mxu0 %vm732_vm1, %v7693_v14 }
 0x14c   : > { %v6997_v54 = vadd.f32 %v1623_v32, %v1264_v63  ;;  %v1279_v12 = vadd.f32 %v5295_v11, %v6870_v51  ;;  %5596 = vmatprep.mubr.msk.f32.mxu1 %vm732_vm1, %v4805_v62  ;;  %v1633_v28 = vpop.f32.mrf.mxu0  ;;  %v4813_v62 = vld [vmem:[%s6062_s9 + $0x1e0] sm:$0xff] }
 0x14d   : > { %v1273_v1 = vpop.f32.mrf.mxu1 }
 0x14e   : > { %v7005_v4 = vadd.f32 %v5345_v27, %v1279_v12  ;;  %v1274_v31 = vadd.f32 %v1273_v1, %v6882_v22  ;;  %v5348_v3 = vpop.f32.mrf.mxu0  ;;  %5647 = vmatmul.mubr.msk.f32.gmra.mxu0 %vm732_vm1, %v7694_v15  ;;  %v4814_v12 = vld [vmem:[%s6062_s9 + $0x1e8] sm:$0xff]  ;;  %v4815_v1 = vld [vmem:[%s6062_s9 + $0x1f0] sm:$0xff] }
 0x14f   : > { %v5298_v13 = vpop.f32.mrf.mxu1  ;;  %5597 = vmatmul.mubr.msk.f32.gmra.mxu1 %vm732_vm1, %v4806_v58  ;;  %5649 = vmatprep.mubr.msk.f32.mxu0 %vm732_vm1, %v7695_v16 }
 0x150   : > { %v7011_v51 = vadd.f32 %v1633_v28, %v1274_v31  ;;  %v1289_v14 = vadd.f32 %v5298_v13, %v6890_v56  ;;  %5599 = vmatprep.mubr.msk.f32.mxu1 %vm732_vm1, %v4807_v55  ;;  %v1643_v22 = vpop.f32.mrf.mxu0  ;;  %v4816_v13 = vld [vmem:[%s6062_s9 + $0x1f8] sm:$0xff] }
 0x151   : > { %v1283_v26 = vpop.f32.mrf.mxu1 }
 0x152   : > { %v7019_v41 = vadd.f32 %v5348_v3, %v1289_v14  ;;  %v1284_v36 = vadd.f32 %v1283_v26, %v6905_v30  ;;  %v5351_v52 = vpop.f32.mrf.mxu0  ;;  %5650 = vmatmul.mubr.msk.f32.gmra.mxu0 %vm732_vm1, %v7696_v24  ;;  %v4817_v14 = vld [vmem:[%s6062_s9 + $0x200] sm:$0xff] }
 0x153   : > { %v5301_v15 = vpop.f32.mrf.mxu1  ;;  %5600 = vmatmul.mubr.msk.f32.gmra.mxu1 %vm732_vm1, %v4808_v6  ;;  %5652 = vmatprep.mubr.msk.f32.mxu0 %vm732_vm1, %v7697_v25 }
 0x154   : > { %v7025_v56 = vadd.f32 %v1643_v22, %v1284_v36  ;;  %v1299_v16 = vadd.f32 %v5301_v15, %v6909_v20  ;;  %5602 = vmatprep.mubr.msk.f32.mxu1 %vm732_vm1, %v4809_v8  ;;  %v1653_v30 = vpop.f32.mrf.mxu0  ;;  %v4818_v8 = vld [vmem:[%s6062_s9 + $0x208] sm:$0xff]  ;;  %v4819_v15 = vld [vmem:[%s6062_s9 + $0x210] sm:$0xff] }
 0x155   : > { %v1293_v7 = vpop.f32.mrf.mxu1 }
 0x156   : > { %v7033_v57 = vadd.f32 %v5351_v52, %v1299_v16  ;;  %v1294_v10 = vadd.f32 %v1293_v7, %v6920_v50  ;;  %v5354_v60 = vpop.f32.mrf.mxu0  ;;  %5653 = vmatmul.mubr.msk.f32.gmra.mxu0 %vm732_vm1, %v7698_v35  ;;  %v4885_v52 = vld [vmem:[%s6062_s9 + $0x330] sm:$0xff] }
 0x157   : > { %v5304_v24 = vpop.f32.mrf.mxu1  ;;  %5603 = vmatmul.mubr.msk.f32.gmra.mxu1 %vm732_vm1, %v4810_v17  ;;  %5655 = vmatprep.mubr.msk.f32.mxu0 %vm732_vm1, %v7699_v37 }
 0x158   : > { %v7039_v20 = vadd.f32 %v1653_v30, %v1294_v10  ;;  %v1309_v25 = vadd.f32 %v5304_v24, %v6792_v23  ;;  %5605 = vmatprep.mubr.msk.f32.mxu1 %vm732_vm1, %v4811_v9  ;;  %v1663_v50 = vpop.f32.mrf.mxu0  ;;  %v4820_v10 = vld [vmem:[%s6062_s9 + $0x218] sm:$0xff] }
 0x159   : > { %v1303_v32 = vpop.f32.mrf.mxu1  ;;  %v4886_v24 = vld [vmem:[%s6062_s9 + $0x338] sm:$0xff] }
 0x15a   : > { %v7047_v63 = vadd.f32 %v5354_v60, %v1309_v25  ;;  %v1304_v11 = vadd.f32 %v1303_v32, %v6804_v29  ;;  %v5357_v27 = vpop.f32.mrf.mxu0  ;;  %5656 = vmatmul.mubr.msk.f32.gmra.mxu0 %vm732_vm1, %v7700_v44 }
 0x15b   : > { %v5307_v35 = vpop.f32.mrf.mxu1  ;;  %5606 = vmatmul.mubr.msk.f32.gmra.mxu1 %vm732_vm1, %v4812_v61  ;;  %5658 = vmatprep.mubr.msk.f32.mxu0 %vm732_vm1, %v7701_v42  ;;  %v7720_v61 = vld [vmem:[#allocation5_spill] sm:$0xff] }
 0x15c   : > { %v7053_v23 = vadd.f32 %v1663_v50, %v1304_v11  ;;  %v1319_v37 = vadd.f32 %v5307_v35, %v6808_v33  ;;  %5608 = vmatprep.mubr.msk.f32.mxu1 %vm732_vm1, %v4813_v62  ;;  %v1673_v29 = vpop.f32.mrf.mxu0  ;;  %v7721_v35 = vld [vmem:[#allocation6_spill] sm:$0xff] }
 0x15d   : > { %v1313_v58 = vpop.f32.mrf.mxu1 }
 0x15e   : > { %v7061_v28 = vadd.f32 %v5357_v27, %v1319_v37  ;;  %v1314_v55 = vadd.f32 %v1313_v58, %v6820_v40  ;;  %v5360_v31 = vpop.f32.mrf.mxu0  ;;  %5659 = vmatmul.mubr.msk.f32.gmra.mxu0 %vm732_vm1, %v7702_v49  ;;  %v7722_v37 = vld [vmem:[#allocation34_spill] sm:$0xff] }
 0x15f   : > { %v5310_v44 = vpop.f32.mrf.mxu1  ;;  %5609 = vmatmul.mubr.msk.f32.gmra.mxu1 %vm732_vm1, %v4814_v12  ;;  %5661 = vmatprep.mubr.msk.f32.mxu0 %vm732_vm1, %v7703_v38  ;;  %v7723_v12 = vld [vmem:[#allocation8_spill] sm:$0xff] }
 0x160   : > { %v7067_v33 = vadd.f32 %v1673_v29, %v1314_v55  ;;  %v1329_v42 = vadd.f32 %v5310_v44, %v6824_v43  ;;  %5611 = vmatprep.mubr.msk.f32.mxu1 %vm732_vm1, %v4815_v1  ;;  %v1683_v40 = vpop.f32.mrf.mxu0  ;;  %v4823_v1 = vld [vmem:[%s6062_s9 + $0x230] sm:$0xff] }
 0x161   : > { %v1323_v3 = vpop.f32.mrf.mxu1  ;;  %v4889_v55 = vld [vmem:[%s6062_s9 + $0x350] sm:$0xff] }
 0x162   : > { %v7075_v6 = vadd.f32 %v5360_v31, %v1329_v42  ;;  %v1324_v49 = vadd.f32 %v1323_v3, %v6836_v45  ;;  %v5363_v22 = vpop.f32.mrf.mxu0  ;;  %5662 = vmatmul.mubr.msk.f32.gmra.mxu0 %vm732_vm1, %v7705_v18  ;;  %v7724_v31 = vld [vmem:[#allocation7_spill] sm:$0xff] }
 0x163   : > { %v5313_v26 = vpop.f32.mrf.mxu1  ;;  %5612 = vmatmul.mubr.msk.f32.gmra.mxu1 %vm732_vm1, %v4816_v13  ;;  %5664 = vmatprep.mubr.msk.f32.mxu0 %vm732_vm1, %v7706_v34  ;;  %v7719_v34 = vld [vmem:[#allocation4_spill] sm:$0xff] }
 0x164   : > { %v7081_v43 = vadd.f32 %v1683_v40, %v1324_v49  ;;  %v1339_v38 = vadd.f32 %v5313_v26, %v6840_v47  ;;  %5614 = vmatprep.mubr.msk.f32.mxu1 %vm732_vm1, %v4817_v14  ;;  %v1693_v36 = vpop.f32.mrf.mxu0  ;;  %v7718_v47 = vld [vmem:[#allocation31_spill] sm:$0xff]  ;;  %v7726_v14 = vld [vmem:[#allocation10_spill] sm:$0xff]  ;;  %v7727_v26 = vld [vmem:[#allocation9_spill] sm:$0xff] }
 0x165   : > { %v1333_v45 = vpop.f32.mrf.mxu1  ;;  %v7725_v40 = vld [vmem:[#allocation3_spill] sm:$0xff] }
 0x166   : > { %v7090_v16 = vadd.f32 %v5363_v22, %v1339_v38  ;;  %v1334_v18 = vadd.f32 %v1333_v45, %v6852_v53  ;;  %v5366_v7 = vpop.f32.mrf.mxu0  ;;  %5665 = vmatmul.mubr.msk.f32.gmra.mxu0 %vm732_vm1, %v7718_v47  ;;  %v4824_v38 = vld [vmem:[%s6062_s9 + $0x238] sm:$0xff] }
 0x167   : > { %v5316_v17 = vpop.f32.mrf.mxu1  ;;  %5615 = vmatmul.mubr.msk.f32.gmra.mxu1 %vm732_vm1, %v4818_v8  ;;  %5667 = vmatprep.mubr.msk.f32.mxu0 %vm732_vm1, %v4885_v52  ;;  %v4890_v8 = vld [vmem:[%s6062_s9 + $0x358] sm:$0xff]  ;;  %v7728_v52 = vld [vmem:[#allocation11_spill] sm:$0xff] }
 0x168   : > { %v7096_v30 = vadd.f32 %v1693_v36, %v1334_v18  ;;  %v1349_v9 = vadd.f32 %v5316_v17, %v7719_v34  ;;  %5617 = vmatprep.mubr.msk.f32.mxu1 %vm732_vm1, %v4819_v15  ;;  %v1703_v60 = vpop.f32.mrf.mxu0  ;;  %v7729_v34 = vld [vmem:[#allocation12_spill] sm:$0xff] }
 0x169   : > { %v1343_v53 = vpop.f32.mrf.mxu1 }
 0x16a   : > { %v7103_v25 = vadd.f32 %v5366_v7, %v1349_v9  ;;  %v1344_v32 = vadd.f32 %v1343_v53, %v7720_v61  ;;  %v5369_v62 = vpop.f32.mrf.mxu0  ;;  %5668 = vmatmul.mubr.msk.f32.gmra.mxu0 %vm732_vm1, %v4886_v24 }
 0x16b   : > { %v5319_v50 = vpop.f32.mrf.mxu1  ;;  %5618 = vmatmul.mubr.msk.f32.gmra.mxu1 %vm732_vm1, %v4820_v10  ;;  %5670 = vmatprep.mubr.msk.f32.mxu0 %vm732_vm1, %v7723_v12 }
 0x16c   : > { %v7108_v11 = vadd.f32 %v1703_v60, %v1344_v32  ;;  %v1359_v27 = vadd.f32 %v5319_v50, %v7721_v35  ;;  %5620 = vmatprep.mubr.msk.f32.mxu1 %vm732_vm1, %v7722_v37  ;;  %v1713_v29 = vpop.f32.mrf.mxu0  ;;  %v7730_v60 = vld [vmem:[#allocation13_spill] sm:$0xff] }
 0x16d   : > { %v1353_v58 = vpop.f32.mrf.mxu1 }
 0x16e   : > { %v7117_v44 = vadd.f32 %v5369_v62, %v1359_v27  ;;  %v1354_v42 = vadd.f32 %v1353_v58, %v7724_v31  ;;  %v5372_v3 = vpop.f32.mrf.mxu0  ;;  %5671 = vmatmul.mubr.msk.f32.gmra.mxu0 %vm732_vm1, %v7726_v14 }
 0x16f   : > { %v5322_v13 = vpop.f32.mrf.mxu1  ;;  %5621 = vmatmul.mubr.msk.f32.gmra.mxu1 %vm732_vm1, %v7725_v40  ;;  %5673 = vmatprep.mubr.msk.f32.mxu0 %vm732_vm1, %v4889_v55 }
 0x170   : > { %v7124_v49 = vadd.f32 %v1713_v29, %v1354_v42  ;;  %v1369_v22 = vadd.f32 %v5322_v13, %v7727_v26  ;;  %5623 = vmatprep.mubr.msk.f32.mxu1 %vm732_vm1, %v4823_v1  ;;  %v1723_v36 = vpop.f32.mrf.mxu0 }
 0x171   : > { %v1363_v45 = vpop.f32.mrf.mxu1 }
 0x172   : > { %v7131_v15 = vadd.f32 %v5372_v3, %v1369_v22  ;;  %v1364_v18 = vadd.f32 %v1363_v45, %v7728_v52  ;;  %v5375_v7 = vpop.f32.mrf.mxu0  ;;  %5674 = vmatmul.mubr.msk.f32.gmra.mxu0 %vm732_vm1, %v4890_v8 }
 0x173   : > { %v5325_v17 = vpop.f32.mrf.mxu1  ;;  %5624 = vmatmul.mubr.msk.f32.gmra.mxu1 %vm732_vm1, %v4824_v38 }
 0x174   : > { %v7136_v47 = vadd.f32 %v1723_v36, %v1364_v18  ;;  %v1379_v9 = vadd.f32 %v5325_v17, %v7729_v34  ;;  %v1733_v24 = vpop.f32.mrf.mxu0 }
 0x175   : > { %v1373_v10 = vpop.f32.mrf.mxu1 }
 0x176   : > { %v7139_v53 = vadd.f32 %v5375_v7, %v1379_v9  ;;  %v1374_v61 = vadd.f32 %v1373_v10, %v7730_v60  ;;  %v5430_v50 = vpop.f32.mrf.mxu0 }
 0x177   : > { %v5380_v32 = vpop.f32.mrf.mxu1 }
 0x178   : > { %v7142_v62 = vadd.f32 %v1733_v24, %v1374_v61  ;;  %v2136_v35 = vadd.f32 %v5380_v32, %v6933_v19  ;;  %v2368_v37 = vpop.f32.mrf.mxu0 }
 0x179   : > { %v1976_v27 = vpop.f32.mrf.mxu1 }
 0x17a   : > { %v7145_v12 = vadd.f32 %v5430_v50, %v2136_v35  ;;  %v2135_v58 = vadd.f32 %v1976_v27, %v6940_v59  ;;  %v5433_v1 = vpop.f32.mrf.mxu0 }
 0x17b   : > { %v5383_v29 = vpop.f32.mrf.mxu1 }
 0x17c   : > { %v7148_v55 = vadd.f32 %v2368_v37, %v2135_v58  ;;  %v2138_v31 = vadd.f32 %v5383_v29, %v6947_v21  ;;  %v2378_v13 = vpop.f32.mrf.mxu0 }
 0x17d   : > { %v1986_v42 = vpop.f32.mrf.mxu1 }
 0x17e   : > { %v7151_v3 = vadd.f32 %v5433_v1, %v2138_v31  ;;  %v2137_v40 = vadd.f32 %v1986_v42, %v6954_v2  ;;  %v5436_v19 = vpop.f32.mrf.mxu0 }
 0x17f   : > { %v5386_v14 = vpop.f32.mrf.mxu1 }
 0x180   : > { %v7154_v26 = vadd.f32 %v2378_v13, %v2137_v40  ;;  %v2140_v22 = vadd.f32 %v5386_v14, %v6962_v39  ;;  %v2388_v59 = vpop.f32.mrf.mxu0 }
 0x181   : > { %v1996_v38 = vpop.f32.mrf.mxu1 }
 0x182   : > { %v7157_v8 = vadd.f32 %v5436_v19, %v2140_v22  ;;  %v2139_v45 = vadd.f32 %v1996_v38, %v6969_v5  ;;  %v5439_v21 = vpop.f32.mrf.mxu0 }
 0x183   : > { %v5389_v36 = vpop.f32.mrf.mxu1 }
 0x184   : > { %v7160_v52 = vadd.f32 %v2388_v59, %v2139_v45  ;;  %v2142_v18 = vadd.f32 %v5389_v36, %v6977_v48  ;;  %v2398_v2 = vpop.f32.mrf.mxu0 }
 0x185   : > { %v2006_v17 = vpop.f32.mrf.mxu1 }
 0x186   : > { %v7163_v7 = vadd.f32 %v5439_v21, %v2142_v18  ;;  %v2141_v34 = vadd.f32 %v2006_v17, %v6983_v46  ;;  %v5442_v39 = vpop.f32.mrf.mxu0 }
 0x187   : > { %v5392_v9 = vpop.f32.mrf.mxu1 }
 0x188   : > { %v7166_v10 = vadd.f32 %v2398_v2, %v2141_v34  ;;  %v2144_v24 = vadd.f32 %v5392_v9, %v6991_v0  ;;  %v2408_v5 = vpop.f32.mrf.mxu0 }
 0x189   : > { %v2016_v60 = vpop.f32.mrf.mxu1 }
 0x18a   : > { %v7169_v61 = vadd.f32 %v5442_v39, %v2144_v24  ;;  %v2143_v32 = vadd.f32 %v2016_v60, %v6997_v54  ;;  %v5445_v48 = vpop.f32.mrf.mxu0 }
 0x18b   : > { %v5395_v50 = vpop.f32.mrf.mxu1 }
 0x18c   : > { %v7172_v35 = vadd.f32 %v2408_v5, %v2143_v32  ;;  %v2146_v27 = vadd.f32 %v5395_v50, %v7005_v4  ;;  %v2418_v46 = vpop.f32.mrf.mxu0 }
 0x18d   : > { %v2026_v37 = vpop.f32.mrf.mxu1 }
 0x18e   : > { %v7175_v58 = vadd.f32 %v5445_v48, %v2146_v27  ;;  %v2145_v29 = vadd.f32 %v2026_v37, %v7011_v51  ;;  %v5448_v0 = vpop.f32.mrf.mxu0 }
 0x18f   : > { %v5398_v1 = vpop.f32.mrf.mxu1 }
 0x190   : > { %v7178_v31 = vadd.f32 %v2418_v46, %v2145_v29  ;;  %v2148_v42 = vadd.f32 %v5398_v1, %v7019_v41  ;;  %v2428_v54 = vpop.f32.mrf.mxu0 }
 0x191   : > { %v2036_v13 = vpop.f32.mrf.mxu1 }
 0x192   : > { %v7181_v40 = vadd.f32 %v5448_v0, %v2148_v42  ;;  %v2147_v14 = vadd.f32 %v2036_v13, %v7025_v56  ;;  %v5451_v4 = vpop.f32.mrf.mxu0 }
 0x193   : > { %v5401_v19 = vpop.f32.mrf.mxu1 }
 0x194   : > { %v7184_v22 = vadd.f32 %v2428_v54, %v2147_v14  ;;  %v2150_v38 = vadd.f32 %v5401_v19, %v7033_v57  ;;  %v2438_v51 = vpop.f32.mrf.mxu0 }
 0x195   : > { %v2046_v59 = vpop.f32.mrf.mxu1 }
 0x196   : > { %v7187_v45 = vadd.f32 %v5451_v4, %v2150_v38  ;;  %v2149_v36 = vadd.f32 %v2046_v59, %v7039_v20  ;;  %v5454_v41 = vpop.f32.mrf.mxu0 }
 0x197   : > { %v5404_v21 = vpop.f32.mrf.mxu1 }
 0x198   : > { %v7190_v18 = vadd.f32 %v2438_v51, %v2149_v36  ;;  %v2152_v17 = vadd.f32 %v5404_v21, %v7047_v63  ;;  %v2448_v56 = vpop.f32.mrf.mxu0 }
 0x199   : > { %v2056_v2 = vpop.f32.mrf.mxu1 }
 0x19a   : > { %v7193_v34 = vadd.f32 %v5454_v41, %v2152_v17  ;;  %v2151_v9 = vadd.f32 %v2056_v2, %v7053_v23  ;;  %v5457_v57 = vpop.f32.mrf.mxu0 }
 0x19b   : > { %v5407_v39 = vpop.f32.mrf.mxu1 }
 0x19c   : > { %v7196_v24 = vadd.f32 %v2448_v56, %v2151_v9  ;;  %v2154_v60 = vadd.f32 %v5407_v39, %v7061_v28  ;;  %v2458_v20 = vpop.f32.mrf.mxu0 }
 0x19d   : > { %v2066_v5 = vpop.f32.mrf.mxu1 }
 0x19e   : > { %v7199_v32 = vadd.f32 %v5457_v57, %v2154_v60  ;;  %v2153_v50 = vadd.f32 %v2066_v5, %v7067_v33  ;;  %v5460_v63 = vpop.f32.mrf.mxu0 }
 0x19f   : > { %v5410_v48 = vpop.f32.mrf.mxu1 }
 0x1a0   : > { %7731 = vst [vmem:[#allocation14_spill] sm:$0xff] %v7199_v32  ;;  %v7202_v27 = vadd.f32 %v2458_v20, %v2153_v50  ;;  %v2156_v37 = vadd.f32 %v5410_v48, %v7075_v6  ;;  %v2468_v23 = vpop.f32.mrf.mxu0 }
 0x1a1   : > { %v2076_v46 = vpop.f32.mrf.mxu1 }
 0x1a2   : > { %7732 = vst [vmem:[#allocation15_spill] sm:$0xff] %v7202_v27  ;;  %v7205_v29 = vadd.f32 %v5460_v63, %v2156_v37  ;;  %v2155_v1 = vadd.f32 %v2076_v46, %v7081_v43  ;;  %v5463_v28 = vpop.f32.mrf.mxu0 }
 0x1a3   : > { %v5413_v0 = vpop.f32.mrf.mxu1 }
 0x1a4   : > { %7733 = vst [vmem:[#allocation16_spill] sm:$0xff] %v7205_v29  ;;  %v7208_v42 = vadd.f32 %v2468_v23, %v2155_v1  ;;  %v2158_v13 = vadd.f32 %v5413_v0, %v7090_v16  ;;  %v2478_v33 = vpop.f32.mrf.mxu0 }
 0x1a5   : > { %v2086_v54 = vpop.f32.mrf.mxu1 }
 0x1a6   : > { %7734 = vst [vmem:[#allocation17_spill] sm:$0xff] %v7208_v42  ;;  %v7211_v14 = vadd.f32 %v5463_v28, %v2158_v13  ;;  %v2157_v19 = vadd.f32 %v2086_v54, %v7096_v30  ;;  %v5466_v6 = vpop.f32.mrf.mxu0 }
 0x1a7   : > { %v5416_v4 = vpop.f32.mrf.mxu1 }
 0x1a8   : > { %7735 = vst [vmem:[#allocation18_spill] sm:$0xff] %v7211_v14  ;;  %v7214_v38 = vadd.f32 %v2478_v33, %v2157_v19  ;;  %v2160_v59 = vadd.f32 %v5416_v4, %v7103_v25  ;;  %v2488_v43 = vpop.f32.mrf.mxu0 }
 0x1a9   : > { %v2096_v51 = vpop.f32.mrf.mxu1 }
 0x1aa   : > { %7736 = vst [vmem:[#allocation19_spill] sm:$0xff] %v7214_v38  ;;  %v7217_v36 = vadd.f32 %v5466_v6, %v2160_v59  ;;  %v2159_v21 = vadd.f32 %v2096_v51, %v7108_v11  ;;  %v5469_v16 = vpop.f32.mrf.mxu0 }
 0x1ab   : > { %v5419_v41 = vpop.f32.mrf.mxu1 }
 0x1ac   : > { %7737 = vst [vmem:[#allocation20_spill] sm:$0xff] %v7217_v36  ;;  %v7220_v17 = vadd.f32 %v2488_v43, %v2159_v21  ;;  %v2162_v2 = vadd.f32 %v5419_v41, %v7117_v44  ;;  %v2498_v30 = vpop.f32.mrf.mxu0 }
 0x1ad   : > { %v2106_v56 = vpop.f32.mrf.mxu1 }
 0x1ae   : > { %7738 = vst [vmem:[#allocation21_spill] sm:$0xff] %v7220_v17  ;;  %v7223_v9 = vadd.f32 %v5469_v16, %v2162_v2  ;;  %v2161_v39 = vadd.f32 %v2106_v56, %v7124_v49  ;;  %v5472_v25 = vpop.f32.mrf.mxu0 }
 0x1af   : > { %v5422_v57 = vpop.f32.mrf.mxu1 }
 0x1b0   : > { %7739 = vst [vmem:[#allocation22_spill] sm:$0xff] %v7223_v9  ;;  %v7226_v60 = vadd.f32 %v2498_v30, %v2161_v39  ;;  %v2164_v5 = vadd.f32 %v5422_v57, %v7131_v15  ;;  %v2508_v11 = vpop.f32.mrf.mxu0 }
 0x1b1   : > { %v2116_v20 = vpop.f32.mrf.mxu1 }
 0x1b2   : > { %7740 = vst [vmem:[#allocation23_spill] sm:$0xff] %v7226_v60  ;;  %v7229_v50 = vadd.f32 %v5472_v25, %v2164_v5  ;;  %v2163_v48 = vadd.f32 %v2116_v20, %v7136_v47  ;;  %v5475_v44 = vpop.f32.mrf.mxu0 }
 0x1b3   : > { %v5425_v63 = vpop.f32.mrf.mxu1 }
 0x1b4   : > { %7741 = vst [vmem:[#allocation24_spill] sm:$0xff] %v7229_v50  ;;  %v7232_v37 = vadd.f32 %v2508_v11, %v2163_v48  ;;  %v2166_v46 = vadd.f32 %v5425_v63, %v7139_v53  ;;  %v2518_v49 = vpop.f32.mrf.mxu0 }
 0x1b5   : > { %v2126_v23 = vpop.f32.mrf.mxu1 }
 0x1b6   : > { %7742 = vst [vmem:[#allocation25_spill] sm:$0xff] %v7232_v37  ;;  %v7235_v1 = vadd.f32 %v5475_v44, %v2166_v46  ;;  %v2165_v0 = vadd.f32 %v2126_v23, %v7142_v62  ;;  %v7238_v15 = vpop.f32.mrf.mxu0 }
 0x1b7   : > { %v5480_v28 = vpop.f32.mrf.mxu1 }
 0x1b8   : > { %7743 = vst [vmem:[#allocation26_spill] sm:$0xff] %v7235_v1  ;;  %v7240_v13 = vadd.f32 %v2518_v49, %v2165_v0  ;;  %v7242_v33 = vpop.f32.mrf.mxu0 }
 0x1b9   : > { %v2760_v54 = vpop.f32.mrf.mxu1 }
 0x1ba   : > { %7744 = vst [vmem:[#allocation27_spill] sm:$0xff] %v7240_v13  ;;  %v7246_v19 = vpop.f32.mrf.mxu0 }
 0x1bb   : > { %v7244_v47 = vpop.f32.mrf.mxu1 }
 0x1bc   : > { %v7250_v53 = vpop.f32.mrf.mxu0 }
 0x1bd   : > { %v7248_v4 = vpop.f32.mrf.mxu1 }
 0x1be   : > { %v7254_v59 = vpop.f32.mrf.mxu0 }
 0x1bf   : > { %v7252_v6 = vpop.f32.mrf.mxu1 }
 0x1c0   : > { %v7258_v51 = vpop.f32.mrf.mxu0 }
 0x1c1   : > { %v7256_v62 = vpop.f32.mrf.mxu1 }
 0x1c2   : > { %v7262_v21 = vpop.f32.mrf.mxu0 }
 0x1c3   : > { %v7260_v43 = vpop.f32.mrf.mxu1 }
 0x1c4   : > { %v7266_v16 = vpop.f32.mrf.mxu0 }
 0x1c5   : > { %v7264_v41 = vpop.f32.mrf.mxu1 }
 0x1c6   : > { %v7270_v56 = vpop.f32.mrf.mxu0 }
 0x1c7   : > { %v7268_v2 = vpop.f32.mrf.mxu1 }
 0x1c8   : > { %v7274_v39 = vpop.f32.mrf.mxu0 }
 0x1c9   : > { %v7272_v30 = vpop.f32.mrf.mxu1 }
 0x1ca   : > { %v7278_v25 = vpop.f32.mrf.mxu0 }
 0x1cb   : > { %v7276_v57 = vpop.f32.mrf.mxu1 }
 0x1cc   : > { %v7282_v20 = vpop.f32.mrf.mxu0 }
 0x1cd   : > { %v7280_v5 = vpop.f32.mrf.mxu1 }
 0x1ce   : > { %v7286_v48 = vpop.f32.mrf.mxu0 }
 0x1cf   : > { %v7284_v11 = vpop.f32.mrf.mxu1 }
 0x1d0   : > { %v7290_v44 = vpop.f32.mrf.mxu0 }
 0x1d1   : > { %v7288_v63 = vpop.f32.mrf.mxu1 }
 0x1d2   : > { %v7294_v23 = vpop.f32.mrf.mxu0 }
 0x1d3   : > { %v7292_v46 = vpop.f32.mrf.mxu1 }
 0x1d4   : > { %v7298_v0 = vpop.f32.mrf.mxu0 }
 0x1d5   : > { %v7296_v49 = vpop.f32.mrf.mxu1 }
 0x1d6   : > { %v7302_v1 = vpop.f32.mrf.mxu0 }
 0x1d7   : > { %v7300_v13 = vpop.f32.mrf.mxu1 }
 0x1d8   : > { %v7306_v50 = vpop.f32.mrf.mxu0 }
 0x1d9   : > { %v7304_v37 = vpop.f32.mrf.mxu1  ;;  %7745 = vst [vmem:[#allocation28_spill] sm:$0xff] %v7306_v50 }
 0x1da   : > { %v7310_v9 = vpop.f32.mrf.mxu0 }
 0x1db   : > { %v7308_v60 = vpop.f32.mrf.mxu1  ;;  %7746 = vst [vmem:[#allocation29_spill] sm:$0xff] %v7310_v9 }
 0x1dc   : > { %v7314_v36 = vpop.f32.mrf.mxu0 }
 0x1dd   : > { %v7312_v17 = vpop.f32.mrf.mxu1  ;;  %7748 = vst [vmem:[#allocation32_spill] sm:$0xff] %v7314_v36 }
 0x1de   : > { %7747 = vst [vmem:[#allocation30_spill] sm:$0xff] %v7312_v17  ;;  %v7318_v14 = vpop.f32.mrf.mxu0 }
 0x1df   : > { %v7316_v38 = vpop.f32.mrf.mxu1  ;;  %7750 = vst [vmem:[#allocation31_spill] sm:$0xff] %v7318_v14 }
 0x1e0   : > { %7749 = vst [vmem:[#allocation33_spill] sm:$0xff] %v7316_v38  ;;  %v7322_v29 = vpop.f32.mrf.mxu0 }
 0x1e1   : > { %v7320_v42 = vpop.f32.mrf.mxu1  ;;  %7752 = vst [vmem:[#allocation5_spill] sm:$0xff] %v7322_v29 }
 0x1e2   : > { %7751 = vst [vmem:[#allocation4_spill] sm:$0xff] %v7320_v42  ;;  %v7326_v32 = vpop.f32.mrf.mxu0 }
 0x1e3   : > { %v7324_v27 = vpop.f32.mrf.mxu1  ;;  %7754 = vst [vmem:[#allocation34_spill] sm:$0xff] %v7326_v32 }
 0x1e4   : > { %7753 = vst [vmem:[#allocation6_spill] sm:$0xff] %v7324_v27  ;;  %v7330_v9 = vpop.f32.mrf.mxu0 }
 0x1e5   : > { %v7328_v50 = vpop.f32.mrf.mxu1  ;;  %7756 = vst [vmem:[#allocation7_spill] sm:$0xff] %v7330_v9 }
 0x1e6   : > { %7755 = vst [vmem:[#allocation8_spill] sm:$0xff] %v7328_v50  ;;  %v7334_v36 = vpop.f32.mrf.mxu0 }
 0x1e7   : > { %v7332_v17 = vpop.f32.mrf.mxu1  ;;  %7758 = vst [vmem:[#allocation10_spill] sm:$0xff] %v7334_v36 }
 0x1e8   : > { %7757 = vst [vmem:[#allocation3_spill] sm:$0xff] %v7332_v17  ;;  %v7338_v14 = vpop.f32.mrf.mxu0 }
 0x1e9   : > { %v7336_v38 = vpop.f32.mrf.mxu1  ;;  %7760 = vst [vmem:[#allocation11_spill] sm:$0xff] %v7338_v14 }
 0x1ea   : > { %7759 = vst [vmem:[#allocation9_spill] sm:$0xff] %v7336_v38  ;;  %v7342_v29 = vpop.f32.mrf.mxu0  ;;  %v2920_v38 = vadd.f32 %v5480_v28, %v7145_v12  ;;  %v2921_v28 = vadd.f32 %v7248_v4, %v7154_v26 }
 0x1eb   : > { %v7340_v42 = vpop.f32.mrf.mxu1  ;;  %7762 = vst [vmem:[#allocation13_spill] sm:$0xff] %v7342_v29  ;;  %v2919_v29 = vadd.f32 %v2760_v54, %v7148_v55  ;;  %v2924_v55 = vadd.f32 %v7252_v6, %v7157_v8  ;;  %v7379_v54 = vld [vmem:[%s7583_s2] ss:$0 sm:$0xff] }
 0x1ec   : > { %7761 = vst [vmem:[#allocation12_spill] sm:$0xff] %v7340_v42  ;;  %v7346_v32 = vpop.f32.mrf.mxu0 }
 0x1ed   : > { %v7344_v27 = vpop.f32.mrf.mxu1  ;;  %7764 = vst [vmem:[#allocation36_spill] sm:$0xff] %v7346_v32  ;;  %v3312_v12 = vadd.f32 %v7242_v33, %v2919_v29  ;;  %v2923_v29 = vadd.f32 %v7256_v62, %v7160_v52  ;;  %v3317_v6 = vadd.f32 %v7254_v59, %v2924_v55  ;;  %v2925_v59 = vadd.f32 %v7264_v41, %v7166_v10 }
 0x1ee   : > { %7763 = vst [vmem:[#allocation35_spill] sm:$0xff] %v7344_v27  ;;  %v7350_v9 = vpop.f32.mrf.mxu0 }
 0x1ef   : > { %v7348_v50 = vpop.f32.mrf.mxu1  ;;  %7766 = vst [vmem:[#allocation38_spill] sm:$0xff] %v7350_v9  ;;  %v2922_v9 = vadd.f32 %v7244_v47, %v7151_v3 }
 0x1f0   : > { %7765 = vst [vmem:[#allocation37_spill] sm:$0xff] %v7348_v50  ;;  %v7354_v36 = vpop.f32.mrf.mxu0  ;;  %v3313_v50 = vadd.f32 %v7238_v15, %v2920_v38 }
 0x1f1   : > { %v7352_v17 = vpop.f32.mrf.mxu1  ;;  %7768 = vst [vmem:[#allocation40_spill] sm:$0xff] %v7354_v36  ;;  %v3315_v3 = vadd.f32 %v7246_v19, %v2922_v9 }
 0x1f2   : > { %7767 = vst [vmem:[#allocation39_spill] sm:$0xff] %v7352_v17  ;;  %v7360_v42 = vpop.f32.mrf.mxu0 }
 0x1f3   : > { %v7358_v14 = vpop.f32.mrf.mxu1  ;;  %7769 = vst [vmem:[#allocation41_spill] sm:$0xff] %v7360_v42 }
 0x1f4   : > { %v7365_v32 = vpop.f32.mrf.mxu0 }
 0x1f5   : > { %v7363_v27 = vpop.f32.mrf.mxu1  ;;  %7771 = vst [vmem:[#allocation43_spill] sm:$0xff] %v7365_v32 }
 0x1f6   : > { %7770 = vst [vmem:[#allocation42_spill] sm:$0xff] %v7363_v27  ;;  %v5630_v17 = vpop.f32.mrf.mxu0  ;;  %v2926_v27 = vadd.f32 %v7260_v43, %v7163_v7 }
 0x1f7   : > { %v5580_v36 = vpop.f32.mrf.mxu1 }
 0x1f8   : > { %v3705_v42 = vadd.f32 %v5580_v36, %v3313_v50  ;;  %v3937_v15 = vpop.f32.mrf.mxu0  ;;  %v3314_v50 = vadd.f32 %v7250_v53, %v2921_v28  ;;  %v3316_v53 = vadd.f32 %v7258_v51, %v2923_v29 }
 0x1f9   : > { %v3545_v38 = vpop.f32.mrf.mxu1 }
 0x1fa   : > { %v4097_v47 = vadd.f32 %v5630_v17, %v3705_v42  ;;  %v3704_v32 = vadd.f32 %v3545_v38, %v3312_v12  ;;  %v5633_v36 = vpop.f32.mrf.mxu0  ;;  %v3319_v38 = vadd.f32 %v7262_v21, %v2926_v27 }
 0x1fb   : > { %v5583_v26 = vpop.f32.mrf.mxu1 }
 0x1fc   : > { %v4136_v8 = vadd.f32 %v7379_v54, %v4097_v47  ;;  %v4096_v33 = vadd.f32 %v3937_v15, %v3704_v32  ;;  %v3707_v4 = vadd.f32 %v5583_v26, %v3315_v3  ;;  %v3947_v42 = vpop.f32.mrf.mxu0  ;;  %v2928_v15 = vadd.f32 %v7268_v2, %v7169_v61 }
 0x1fd   : > { %v3555_v52 = vpop.f32.mrf.mxu1  ;;  %v3318_v26 = vadd.f32 %v7266_v16, %v2925_v59 }
 0x1fe   : > { %v4168_v17 = vmax.f32 %v4136_v8, 0.0  ;;  %v4135_v9 = vadd.f32 %v7379_v54, %v4096_v33  ;;  %v4099_v19 = vadd.f32 %v5633_v36, %v3707_v4  ;;  %v3706_v32 = vadd.f32 %v3555_v52, %v3314_v50  ;;  %v5636_v62 = vpop.f32.mrf.mxu0 }
 0x1ff   : > { %v5586_v7 = vpop.f32.mrf.mxu1  ;;  %v2927_v36 = vadd.f32 %v7272_v30, %v7172_v35  ;;  %v3321_v33 = vadd.f32 %v7270_v56, %v2928_v15  ;;  %v2930_v4 = vadd.f32 %v7276_v57, %v7175_v58 }
 0x200   : > { %4200 = vst.msk [vmem:[%s7392_s5 + $0x8] sm:$0xff] %vm732_vm1, %v4168_v17  ;;  %v4167_v43 = vmax.f32 %v4135_v9, 0.0  ;;  %v4138_v12 = vadd.f32 %v7379_v54, %v4099_v19  ;;  %v4098_v28 = vadd.f32 %v3947_v42, %v3706_v32  ;;  %v3709_v55 = vadd.f32 %v5586_v7, %v3317_v6  ;;  %v3957_v51 = vpop.f32.mrf.mxu0 }
 0x201   : > { %v3565_v3 = vpop.f32.mrf.mxu1  ;;  %v3320_v17 = vadd.f32 %v7274_v39, %v2927_v36  ;;  %v2929_v9 = vadd.f32 %v7280_v5, %v7178_v31  ;;  %v3323_v59 = vadd.f32 %v7278_v25, %v2930_v4  ;;  %v2932_v7 = vadd.f32 %v7284_v11, %v7181_v40 }
 0x202   : > { %4199 = vst.msk [vmem:[%s7392_s5] sm:$0xff] %vm732_vm1, %v4167_v43  ;;  %v4170_v10 = vmax.f32 %v4138_v12, 0.0  ;;  %v4137_v41 = vadd.f32 %v7379_v54, %v4098_v28  ;;  %v4101_v47 = vadd.f32 %v5636_v62, %v3709_v55  ;;  %v3708_v29 = vadd.f32 %v3565_v3, %v3316_v53  ;;  %v5639_v27 = vpop.f32.mrf.mxu0 }
 0x203   : > { %v5589_v50 = vpop.f32.mrf.mxu1  ;;  %v3322_v28 = vadd.f32 %v7282_v20, %v2929_v9  ;;  %v2931_v55 = vadd.f32 %v7288_v63, %v7184_v22  ;;  %v2933_v36 = vadd.f32 %v7296_v49, %v7190_v18 }
 0x204   : > { %4202 = vst.msk [vmem:[%s7392_s5 + $0x18] sm:$0xff] %vm732_vm1, %v4170_v10  ;;  %v4169_v61 = vmax.f32 %v4137_v41, 0.0  ;;  %v4140_v21 = vadd.f32 %v7379_v54, %v4101_v47  ;;  %v4100_v2 = vadd.f32 %v3957_v51, %v3708_v29  ;;  %v3711_v8 = vadd.f32 %v5589_v50, %v3319_v38  ;;  %v3967_v16 = vpop.f32.mrf.mxu0 }
 0x205   : > { %v3575_v6 = vpop.f32.mrf.mxu1  ;;  %v3325_v51 = vadd.f32 %v7286_v48, %v2932_v7  ;;  %v2934_v10 = vadd.f32 %v7292_v46, %v7187_v45 }
 0x206   : > { %4201 = vst.msk [vmem:[%s7392_s5 + $0x10] sm:$0xff] %vm732_vm1, %v4169_v61  ;;  %v4172_v35 = vmax.f32 %v4140_v21, 0.0  ;;  %v4139_v30 = vadd.f32 %v7379_v54, %v4100_v2  ;;  %v4103_v52 = vadd.f32 %v5639_v27, %v3711_v8  ;;  %v3710_v42 = vadd.f32 %v3575_v6, %v3318_v26  ;;  %v5642_v56 = vpop.f32.mrf.mxu0 }
 0x207   : > { %v5592_v19 = vpop.f32.mrf.mxu1  ;;  %v3324_v26 = vadd.f32 %v7290_v44, %v2931_v55  ;;  %v3327_v21 = vadd.f32 %v7294_v23, %v2934_v10  ;;  %v2936_v2 = vadd.f32 %v7300_v13, %v7193_v34  ;;  %v3326_v6 = vadd.f32 %v7298_v0, %v2933_v36  ;;  %v7778_v55 = vld [vmem:[#allocation33_spill] sm:$0xff]  ;;  %v7779_v10 = vld [vmem:[#allocation32_spill] sm:$0xff] }
 0x208   : > { %4204 = vst.msk [vmem:[%s7392_s5 + $0x28] sm:$0xff] %vm732_vm1, %v4172_v35  ;;  %v4171_v58 = vmax.f32 %v4139_v30, 0.0  ;;  %v4142_v57 = vadd.f32 %v7379_v54, %v4103_v52  ;;  %v4102_v32 = vadd.f32 %v3967_v16, %v3710_v42  ;;  %v3713_v53 = vadd.f32 %v5592_v19, %v3321_v33  ;;  %v3977_v39 = vpop.f32.mrf.mxu0 }
 0x209   : > { %v3585_v62 = vpop.f32.mrf.mxu1  ;;  %v2935_v16 = vadd.f32 %v7304_v37, %v7196_v24  ;;  %v3329_v42 = vadd.f32 %v7302_v1, %v2936_v2 }
 0x20a   : > { %4203 = vst.msk [vmem:[%s7392_s5 + $0x20] sm:$0xff] %vm732_vm1, %v4171_v58  ;;  %v4174_v31 = vmax.f32 %v4142_v57, 0.0  ;;  %v4141_v5 = vadd.f32 %v7379_v54, %v4102_v32  ;;  %v4105_v43 = vadd.f32 %v5642_v56, %v3713_v53  ;;  %v3712_v12 = vadd.f32 %v3585_v62, %v3320_v17  ;;  %v5645_v25 = vpop.f32.mrf.mxu0  ;;  %v7772_v17 = vld [vmem:[#allocation14_spill] sm:$0xff]  ;;  %v7773_v57 = vld [vmem:[#allocation28_spill] sm:$0xff]  ;;  %v7774_v53 = vld [vmem:[#allocation15_spill] sm:$0xff] }
 0x20b   : > { %v5595_v38 = vpop.f32.mrf.mxu1  ;;  %v2938_v9 = vadd.f32 %v7308_v60, %v7772_v17  ;;  %v3328_v32 = vadd.f32 %v7773_v57, %v2935_v16  ;;  %v7786_v16 = vld [vmem:[#allocation19_spill] sm:$0xff] }
 0x20c   : > { %4206 = vst.msk [vmem:[%s7392_s5 + $0x38] sm:$0xff] %vm732_vm1, %v4174_v31  ;;  %v4173_v40 = vmax.f32 %v4141_v5, 0.0  ;;  %v4144_v11 = vadd.f32 %v7379_v54, %v4105_v43  ;;  %v4104_v15 = vadd.f32 %v3977_v39, %v3712_v12  ;;  %v3715_v3 = vadd.f32 %v5595_v38, %v3323_v59  ;;  %v3987_v20 = vpop.f32.mrf.mxu0  ;;  %v7775_v59 = vld [vmem:[#allocation30_spill] sm:$0xff]  ;;  %v7776_v43 = vld [vmem:[#allocation29_spill] sm:$0xff] }
 0x20d   : > { %v3595_v41 = vpop.f32.mrf.mxu1  ;;  %v2937_v7 = vadd.f32 %v7775_v59, %v7774_v53  ;;  %v3331_v12 = vadd.f32 %v7776_v43, %v2938_v9  ;;  %v7788_v9 = vld [vmem:[#allocation34_spill] sm:$0xff] }
 0x20e   : > { %4205 = vst.msk [vmem:[%s7392_s5 + $0x30] sm:$0xff] %vm732_vm1, %v4173_v40  ;;  %v4176_v22 = vmax.f32 %v4144_v11, 0.0  ;;  %v4143_v63 = vadd.f32 %v7379_v54, %v4104_v15  ;;  %v4107_v47 = vadd.f32 %v5645_v25, %v3715_v3  ;;  %v3714_v29 = vadd.f32 %v3595_v41, %v3322_v28  ;;  %v5648_v48 = vpop.f32.mrf.mxu0  ;;  %v7777_v28 = vld [vmem:[#allocation16_spill] sm:$0xff] }
 0x20f   : > { %v5598_v50 = vpop.f32.mrf.mxu1  ;;  %v2940_v38 = vadd.f32 %v7778_v55, %v7777_v28  ;;  %v3330_v41 = vadd.f32 %v7779_v10, %v2937_v7  ;;  %v7791_v7 = vld [vmem:[#allocation7_spill] sm:$0xff] }
 0x210   : > { %4208 = vst.msk [vmem:[%s7392_s5 + $0x48] sm:$0xff] %vm732_vm1, %v4176_v22  ;;  %v4175_v45 = vmax.f32 %v4143_v63, 0.0  ;;  %v4146_v46 = vadd.f32 %v7379_v54, %v4107_v47  ;;  %v4106_v27 = vadd.f32 %v3987_v20, %v3714_v29  ;;  %v3717_v61 = vadd.f32 %v5598_v50, %v3325_v51  ;;  %v3997_v44 = vpop.f32.mrf.mxu0  ;;  %v7780_v20 = vld [vmem:[#allocation17_spill] sm:$0xff]  ;;  %v7781_v22 = vld [vmem:[#allocation4_spill] sm:$0xff] }
 0x211   : > { %v3605_v8 = vpop.f32.mrf.mxu1  ;;  %v2939_v63 = vadd.f32 %v7781_v22, %v7780_v20 }
 0x212   : > { %4207 = vst.msk [vmem:[%s7392_s5 + $0x40] sm:$0xff] %vm732_vm1, %v4175_v45  ;;  %v4178_v18 = vmax.f32 %v4146_v46, 0.0  ;;  %v4145_v49 = vadd.f32 %v7379_v54, %v4106_v27  ;;  %v4109_v33 = vadd.f32 %v5648_v48, %v3717_v61  ;;  %v3716_v4 = vadd.f32 %v3605_v8, %v3324_v26  ;;  %v5651_v23 = vpop.f32.mrf.mxu0  ;;  %v7782_v45 = vld [vmem:[#allocation31_spill] sm:$0xff]  ;;  %v7783_v27 = vld [vmem:[#allocation18_spill] sm:$0xff] }
 0x213   : > { %v5601_v35 = vpop.f32.mrf.mxu1  ;;  %v3333_v46 = vadd.f32 %v7782_v45, %v2940_v38  ;;  %v7784_v61 = vld [vmem:[#allocation6_spill] sm:$0xff] }
 0x214   : > { %4210 = vst.msk [vmem:[%s7392_s5 + $0x58] sm:$0xff] %vm732_vm1, %v4178_v18  ;;  %v4177_v34 = vmax.f32 %v4145_v49, 0.0  ;;  %v4148_v13 = vadd.f32 %v7379_v54, %v4109_v33  ;;  %v4108_v30 = vadd.f32 %v3997_v44, %v3716_v4  ;;  %v3719_v52 = vadd.f32 %v5601_v35, %v3327_v21  ;;  %v4007_v0 = vpop.f32.mrf.mxu0  ;;  %v7785_v4 = vld [vmem:[#allocation5_spill] sm:$0xff]  ;;  %v7787_v35 = vld [vmem:[#allocation8_spill] sm:$0xff]  ;;  %v7794_v38 = vld [vmem:[#allocation10_spill] sm:$0xff] }
 0x215   : > { %v3615_v19 = vpop.f32.mrf.mxu1  ;;  %v2942_v21 = vadd.f32 %v7784_v61, %v7783_v27 }
 0x216   : > { %4209 = vst.msk [vmem:[%s7392_s5 + $0x50] sm:$0xff] %vm732_vm1, %v4177_v34  ;;  %v4180_v24 = vmax.f32 %v4148_v13, 0.0  ;;  %v4147_v37 = vadd.f32 %v7379_v54, %v4108_v30  ;;  %v4111_v56 = vadd.f32 %v5651_v23, %v3719_v52  ;;  %v3718_v58 = vadd.f32 %v3615_v19, %v3326_v6  ;;  %v5654_v1 = vpop.f32.mrf.mxu0 }
 0x217   : > { %v5604_v62 = vpop.f32.mrf.mxu1  ;;  %v3332_v6 = vadd.f32 %v7785_v4, %v2939_v63  ;;  %v2941_v23 = vadd.f32 %v7787_v35, %v7786_v16  ;;  %v3335_v19 = vadd.f32 %v7788_v9, %v2942_v21  ;;  %v7797_v63 = vld [vmem:[#allocation11_spill] sm:$0xff]  ;;  %v7800_v21 = vld [vmem:[#allocation13_spill] sm:$0xff] }
 0x218   : > { %4212 = vst.msk [vmem:[%s7392_s5 + $0x68] sm:$0xff] %vm732_vm1, %v4180_v24  ;;  %v4179_v60 = vmax.f32 %v4147_v37, 0.0  ;;  %v4150_v39 = vadd.f32 %v7379_v54, %v4111_v56  ;;  %v4110_v31 = vadd.f32 %v4007_v0, %v3718_v58  ;;  %v3721_v5 = vadd.f32 %v5604_v62, %v3329_v42  ;;  %v4017_v40 = vpop.f32.mrf.mxu0  ;;  %v7789_v0 = vld [vmem:[#allocation20_spill] sm:$0xff]  ;;  %v7790_v24 = vld [vmem:[#allocation3_spill] sm:$0xff] }
 0x219   : > { %v3625_v25 = vpop.f32.mrf.mxu1  ;;  %v2944_v37 = vadd.f32 %v7790_v24, %v7789_v0  ;;  %v3334_v62 = vadd.f32 %v7791_v7, %v2941_v23  ;;  %v7803_v23 = vld [vmem:[#allocation36_spill] sm:$0xff] }
 0x21a   : > { %4211 = vst.msk [vmem:[%s7392_s5 + $0x60] sm:$0xff] %vm732_vm1, %v4179_v60  ;;  %v4182_v11 = vmax.f32 %v4150_v39, 0.0  ;;  %v4149_v15 = vadd.f32 %v7379_v54, %v4110_v31  ;;  %v4113_v3 = vadd.f32 %v5654_v1, %v3721_v5  ;;  %v3720_v51 = vadd.f32 %v3625_v25, %v3328_v32  ;;  %v5657_v29 = vpop.f32.mrf.mxu0  ;;  %v7792_v1 = vld [vmem:[#allocation21_spill] sm:$0xff] }
 0x21b   : > { %v5607_v47 = vpop.f32.mrf.mxu1  ;;  %v7793_v60 = vld [vmem:[#allocation9_spill] sm:$0xff]  ;;  %v3337_v25 = vadd.f32 %v7794_v38, %v2944_v37  ;;  %v7806_v37 = vld [vmem:[#allocation38_spill] sm:$0xff] }
 0x21c   : > { %4214 = vst.msk [vmem:[%s7392_s5 + $0x78] sm:$0xff] %vm732_vm1, %v4182_v11  ;;  %v4181_v26 = vmax.f32 %v4149_v15, 0.0  ;;  %v4152_v36 = vadd.f32 %v7379_v54, %v4113_v3  ;;  %v4112_v50 = vadd.f32 %v4017_v40, %v3720_v51  ;;  %v3723_v48 = vadd.f32 %v5607_v47, %v3331_v12  ;;  %v4027_v8 = vpop.f32.mrf.mxu0  ;;  %v7795_v40 = vld [vmem:[#allocation22_spill] sm:$0xff]  ;;  %v7796_v11 = vld [vmem:[#allocation12_spill] sm:$0xff] }
 0x21d   : > { %v3635_v2 = vpop.f32.mrf.mxu1  ;;  %v2943_v39 = vadd.f32 %v7793_v60, %v7792_v1  ;;  %v2946_v15 = vadd.f32 %v7796_v11, %v7795_v40  ;;  %v7808_v60 = vld [vmem:[#allocation40_spill] sm:$0xff]  ;;  %v7811_v40 = vld [vmem:[#allocation41_spill] sm:$0xff] }
 0x21e   : > { %4213 = vst.msk [vmem:[%s7392_s5 + $0x70] sm:$0xff] %vm732_vm1, %v4181_v26  ;;  %v4184_v44 = vmax.f32 %v4152_v36, 0.0  ;;  %v4151_v18 = vadd.f32 %v7379_v54, %v4112_v50  ;;  %v4115_v49 = vadd.f32 %v5657_v29, %v3723_v48  ;;  %v3722_v33 = vadd.f32 %v3635_v2, %v3330_v41  ;;  %v5660_v13 = vpop.f32.mrf.mxu0  ;;  %v7798_v29 = vld [vmem:[#allocation23_spill] sm:$0xff] }
 0x21f   : > { %v5610_v34 = vpop.f32.mrf.mxu1  ;;  %v3336_v47 = vadd.f32 %v7797_v63, %v2943_v39  ;;  %v7799_v26 = vld [vmem:[#allocation35_spill] sm:$0xff]  ;;  %v3339_v2 = vadd.f32 %v7800_v21, %v2946_v15 }
 0x220   : > { %4216 = vst.msk [vmem:[%s7392_s5 + $0x88] sm:$0xff] %vm732_vm1, %v4184_v44  ;;  %v4183_v30 = vmax.f32 %v4151_v18, 0.0  ;;  %v4154_v52 = vadd.f32 %v7379_v54, %v4115_v49  ;;  %v4114_v42 = vadd.f32 %v4027_v8, %v3722_v33  ;;  %v3725_v17 = vadd.f32 %v5610_v34, %v3333_v46  ;;  %v4037_v58 = vpop.f32.mrf.mxu0  ;;  %v7801_v8 = vld [vmem:[#allocation24_spill] sm:$0xff]  ;;  %v7802_v44 = vld [vmem:[#allocation37_spill] sm:$0xff] }
 0x221   : > { %v3645_v56 = vpop.f32.mrf.mxu1  ;;  %v2945_v36 = vadd.f32 %v7799_v26, %v7798_v29  ;;  %v2948_v18 = vadd.f32 %v7802_v44, %v7801_v8 }
 0x222   : > { %4215 = vst.msk [vmem:[%s7392_s5 + $0x80] sm:$0xff] %vm732_vm1, %v4183_v30  ;;  %v4186_v57 = vmax.f32 %v4154_v52, 0.0  ;;  %v4153_v32 = vadd.f32 %v7379_v54, %v4114_v42  ;;  %v4117_v53 = vadd.f32 %v5660_v13, %v3725_v17  ;;  %v3724_v59 = vadd.f32 %v3645_v56, %v3332_v6  ;;  %v5663_v5 = vpop.f32.mrf.mxu0  ;;  %v7804_v13 = vld [vmem:[#allocation25_spill] sm:$0xff]  ;;  %v7805_v30 = vld [vmem:[#allocation39_spill] sm:$0xff] }
 0x223   : > { %v5613_v31 = vpop.f32.mrf.mxu1  ;;  %v3338_v34 = vadd.f32 %v7803_v23, %v2945_v36  ;;  %v2947_v52 = vadd.f32 %v7805_v30, %v7804_v13  ;;  %v3341_v56 = vadd.f32 %v7806_v37, %v2948_v18 }
 0x224   : > { %4218 = vst.msk [vmem:[%s7392_s5 + $0x98] sm:$0xff] %vm732_vm1, %v4186_v57  ;;  %v4185_v43 = vmax.f32 %v4153_v32, 0.0  ;;  %v4156_v12 = vadd.f32 %v7379_v54, %v4117_v53  ;;  %v4116_v28 = vadd.f32 %v4037_v58, %v3724_v59  ;;  %v3727_v55 = vadd.f32 %v5613_v31, %v3335_v19  ;;  %v4047_v51 = vpop.f32.mrf.mxu0  ;;  %v7807_v58 = vld [vmem:[#allocation26_spill] sm:$0xff]  ;;  %v7809_v31 = vld [vmem:[#allocation27_spill] sm:$0xff] }
 0x225   : > { %v3655_v3 = vpop.f32.mrf.mxu1  ;;  %v2950_v57 = vadd.f32 %v7358_v14, %v7807_v58  ;;  %v3340_v39 = vadd.f32 %v7808_v60, %v2947_v52 }
 0x226   : > { %4217 = vst.msk [vmem:[%s7392_s5 + $0x90] sm:$0xff] %vm732_vm1, %v4185_v43  ;;  %v4188_v10 = vmax.f32 %v4156_v12, 0.0  ;;  %v4155_v41 = vadd.f32 %v7379_v54, %v4116_v28  ;;  %v4119_v20 = vadd.f32 %v5663_v5, %v3727_v55  ;;  %v3726_v22 = vadd.f32 %v3655_v3, %v3334_v62  ;;  %v5666_v48 = vpop.f32.mrf.mxu0  ;;  %v7810_v5 = vld [vmem:[#allocation42_spill] sm:$0xff] }
 0x227   : > { %v5616_v50 = vpop.f32.mrf.mxu1  ;;  %v2949_v43 = vadd.f32 %v7810_v5, %v7809_v31  ;;  %v3343_v11 = vadd.f32 %v7811_v40, %v2950_v57 }
 0x228   : > { %4220 = vst.msk [vmem:[%s7392_s5 + $0xa8] sm:$0xff] %vm732_vm1, %v4188_v10  ;;  %v4187_v45 = vmax.f32 %v4155_v41, 0.0  ;;  %v4158_v46 = vadd.f32 %v7379_v54, %v4119_v20  ;;  %v4118_v27 = vadd.f32 %v4047_v51, %v3726_v22  ;;  %v3729_v61 = vadd.f32 %v5616_v50, %v3337_v25  ;;  %v4057_v33 = vpop.f32.mrf.mxu0  ;;  %v7812_v22 = vld [vmem:[#allocation43_spill] sm:$0xff] }
 0x229   : > { %v3665_v49 = vpop.f32.mrf.mxu1  ;;  %v3342_v63 = vadd.f32 %v7812_v22, %v2949_v43 }
 0x22a   : > { %4219 = vst.msk [vmem:[%s7392_s5 + $0xa0] sm:$0xff] %vm732_vm1, %v4187_v45  ;;  %v4190_v4 = vmax.f32 %v4158_v46, 0.0  ;;  %v4157_v6 = vadd.f32 %v7379_v54, %v4118_v27  ;;  %v4121_v16 = vadd.f32 %v5666_v48, %v3729_v61  ;;  %v3728_v35 = vadd.f32 %v3665_v49, %v3336_v47  ;;  %v5669_v17 = vpop.f32.mrf.mxu0 }
 0x22b   : > { %v5619_v42 = vpop.f32.mrf.mxu1 }
 0x22c   : > { %4222 = vst.msk [vmem:[%s7392_s5 + $0xb8] sm:$0xff] %vm732_vm1, %v4190_v4  ;;  %v4189_v9 = vmax.f32 %v4157_v6, 0.0  ;;  %v4160_v19 = vadd.f32 %v7379_v54, %v4121_v16  ;;  %v4120_v0 = vadd.f32 %v4057_v33, %v3728_v35  ;;  %v3731_v24 = vadd.f32 %v5619_v42, %v3339_v2  ;;  %v4067_v53 = vpop.f32.mrf.mxu0 }
 0x22d   : > { %v3675_v32 = vpop.f32.mrf.mxu1 }
 0x22e   : > { %4221 = vst.msk [vmem:[%s7392_s5 + $0xb0] sm:$0xff] %vm732_vm1, %v4189_v9  ;;  %v4192_v59 = vmax.f32 %v4160_v19, 0.0  ;;  %v4159_v7 = vadd.f32 %v7379_v54, %v4120_v0  ;;  %v4123_v62 = vadd.f32 %v5669_v17, %v3731_v24  ;;  %v3730_v1 = vadd.f32 %v3675_v32, %v3338_v34  ;;  %v5672_v28 = vpop.f32.mrf.mxu0 }
 0x22f   : > { %v5622_v12 = vpop.f32.mrf.mxu1 }
 0x230   : > { %4224 = vst.msk [vmem:[%s7392_s5 + $0xc8] sm:$0xff] %vm732_vm1, %v4192_v59  ;;  %v4191_v14 = vmax.f32 %v4159_v7, 0.0  ;;  %v4162_v55 = vadd.f32 %v7379_v54, %v4123_v62  ;;  %v4122_v38 = vadd.f32 %v4067_v53, %v3730_v1  ;;  %v3733_v25 = vadd.f32 %v5622_v12, %v3341_v56  ;;  %v4077_v3 = vpop.f32.mrf.mxu0 }
 0x231   : > { %v3685_v15 = vpop.f32.mrf.mxu1 }
 0x232   : > { %4223 = vst.msk [vmem:[%s7392_s5 + $0xc0] sm:$0xff] %vm732_vm1, %v4191_v14  ;;  %v4194_v51 = vmax.f32 %v4162_v55, 0.0  ;;  %v4161_v10 = vadd.f32 %v7379_v54, %v4122_v38  ;;  %v4125_v41 = vadd.f32 %v5672_v28, %v3733_v25  ;;  %v3732_v20 = vadd.f32 %v3685_v15, %v3340_v39  ;;  %v5675_v29 = vpop.f32.mrf.mxu0 }
 0x233   : > { %v5625_v47 = vpop.f32.mrf.mxu1 }
 0x234   : > { %4226 = vst.msk [vmem:[%s7392_s5 + $0xd8] sm:$0xff] %vm732_vm1, %v4194_v51  ;;  %v4193_v26 = vmax.f32 %v4161_v10, 0.0  ;;  %v4164_v36 = vadd.f32 %v7379_v54, %v4125_v41  ;;  %v4124_v50 = vadd.f32 %v4077_v3, %v3732_v20  ;;  %v3735_v48 = vadd.f32 %v5625_v47, %v3343_v11  ;;  %v4087_v2 = vpop.f32.mrf.mxu0 }
 0x235   : > { %v3695_v45 = vpop.f32.mrf.mxu1 }
 0x236   : > { %4225 = vst.msk [vmem:[%s7392_s5 + $0xd0] sm:$0xff] %vm732_vm1, %v4193_v26  ;;  %v4196_v46 = vmax.f32 %v4164_v36, 0.0  ;;  %v4163_v27 = vadd.f32 %v7379_v54, %v4124_v50  ;;  %v4127_v61 = vadd.f32 %v5675_v29, %v3735_v48  ;;  %v3734_v21 = vadd.f32 %v3695_v45, %v3342_v63 }
 0x238   : > { %4228 = vst.msk [vmem:[%s7392_s5 + $0xe8] sm:$0xff] %vm732_vm1, %v4196_v46  ;;  %v4195_v8 = vmax.f32 %v4163_v27, 0.0  ;;  %v4166_v44 = vadd.f32 %v7379_v54, %v4127_v61  ;;  %v4126_v18 = vadd.f32 %v4087_v2, %v3734_v21 }
 0x23a   : > { %4227 = vst.msk [vmem:[%s7392_s5 + $0xe0] sm:$0xff] %vm732_vm1, %v4195_v8  ;;  %v4198_v49 = vmax.f32 %v4166_v44, 0.0  ;;  %v4165_v33 = vadd.f32 %v7379_v54, %v4126_v18 }
 0x23c   : > { %4230 = vst.msk [vmem:[%s7392_s5 + $0xf8] sm:$0xff] %vm732_vm1, %v4198_v49  ;;  %v4197_v4 = vmax.f32 %v4165_v33, 0.0 }
 0x23e   : > { %4229 = vst.msk [vmem:[%s7392_s5 + $0xf0] sm:$0xff] %vm732_vm1, %v4197_v4 }
 0x23f PF: > { %s13_s16 = sadd.s32 1, %s5759_s16   ;;  %s7813_s12 = smov %s5747_s13 }
 0x240   : > { %p10_p10 = scmp.ge.s32.totalorder %s13_s16, 4   ;;  %s7814_s13 = smov %s5816_s20 }
 0x241   : > { %s7815_s14 = smov %s5755_s15  ;;  %s7816_s15 = smov %s7818_s17 }
 0x242   :  { %12 = sbr.rel (!%p10_p10) target bundleno = 3 (0x3), region = 122 }

// kernel: downsample_forward.6
= control target key start
LH: loop header
LB: loop body
LE: loop exit
PB: predicated region body
PF: predicated region fallthrough
CT: control target
= control target key end

     0   :  { %s2424_s12 = smov 0   ;;  %s2426_s13 = smov 0   ;;  %s2859_s0 = inlined_call_operand.vmem [shape: f32[9,2,8,8,8], index: 0, kind: input, shape index: {}]   ;;  %s2860_s1 = inlined_call_operand.vmem [shape: f32[9,8,8], index: 1, kind: input, shape index: {}]   ;;  %s2861_s2 = inlined_call_operand.vmem [shape: f32[1,8], index: 2, kind: input, shape index: {}]   ;;  %s2862_s3 = inlined_call_operand.vmem [shape: f32[2,8,8,8], index: 3, kind: output, shape index: {}]  }
   0x1   :  { %s2428_s14 = smov 0   ;;  %s2430_s15 = smov 0  }
   0x2   :  { %s2432_s16 = smov 0  }
   0x3 LB: > { %s25_s17 = sadd.s32 1, %s2398_s15  ;;  %p41_p1 = scmp.ne.s32.totalorder %s2390_s13, %s2386_s12  ;;  %s2402_s16 = sphi %s2432_s16, %s13_s16   ;;  %s2398_s15 = sphi %s2430_s15, %s2866_s15   ;;  %s2394_s14 = sphi %s2428_s14, %s2865_s14   ;;  %s2390_s13 = sphi %s2426_s13, %s2864_s13   ;;  %s2386_s12 = sphi %s2424_s12, %s2863_s12  }
   0x4   : > { %p27_p0 = scmp.ge.s32.totalorder %s25_s17, 2  ;;  %p42_p2 = scmp.eq.s32.totalorder %s2402_s16, 0 }
   0x5   : > { %s34_s19 = sadd.s32 1, %s2390_s13  ;;  %p1958_p5 = scmp.ge.s32.totalorder %s2402_s16, 2 }
   0x6   : > { %s2868_s17 = smov (%p27_p0, %s25_s17), 0  ;;  %p43_p3 = por %p42_p2, %p41_p1 }
   0x7   : > { %s29_s18 = ssub.s32 %s2398_s15, %s2868_s17  ;;  %143 = sbr.rel (%p1958_p5) target bundleno = 53 (0x35), region = 24 }
   0x8   : > { %p32_p4 = scmp.eq.s32.totalorder %s29_s18, 0 }
   0xa   : > { %s2459_s20 = scalar_select %p32_p4, %s2390_s13, %s34_s19  }
   0xc   : > { %146 = sbr.rel (!%p43_p3) target bundleno = 53 (0x35), region = 28  ;;  %s148_s21 = sand.u32 (%p43_p3), 1, %s2390_s13  }
   0xd   : > { %s2111_s22 = sshll.u32 (%p43_p3), %s2398_s15, 6  ;;  %s2322_s23 = smul.u32 (%p43_p3), 576, %s148_s21 }
   0xe   : > { %s2467_s26 = scalar_lea.vmem (%p43_p3), %s2859_s0, %s2111_s22 }
   0xf   : > { %v326_v0 = vld [vmem:[%s2467_s26] sm:$0xff] (%p43_p3)  ;;  %v328_v1 = vld [vmem:[%s2467_s26 + $0x8] sm:$0xff] (%p43_p3)  ;;  %v330_v2 = vld [vmem:[%s2467_s26 + $0x10] sm:$0xff] (%p43_p3)  ;;  %s2475_s27 = scalar_lea.vmem (%p43_p3), [#allocation2], %s2322_s23 }
  0x10   : > { %v332_v3 = vld [vmem:[%s2467_s26 + $0x18] sm:$0xff] (%p43_p3)  ;;  %v334_v4 = vld [vmem:[%s2467_s26 + $0x20] sm:$0xff] (%p43_p3)  ;;  %v336_v5 = vld [vmem:[%s2467_s26 + $0x28] sm:$0xff] (%p43_p3)  ;;  %327 = vst [vmem:[%s2475_s27] sm:$0xff] (%p43_p3), %v326_v0 }
  0x11   : > { %329 = vst [vmem:[%s2475_s27 + $0x8] sm:$0xff] %v328_v1  ;;  %331 = vst [vmem:[%s2475_s27 + $0x10] sm:$0xff] %v330_v2  ;;  %v338_v6 = vld [vmem:[%s2467_s26 + $0x30] sm:$0xff]  ;;  %v340_v7 = vld [vmem:[%s2467_s26 + $0x38] sm:$0xff] }
  0x12   : > { %333 = vst [vmem:[%s2475_s27 + $0x18] sm:$0xff] %v332_v3  ;;  %335 = vst [vmem:[%s2475_s27 + $0x20] sm:$0xff] %v334_v4  ;;  %v342_v8 = vld [vmem:[%s2467_s26 + $0x80] sm:$0xff]  ;;  %v344_v9 = vld [vmem:[%s2467_s26 + $0x88] sm:$0xff] }
  0x13   : > { %337 = vst [vmem:[%s2475_s27 + $0x28] sm:$0xff] %v336_v5  ;;  %339 = vst [vmem:[%s2475_s27 + $0x30] sm:$0xff] %v338_v6  ;;  %v346_v10 = vld [vmem:[%s2467_s26 + $0x90] sm:$0xff]  ;;  %v348_v11 = vld [vmem:[%s2467_s26 + $0x98] sm:$0xff] }
  0x14   : > { %341 = vst [vmem:[%s2475_s27 + $0x38] sm:$0xff] %v340_v7  ;;  %343 = vst [vmem:[%s2475_s27 + $0x40] sm:$0xff] %v342_v8  ;;  %v350_v12 = vld [vmem:[%s2467_s26 + $0xa0] sm:$0xff]  ;;  %v352_v13 = vld [vmem:[%s2467_s26 + $0xa8] sm:$0xff] }
  0x15   : > { %345 = vst [vmem:[%s2475_s27 + $0x48] sm:$0xff] %v344_v9  ;;  %347 = vst [vmem:[%s2475_s27 + $0x50] sm:$0xff] %v346_v10  ;;  %v354_v14 = vld [vmem:[%s2467_s26 + $0xb0] sm:$0xff]  ;;  %v356_v15 = vld [vmem:[%s2467_s26 + $0xb8] sm:$0xff] }
  0x16   : > { %349 = vst [vmem:[%s2475_s27 + $0x58] sm:$0xff] %v348_v11  ;;  %351 = vst [vmem:[%s2475_s27 + $0x60] sm:$0xff] %v350_v12  ;;  %v358_v16 = vld [vmem:[%s2467_s26 + $0x100] sm:$0xff]  ;;  %v360_v17 = vld [vmem:[%s2467_s26 + $0x108] sm:$0xff] }
  0x17   : > { %353 = vst [vmem:[%s2475_s27 + $0x68] sm:$0xff] %v352_v13  ;;  %355 = vst [vmem:[%s2475_s27 + $0x70] sm:$0xff] %v354_v14  ;;  %v362_v18 = vld [vmem:[%s2467_s26 + $0x110] sm:$0xff]  ;;  %v364_v19 = vld [vmem:[%s2467_s26 + $0x118] sm:$0xff] }
  0x18   : > { %357 = vst [vmem:[%s2475_s27 + $0x78] sm:$0xff] %v356_v15  ;;  %359 = vst [vmem:[%s2475_s27 + $0x80] sm:$0xff] %v358_v16  ;;  %v366_v20 = vld [vmem:[%s2467_s26 + $0x120] sm:$0xff]  ;;  %v368_v21 = vld [vmem:[%s2467_s26 + $0x128] sm:$0xff] }
  0x19   : > { %361 = vst [vmem:[%s2475_s27 + $0x88] sm:$0xff] %v360_v17  ;;  %363 = vst [vmem:[%s2475_s27 + $0x90] sm:$0xff] %v362_v18  ;;  %v370_v22 = vld [vmem:[%s2467_s26 + $0x130] sm:$0xff]  ;;  %v372_v23 = vld [vmem:[%s2467_s26 + $0x138] sm:$0xff] }
  0x1a   : > { %365 = vst [vmem:[%s2475_s27 + $0x98] sm:$0xff] %v364_v19  ;;  %367 = vst [vmem:[%s2475_s27 + $0xa0] sm:$0xff] %v366_v20  ;;  %v374_v24 = vld [vmem:[%s2467_s26 + $0x180] sm:$0xff]  ;;  %v376_v25 = vld [vmem:[%s2467_s26 + $0x188] sm:$0xff] }
  0x1b   : > { %369 = vst [vmem:[%s2475_s27 + $0xa8] sm:$0xff] %v368_v21  ;;  %371 = vst [vmem:[%s2475_s27 + $0xb0] sm:$0xff] %v370_v22  ;;  %v378_v26 = vld [vmem:[%s2467_s26 + $0x190] sm:$0xff]  ;;  %v380_v27 = vld [vmem:[%s2467_s26 + $0x198] sm:$0xff] }
  0x1c   : > { %373 = vst [vmem:[%s2475_s27 + $0xb8] sm:$0xff] %v372_v23  ;;  %375 = vst [vmem:[%s2475_s27 + $0xc0] sm:$0xff] %v374_v24  ;;  %v382_v28 = vld [vmem:[%s2467_s26 + $0x1a0] sm:$0xff]  ;;  %v384_v29 = vld [vmem:[%s2467_s26 + $0x1a8] sm:$0xff] }
  0x1d   : > { %377 = vst [vmem:[%s2475_s27 + $0xc8] sm:$0xff] %v376_v25  ;;  %379 = vst [vmem:[%s2475_s27 + $0xd0] sm:$0xff] %v378_v26  ;;  %v386_v30 = vld [vmem:[%s2467_s26 + $0x1b0] sm:$0xff]  ;;  %v388_v31 = vld [vmem:[%s2467_s26 + $0x1b8] sm:$0xff] }
  0x1e   : > { %381 = vst [vmem:[%s2475_s27 + $0xd8] sm:$0xff] %v380_v27  ;;  %383 = vst [vmem:[%s2475_s27 + $0xe0] sm:$0xff] %v382_v28  ;;  %v390_v32 = vld [vmem:[%s2467_s26 + $0x200] sm:$0xff]  ;;  %v392_v33 = vld [vmem:[%s2467_s26 + $0x208] sm:$0xff] }
  0x1f   : > { %385 = vst [vmem:[%s2475_s27 + $0xe8] sm:$0xff] %v384_v29  ;;  %387 = vst [vmem:[%s2475_s27 + $0xf0] sm:$0xff] %v386_v30  ;;  %v394_v34 = vld [vmem:[%s2467_s26 + $0x210] sm:$0xff]  ;;  %v396_v35 = vld [vmem:[%s2467_s26 + $0x218] sm:$0xff] }
  0x20   : > { %389 = vst [vmem:[%s2475_s27 + $0xf8] sm:$0xff] %v388_v31  ;;  %391 = vst [vmem:[%s2475_s27 + $0x100] sm:$0xff] %v390_v32  ;;  %v398_v36 = vld [vmem:[%s2467_s26 + $0x220] sm:$0xff]  ;;  %v400_v37 = vld [vmem:[%s2467_s26 + $0x228] sm:$0xff] }
  0x21   : > { %393 = vst [vmem:[%s2475_s27 + $0x108] sm:$0xff] %v392_v33  ;;  %395 = vst [vmem:[%s2475_s27 + $0x110] sm:$0xff] %v394_v34  ;;  %v402_v38 = vld [vmem:[%s2467_s26 + $0x230] sm:$0xff]  ;;  %v404_v39 = vld [vmem:[%s2467_s26 + $0x238] sm:$0xff] }
  0x22   : > { %397 = vst [vmem:[%s2475_s27 + $0x118] sm:$0xff] %v396_v35  ;;  %399 = vst [vmem:[%s2475_s27 + $0x120] sm:$0xff] %v398_v36  ;;  %v406_v40 = vld [vmem:[%s2467_s26 + $0x280] sm:$0xff]  ;;  %v408_v41 = vld [vmem:[%s2467_s26 + $0x288] sm:$0xff] }
  0x23   : > { %401 = vst [vmem:[%s2475_s27 + $0x128] sm:$0xff] %v400_v37  ;;  %403 = vst [vmem:[%s2475_s27 + $0x130] sm:$0xff] %v402_v38  ;;  %v410_v42 = vld [vmem:[%s2467_s26 + $0x290] sm:$0xff]  ;;  %v412_v43 = vld [vmem:[%s2467_s26 + $0x298] sm:$0xff] }
  0x24   : > { %405 = vst [vmem:[%s2475_s27 + $0x138] sm:$0xff] %v404_v39  ;;  %407 = vst [vmem:[%s2475_s27 + $0x140] sm:$0xff] %v406_v40  ;;  %v414_v44 = vld [vmem:[%s2467_s26 + $0x2a0] sm:$0xff]  ;;  %v416_v45 = vld [vmem:[%s2467_s26 + $0x2a8] sm:$0xff] }
  0x25   : > { %409 = vst [vmem:[%s2475_s27 + $0x148] sm:$0xff] %v408_v41  ;;  %411 = vst [vmem:[%s2475_s27 + $0x150] sm:$0xff] %v410_v42  ;;  %v418_v46 = vld [vmem:[%s2467_s26 + $0x2b0] sm:$0xff]  ;;  %v420_v47 = vld [vmem:[%s2467_s26 + $0x2b8] sm:$0xff] }
  0x26   : > { %413 = vst [vmem:[%s2475_s27 + $0x158] sm:$0xff] %v412_v43  ;;  %415 = vst [vmem:[%s2475_s27 + $0x160] sm:$0xff] %v414_v44  ;;  %v422_v48 = vld [vmem:[%s2467_s26 + $0x300] sm:$0xff]  ;;  %v424_v49 = vld [vmem:[%s2467_s26 + $0x308] sm:$0xff] }
  0x27   : > { %417 = vst [vmem:[%s2475_s27 + $0x168] sm:$0xff] %v416_v45  ;;  %419 = vst [vmem:[%s2475_s27 + $0x170] sm:$0xff] %v418_v46  ;;  %v426_v50 = vld [vmem:[%s2467_s26 + $0x310] sm:$0xff]  ;;  %v428_v51 = vld [vmem:[%s2467_s26 + $0x318] sm:$0xff] }
  0x28   : > { %421 = vst [vmem:[%s2475_s27 + $0x178] sm:$0xff] %v420_v47  ;;  %423 = vst [vmem:[%s2475_s27 + $0x180] sm:$0xff] %v422_v48  ;;  %v430_v52 = vld [vmem:[%s2467_s26 + $0x320] sm:$0xff]  ;;  %v432_v53 = vld [vmem:[%s2467_s26 + $0x328] sm:$0xff] }
  0x29   : > { %425 = vst [vmem:[%s2475_s27 + $0x188] sm:$0xff] %v424_v49  ;;  %427 = vst [vmem:[%s2475_s27 + $0x190] sm:$0xff] %v426_v50  ;;  %v434_v54 = vld [vmem:[%s2467_s26 + $0x330] sm:$0xff]  ;;  %v436_v55 = vld [vmem:[%s2467_s26 + $0x338] sm:$0xff] }
  0x2a   : > { %429 = vst [vmem:[%s2475_s27 + $0x198] sm:$0xff] %v428_v51  ;;  %431 = vst [vmem:[%s2475_s27 + $0x1a0] sm:$0xff] %v430_v52  ;;  %v438_v56 = vld [vmem:[%s2467_s26 + $0x380] sm:$0xff]  ;;  %v440_v57 = vld [vmem:[%s2467_s26 + $0x388] sm:$0xff] }
  0x2b   : > { %433 = vst [vmem:[%s2475_s27 + $0x1a8] sm:$0xff] %v432_v53  ;;  %435 = vst [vmem:[%s2475_s27 + $0x1b0] sm:$0xff] %v434_v54  ;;  %v442_v58 = vld [vmem:[%s2467_s26 + $0x390] sm:$0xff]  ;;  %v444_v59 = vld [vmem:[%s2467_s26 + $0x398] sm:$0xff] }
  0x2c   : > { %437 = vst [vmem:[%s2475_s27 + $0x1b8] sm:$0xff] %v436_v55  ;;  %439 = vst [vmem:[%s2475_s27 + $0x1c0] sm:$0xff] %v438_v56  ;;  %v446_v60 = vld [vmem:[%s2467_s26 + $0x3a0] sm:$0xff]  ;;  %v448_v61 = vld [vmem:[%s2467_s26 + $0x3a8] sm:$0xff] }
  0x2d   : > { %441 = vst [vmem:[%s2475_s27 + $0x1c8] sm:$0xff] %v440_v57  ;;  %443 = vst [vmem:[%s2475_s27 + $0x1d0] sm:$0xff] %v442_v58  ;;  %v450_v62 = vld [vmem:[%s2467_s26 + $0x3b0] sm:$0xff]  ;;  %v452_v63 = vld [vmem:[%s2467_s26 + $0x3b8] sm:$0xff] }
  0x2e   : > { %445 = vst [vmem:[%s2475_s27 + $0x1d8] sm:$0xff] %v444_v59  ;;  %447 = vst [vmem:[%s2475_s27 + $0x1e0] sm:$0xff] %v446_v60  ;;  %v454_v0 = vld [vmem:[%s2467_s26 + $0x400] sm:$0xff]  ;;  %v456_v1 = vld [vmem:[%s2467_s26 + $0x408] sm:$0xff] }
  0x2f   : > { %449 = vst [vmem:[%s2475_s27 + $0x1e8] sm:$0xff] %v448_v61  ;;  %451 = vst [vmem:[%s2475_s27 + $0x1f0] sm:$0xff] %v450_v62  ;;  %v458_v2 = vld [vmem:[%s2467_s26 + $0x410] sm:$0xff]  ;;  %v460_v3 = vld [vmem:[%s2467_s26 + $0x418] sm:$0xff] }
  0x30   : > { %453 = vst [vmem:[%s2475_s27 + $0x1f8] sm:$0xff] %v452_v63  ;;  %455 = vst [vmem:[%s2475_s27 + $0x200] sm:$0xff] %v454_v0  ;;  %v462_v4 = vld [vmem:[%s2467_s26 + $0x420] sm:$0xff]  ;;  %v464_v5 = vld [vmem:[%s2467_s26 + $0x428] sm:$0xff] }
  0x31   : > { %457 = vst [vmem:[%s2475_s27 + $0x208] sm:$0xff] %v456_v1  ;;  %459 = vst [vmem:[%s2475_s27 + $0x210] sm:$0xff] %v458_v2  ;;  %v466_v6 = vld [vmem:[%s2467_s26 + $0x430] sm:$0xff]  ;;  %v468_v7 = vld [vmem:[%s2467_s26 + $0x438] sm:$0xff] }
  0x32   : > { %461 = vst [vmem:[%s2475_s27 + $0x218] sm:$0xff] %v460_v3  ;;  %463 = vst [vmem:[%s2475_s27 + $0x220] sm:$0xff] %v462_v4 }
  0x33   : > { %465 = vst [vmem:[%s2475_s27 + $0x228] sm:$0xff] %v464_v5  ;;  %467 = vst [vmem:[%s2475_s27 + $0x230] sm:$0xff] %v466_v6 }
  0x34   : > { %469 = vst [vmem:[%s2475_s27 + $0x238] sm:$0xff] %v468_v7 }
  0x35 PF: > { %p1961_p6 = scmp.ge.s32.totalorder %s2402_s16, 1  ;;  %p474_p7 = scmp.lt.s32.totalorder %s2402_s16, 3 }
  0x37   : > { %p475_p8 = pnand %p1961_p6, %p474_p7 }
  0x38   : > { %s481_s30 = sand.u32 (!%p475_p8), 1, %s2386_s12   ;;  %p510_p9 = scmp.lt.s32.totalorder (!%p475_p8), %s2394_s14, 1 }
  0x39   : > { %478 = sbr.rel (%p475_p8) target bundleno = 339 (0x153), region = 66 }
  0x3a   : > { %s2323_s8 = smul.u32 (!%p475_p8), 576, %s481_s30 }
  0x3c   : > { %s2627_s9 = scalar_lea.vmem (!%p475_p8), [#allocation2], %s2323_s8 }
  0x3e   : > { %v1972_v8 = vld [vmem:[%s2860_s1 + $0x8] sm:$0xff]  ;;  %v527_v9 = vld [vmem:[%s2860_s1] sm:$0xff]  ;;  %v1997_v10 = vld [vmem:[%s2860_s1 + $0x10] sm:$0xff]  ;;  %vm539_vm0 = vcmask 64512   ;;  %s2870_s14 = smov (!%p510_p9, %s2394_s14), 1 }
  0x3f   : > { %2320 = vmatprep.subr.mxu1 %v1972_v8  ;;  %2194 = vmatprep.subr.mxu0 %v1972_v8  ;;  %v1964_v11 = vld [vmem:[%s2627_s9 + $0x40] sm:$0xff]  ;;  %v1965_v13 = vld [vmem:[%s2627_s9 + $0x48] sm:$0xff]  ;;  %v1966_v15 = vld [vmem:[%s2627_s9 + $0x50] sm:$0xff]  ;;  %s2112_s30 = sshll.u32 %s2870_s14, 6 }
  0x40   : > { %2321 = vmatpush3.msra.mxu1 %v1972_v8  ;;  %2195 = vmatpush3.msra.mxu0 %v1972_v8  ;;  %v1968_v12 = vld [vmem:[%s2627_s9 + $0x60] sm:$0xff]  ;;  %v1969_v14 = vld [vmem:[%s2627_s9 + $0x68] sm:$0xff]  ;;  %v1970_v16 = vld [vmem:[%s2627_s9 + $0x70] sm:$0xff]  ;;  %s2819_s14 = scalar_lea.vmem %s2862_s3, %s2112_s30 }
  0x41   : > { %2208 = vmatprep.subr.mxu1 %v527_v9  ;;  %2222 = vmatprep.subr.mxu0 %v1997_v10  ;;  %v2014_v17 = vld [vmem:[%s2860_s1 + $0x18] sm:$0xff]  ;;  %v2031_v18 = vld [vmem:[%s2860_s1 + $0x20] sm:$0xff]  ;;  %v520_v23 = vld [vmem:[%s2627_s9 + $0x8] sm:$0xff] }
  0x42   : > { %2196 = vmatprep.mubr.msk.f32.mxu0 %vm539_vm0, %v1964_v11  ;;  %2202 = vmatprep.mubr.msk.f32.mxu1 %vm539_vm0, %v1968_v12  ;;  %v1967_v19 = vld [vmem:[%s2627_s9 + $0x58] sm:$0xff]  ;;  %v519_v21 = vld [vmem:[%s2627_s9] sm:$0xff]  ;;  %v1990_v24 = vld [vmem:[%s2627_s9 + $0x88] sm:$0xff] }
  0x43   : > { %2197 = vmatmul.mubr.msk.f32.vlgmr.msra.gmra.mxu0 %vm539_vm0, %v1965_v13  ;;  %2203 = vmatmul.mubr.msk.f32.vlgmr.msra.gmra.mxu1 %vm539_vm0, %v1969_v14  ;;  %v1971_v20 = vld [vmem:[%s2627_s9 + $0x78] sm:$0xff]  ;;  %v1989_v22 = vld [vmem:[%s2627_s9 + $0x80] sm:$0xff]  ;;  %v521_v25 = vld [vmem:[%s2627_s9 + $0x10] sm:$0xff] }
  0x44   : > { %2209 = vmatpush3.msra.mxu1 %v527_v9  ;;  %2223 = vmatpush3.msra.mxu0 %v1997_v10  ;;  %v1991_v26 = vld [vmem:[%s2627_s9 + $0x90] sm:$0xff]  ;;  %v2048_v27 = vld [vmem:[%s2860_s1 + $0x28] sm:$0xff]  ;;  %v522_v29 = vld [vmem:[%s2627_s9 + $0x18] sm:$0xff] }
  0x45   : > { %2199 = vmatprep.mubr.msk.f32.mxu0 %vm539_vm0, %v1966_v15  ;;  %2205 = vmatprep.mubr.msk.f32.mxu1 %vm539_vm0, %v1970_v16  ;;  %v2065_v28 = vld [vmem:[%s2860_s1 + $0x30] sm:$0xff]  ;;  %v1992_v30 = vld [vmem:[%s2627_s9 + $0x98] sm:$0xff]  ;;  %v523_v31 = vld [vmem:[%s2627_s9 + $0x20] sm:$0xff] }
  0x46   : > { %2236 = vmatprep.subr.mxu1 %v2014_v17  ;;  %2250 = vmatprep.subr.mxu0 %v2031_v18  ;;  %v1993_v32 = vld [vmem:[%s2627_s9 + $0xa0] sm:$0xff]  ;;  %v524_v33 = vld [vmem:[%s2627_s9 + $0x28] sm:$0xff]  ;;  %v525_v35 = vld [vmem:[%s2627_s9 + $0x30] sm:$0xff] }
  0x47   : > { %2200 = vmatmul.mubr.msk.f32.gmra.mxu0 %vm539_vm0, %v1967_v19  ;;  %2206 = vmatmul.mubr.msk.f32.gmra.mxu1 %vm539_vm0, %v1971_v20  ;;  %v1994_v34 = vld [vmem:[%s2627_s9 + $0xa8] sm:$0xff]  ;;  %v1995_v36 = vld [vmem:[%s2627_s9 + $0xb0] sm:$0xff]  ;;  %v526_v37 = vld [vmem:[%s2627_s9 + $0x38] sm:$0xff] }
  0x48   : > { %2210 = vmatprep.mubr.msk.f32.mxu1 %vm539_vm0, %v519_v21  ;;  %2224 = vmatprep.mubr.msk.f32.mxu0 %vm539_vm0, %v1989_v22  ;;  %v1996_v38 = vld [vmem:[%s2627_s9 + $0xb8] sm:$0xff]  ;;  %v2006_v39 = vld [vmem:[%s2627_s9 + $0xc0] sm:$0xff]  ;;  %v2007_v41 = vld [vmem:[%s2627_s9 + $0xc8] sm:$0xff] }
  0x49   : > { %v2023_v40 = vld [vmem:[%s2627_s9 + $0x100] sm:$0xff]  ;;  %v2024_v42 = vld [vmem:[%s2627_s9 + $0x108] sm:$0xff]  ;;  %v2008_v43 = vld [vmem:[%s2627_s9 + $0xd0] sm:$0xff] }
  0x4a   : > { %v2025_v44 = vld [vmem:[%s2627_s9 + $0x110] sm:$0xff]  ;;  %v2082_v45 = vld [vmem:[%s2860_s1 + $0x38] sm:$0xff]  ;;  %v2099_v46 = vld [vmem:[%s2860_s1 + $0x40] sm:$0xff] }
  0x4b   : > { %2211 = vmatmul.mubr.msk.f32.vlgmr.msra.gmra.mxu1 %vm539_vm0, %v520_v23  ;;  %2225 = vmatmul.mubr.msk.f32.vlgmr.msra.gmra.mxu0 %vm539_vm0, %v1990_v24  ;;  %v2009_v47 = vld [vmem:[%s2627_s9 + $0xd8] sm:$0xff]  ;;  %v2010_v49 = vld [vmem:[%s2627_s9 + $0xe0] sm:$0xff]  ;;  %v2011_v51 = vld [vmem:[%s2627_s9 + $0xe8] sm:$0xff] }
  0x4c   : > { %2237 = vmatpush3.msra.mxu1 %v2014_v17  ;;  %2251 = vmatpush3.msra.mxu0 %v2031_v18  ;;  %v2026_v48 = vld [vmem:[%s2627_s9 + $0x118] sm:$0xff]  ;;  %v2027_v50 = vld [vmem:[%s2627_s9 + $0x120] sm:$0xff]  ;;  %v2028_v52 = vld [vmem:[%s2627_s9 + $0x128] sm:$0xff] }
  0x4d   : > { %2213 = vmatprep.mubr.msk.f32.mxu1 %vm539_vm0, %v521_v25  ;;  %2227 = vmatprep.mubr.msk.f32.mxu0 %vm539_vm0, %v1991_v26  ;;  %v2012_v53 = vld [vmem:[%s2627_s9 + $0xf0] sm:$0xff]  ;;  %v2013_v55 = vld [vmem:[%s2627_s9 + $0xf8] sm:$0xff]  ;;  %v2040_v57 = vld [vmem:[%s2627_s9 + $0x140] sm:$0xff] }
  0x4e   : > { %2264 = vmatprep.subr.mxu1 %v2048_v27  ;;  %2278 = vmatprep.subr.mxu0 %v2065_v28  ;;  %v2029_v54 = vld [vmem:[%s2627_s9 + $0x130] sm:$0xff]  ;;  %v2030_v56 = vld [vmem:[%s2627_s9 + $0x138] sm:$0xff]  ;;  %v2057_v58 = vld [vmem:[%s2627_s9 + $0x180] sm:$0xff] }
  0x4f   : > { %2214 = vmatmul.mubr.msk.f32.gmra.mxu1 %vm539_vm0, %v522_v29  ;;  %2228 = vmatmul.mubr.msk.f32.gmra.mxu0 %vm539_vm0, %v1992_v30  ;;  %v2041_v59 = vld [vmem:[%s2627_s9 + $0x148] sm:$0xff]  ;;  %v2042_v61 = vld [vmem:[%s2627_s9 + $0x150] sm:$0xff]  ;;  %v2043_v63 = vld [vmem:[%s2627_s9 + $0x158] sm:$0xff] }
  0x50   : > { %2216 = vmatprep.mubr.msk.f32.mxu1 %vm539_vm0, %v523_v31  ;;  %2230 = vmatprep.mubr.msk.f32.mxu0 %vm539_vm0, %v1993_v32  ;;  %v2058_v60 = vld [vmem:[%s2627_s9 + $0x188] sm:$0xff]  ;;  %v2059_v62 = vld [vmem:[%s2627_s9 + $0x190] sm:$0xff]  ;;  %v2060_v0 = vld [vmem:[%s2627_s9 + $0x198] sm:$0xff] }
  0x51   : > { %v2044_v1 = vld [vmem:[%s2627_s9 + $0x160] sm:$0xff]  ;;  %v2045_v3 = vld [vmem:[%s2627_s9 + $0x168] sm:$0xff]  ;;  %v2046_v5 = vld [vmem:[%s2627_s9 + $0x170] sm:$0xff] }
  0x52   : > { %v2061_v2 = vld [vmem:[%s2627_s9 + $0x1a0] sm:$0xff]  ;;  %v2062_v4 = vld [vmem:[%s2627_s9 + $0x1a8] sm:$0xff]  ;;  %v2063_v6 = vld [vmem:[%s2627_s9 + $0x1b0] sm:$0xff] }
  0x53   : > { %2217 = vmatmul.mubr.msk.f32.gmra.mxu1 %vm539_vm0, %v524_v33  ;;  %2231 = vmatmul.mubr.msk.f32.gmra.mxu0 %vm539_vm0, %v1994_v34  ;;  %v2047_v7 = vld [vmem:[%s2627_s9 + $0x178] sm:$0xff]  ;;  %v2074_v9 = vld [vmem:[%s2627_s9 + $0x1c0] sm:$0xff]  ;;  %v2075_v11 = vld [vmem:[%s2627_s9 + $0x1c8] sm:$0xff] }
  0x54   : > { %2219 = vmatprep.mubr.msk.f32.mxu1 %vm539_vm0, %v525_v35  ;;  %2233 = vmatprep.mubr.msk.f32.mxu0 %vm539_vm0, %v1995_v36  ;;  %v2064_v8 = vld [vmem:[%s2627_s9 + $0x1b8] sm:$0xff]  ;;  %v2091_v10 = vld [vmem:[%s2627_s9 + $0x200] sm:$0xff]  ;;  %v2092_v12 = vld [vmem:[%s2627_s9 + $0x208] sm:$0xff] }
  0x55   : > { %v2076_v13 = vld [vmem:[%s2627_s9 + $0x1d0] sm:$0xff]  ;;  %v2077_v15 = vld [vmem:[%s2627_s9 + $0x1d8] sm:$0xff]  ;;  %v2078_v17 = vld [vmem:[%s2627_s9 + $0x1e0] sm:$0xff] }
  0x56   : > { %v2093_v14 = vld [vmem:[%s2627_s9 + $0x210] sm:$0xff]  ;;  %v2094_v16 = vld [vmem:[%s2627_s9 + $0x218] sm:$0xff]  ;;  %v2095_v18 = vld [vmem:[%s2627_s9 + $0x220] sm:$0xff] }
  0x57   : > { %2220 = vmatmul.mubr.msk.f32.gmra.mxu1 %vm539_vm0, %v526_v37  ;;  %2234 = vmatmul.mubr.msk.f32.gmra.mxu0 %vm539_vm0, %v1996_v38  ;;  %v2079_v19 = vld [vmem:[%s2627_s9 + $0x1e8] sm:$0xff]  ;;  %v2080_v21 = vld [vmem:[%s2627_s9 + $0x1f0] sm:$0xff]  ;;  %v2081_v23 = vld [vmem:[%s2627_s9 + $0x1f8] sm:$0xff] }
  0x58   : > { %2238 = vmatprep.mubr.msk.f32.mxu1 %vm539_vm0, %v2006_v39  ;;  %2252 = vmatprep.mubr.msk.f32.mxu0 %vm539_vm0, %v2023_v40  ;;  %v2096_v20 = vld [vmem:[%s2627_s9 + $0x228] sm:$0xff]  ;;  %v2097_v22 = vld [vmem:[%s2627_s9 + $0x230] sm:$0xff]  ;;  %v2098_v24 = vld [vmem:[%s2627_s9 + $0x238] sm:$0xff] }
  0x5b   : > { %2239 = vmatmul.mubr.msk.f32.vlgmr.msra.gmra.mxu1 %vm539_vm0, %v2007_v41  ;;  %2253 = vmatmul.mubr.msk.f32.vlgmr.msra.gmra.mxu0 %vm539_vm0, %v2024_v42 }
  0x5c   : > { %2265 = vmatpush3.msra.mxu1 %v2048_v27  ;;  %2279 = vmatpush3.msra.mxu0 %v2065_v28 }
  0x5d   : > { %2241 = vmatprep.mubr.msk.f32.mxu1 %vm539_vm0, %v2008_v43  ;;  %2255 = vmatprep.mubr.msk.f32.mxu0 %vm539_vm0, %v2025_v44 }
  0x5e   : > { %2292 = vmatprep.subr.mxu1 %v2082_v45  ;;  %2306 = vmatprep.subr.mxu0 %v2099_v46 }
  0x5f   : > { %2242 = vmatmul.mubr.msk.f32.gmra.mxu1 %vm539_vm0, %v2009_v47  ;;  %2256 = vmatmul.mubr.msk.f32.gmra.mxu0 %vm539_vm0, %v2026_v48 }
  0x60   : > { %2244 = vmatprep.mubr.msk.f32.mxu1 %vm539_vm0, %v2010_v49  ;;  %2258 = vmatprep.mubr.msk.f32.mxu0 %vm539_vm0, %v2027_v50 }
  0x63   : > { %2245 = vmatmul.mubr.msk.f32.gmra.mxu1 %vm539_vm0, %v2011_v51  ;;  %2259 = vmatmul.mubr.msk.f32.gmra.mxu0 %vm539_vm0, %v2028_v52 }
  0x64   : > { %2247 = vmatprep.mubr.msk.f32.mxu1 %vm539_vm0, %v2012_v53  ;;  %2261 = vmatprep.mubr.msk.f32.mxu0 %vm539_vm0, %v2029_v54 }
  0x67   : > { %2248 = vmatmul.mubr.msk.f32.gmra.mxu1 %vm539_vm0, %v2013_v55  ;;  %2262 = vmatmul.mubr.msk.f32.gmra.mxu0 %vm539_vm0, %v2030_v56 }
  0x68   : > { %2266 = vmatprep.mubr.msk.f32.mxu1 %vm539_vm0, %v2040_v57  ;;  %2280 = vmatprep.mubr.msk.f32.mxu0 %vm539_vm0, %v2057_v58 }
  0x6b   : > { %2267 = vmatmul.mubr.msk.f32.vlgmr.msra.gmra.mxu1 %vm539_vm0, %v2041_v59  ;;  %2281 = vmatmul.mubr.msk.f32.vlgmr.msra.gmra.mxu0 %vm539_vm0, %v2058_v60 }
  0x6c   : > { %2293 = vmatpush3.msra.mxu1 %v2082_v45  ;;  %2307 = vmatpush3.msra.mxu0 %v2099_v46 }
  0x6d   : > { %2269 = vmatprep.mubr.msk.f32.mxu1 %vm539_vm0, %v2042_v61  ;;  %2283 = vmatprep.mubr.msk.f32.mxu0 %vm539_vm0, %v2059_v62 }
  0x6f   : > { %2270 = vmatmul.mubr.msk.f32.gmra.mxu1 %vm539_vm0, %v2043_v63  ;;  %2284 = vmatmul.mubr.msk.f32.gmra.mxu0 %vm539_vm0, %v2060_v0 }
  0x70   : > { %2272 = vmatprep.mubr.msk.f32.mxu1 %vm539_vm0, %v2044_v1  ;;  %2286 = vmatprep.mubr.msk.f32.mxu0 %vm539_vm0, %v2061_v2 }
  0x73   : > { %2273 = vmatmul.mubr.msk.f32.gmra.mxu1 %vm539_vm0, %v2045_v3  ;;  %2287 = vmatmul.mubr.msk.f32.gmra.mxu0 %vm539_vm0, %v2062_v4 }
  0x74   : > { %2275 = vmatprep.mubr.msk.f32.mxu1 %vm539_vm0, %v2046_v5  ;;  %2289 = vmatprep.mubr.msk.f32.mxu0 %vm539_vm0, %v2063_v6 }
  0x77   : > { %2276 = vmatmul.mubr.msk.f32.gmra.mxu1 %vm539_vm0, %v2047_v7  ;;  %2290 = vmatmul.mubr.msk.f32.gmra.mxu0 %vm539_vm0, %v2064_v8 }
  0x78   : > { %2294 = vmatprep.mubr.msk.f32.mxu1 %vm539_vm0, %v2074_v9  ;;  %2308 = vmatprep.mubr.msk.f32.mxu0 %vm539_vm0, %v2091_v10 }
  0x7b   : > { %2295 = vmatmul.mubr.msk.f32.vlgmr.msra.gmra.mxu1 %vm539_vm0, %v2075_v11  ;;  %2309 = vmatmul.mubr.msk.f32.vlgmr.msra.gmra.mxu0 %vm539_vm0, %v2092_v12 }
  0x7c   : > { %2297 = vmatprep.mubr.msk.f32.mxu1 %vm539_vm0, %v2076_v13  ;;  %2311 = vmatprep.mubr.msk.f32.mxu0 %vm539_vm0, %v2093_v14 }
  0x7f   : > { %2298 = vmatmul.mubr.msk.f32.gmra.mxu1 %vm539_vm0, %v2077_v15  ;;  %2312 = vmatmul.mubr.msk.f32.gmra.mxu0 %vm539_vm0, %v2094_v16 }
  0x80   : > { %2300 = vmatprep.mubr.msk.f32.mxu1 %vm539_vm0, %v2078_v17  ;;  %2314 = vmatprep.mubr.msk.f32.mxu0 %vm539_vm0, %v2095_v18 }
  0x83   : > { %2301 = vmatmul.mubr.msk.f32.gmra.mxu1 %vm539_vm0, %v2079_v19  ;;  %2315 = vmatmul.mubr.msk.f32.gmra.mxu0 %vm539_vm0, %v2096_v20 }
  0x84   : > { %2303 = vmatprep.mubr.msk.f32.mxu1 %vm539_vm0, %v2080_v21  ;;  %2317 = vmatprep.mubr.msk.f32.mxu0 %vm539_vm0, %v2097_v22 }
  0x87   : > { %2304 = vmatmul.mubr.msk.f32.gmra.mxu1 %vm539_vm0, %v2081_v23  ;;  %2318 = vmatmul.mubr.msk.f32.gmra.mxu0 %vm539_vm0, %v2098_v24 }
 0x103   : > { %v2198_v25 = vpop.f32.mrf.mxu0  ;;  %v2204_v26 = vpop.f32.mrf.mxu1 }
 0x105   : > { %v630_v27 = vpop.f32.mrf.mxu0  ;;  %v650_v28 = vpop.f32.mrf.mxu1 }
 0x107   : > { %v2201_v29 = vpop.f32.mrf.mxu0  ;;  %v2207_v30 = vpop.f32.mrf.mxu1 }
 0x109   : > { %v640_v31 = vpop.f32.mrf.mxu0  ;;  %v2791_v32 = vpop.f32.mrf.mxu1 }
 0x10b   : > { %v2212_v33 = vpop.f32.mrf.mxu1  ;;  %v2226_v34 = vpop.f32.mrf.mxu0 }
 0x10c   : > { %v765_v1 = vadd.f32 %v2212_v33, %v2198_v25 }
 0x10d   : > { %v759_v35 = vpop.f32.mrf.mxu1  ;;  %v899_v36 = vpop.f32.mrf.mxu0 }
 0x10e   : > { %v760_v4 = vadd.f32 %v759_v35, %v630_v27  ;;  %v939_v7 = vadd.f32 %v2226_v34, %v765_v1 }
 0x10f   : > { %v2215_v37 = vpop.f32.mrf.mxu1  ;;  %v2229_v38 = vpop.f32.mrf.mxu0 }
 0x110   : > { %v775_v8 = vadd.f32 %v2215_v37, %v2201_v29  ;;  %v938_v11 = vadd.f32 %v899_v36, %v760_v4 }
 0x111   : > { %v769_v39 = vpop.f32.mrf.mxu1  ;;  %v909_v40 = vpop.f32.mrf.mxu0 }
 0x112   : > { %v770_v12 = vadd.f32 %v769_v39, %v640_v31  ;;  %v941_v17 = vadd.f32 %v2229_v38, %v775_v8 }
 0x113   : > { %v2218_v41 = vpop.f32.mrf.mxu1  ;;  %v2232_v42 = vpop.f32.mrf.mxu0 }
 0x114   : > { %v785_v14 = vadd.f32 %v2218_v41, %v2204_v26  ;;  %v940_v22 = vadd.f32 %v909_v40, %v770_v12 }
 0x115   : > { %v779_v43 = vpop.f32.mrf.mxu1  ;;  %v919_v44 = vpop.f32.mrf.mxu0 }
 0x116   : > { %v780_v19 = vadd.f32 %v779_v43, %v650_v28  ;;  %v943_v25 = vadd.f32 %v2232_v42, %v785_v14 }
 0x117   : > { %v2221_v45 = vpop.f32.mrf.mxu1  ;;  %v2235_v46 = vpop.f32.mrf.mxu0 }
 0x118   : > { %v795_v27 = vadd.f32 %v2221_v45, %v2207_v30  ;;  %v942_v26 = vadd.f32 %v919_v44, %v780_v19 }
 0x119   : > { %v789_v47 = vpop.f32.mrf.mxu1  ;;  %v2793_v48 = vpop.f32.mrf.mxu0 }
 0x11a   : > { %v790_v36 = vadd.f32 %v789_v47, %v2791_v32  ;;  %v945_v41 = vadd.f32 %v2235_v46, %v795_v27 }
 0x11b   : > { %v2240_v49 = vpop.f32.mrf.mxu1  ;;  %v2254_v50 = vpop.f32.mrf.mxu0 }
 0x11c   : > { %v1087_v13 = vadd.f32 %v2240_v49, %v939_v7  ;;  %v944_v44 = vadd.f32 %v2793_v48, %v790_v36 }
 0x11d   : > { %v1047_v51 = vpop.f32.mrf.mxu1  ;;  %v1195_v52 = vpop.f32.mrf.mxu0 }
 0x11e   : > { %v1086_v18 = vadd.f32 %v1047_v51, %v938_v11  ;;  %v1235_v23 = vadd.f32 %v2254_v50, %v1087_v13 }
 0x11f   : > { %v2243_v53 = vpop.f32.mrf.mxu1  ;;  %v2257_v54 = vpop.f32.mrf.mxu0 }
 0x120   : > { %v1089_v24 = vadd.f32 %v2243_v53, %v941_v17  ;;  %v1234_v34 = vadd.f32 %v1195_v52, %v1086_v18 }
 0x121   : > { %v1057_v55 = vpop.f32.mrf.mxu1  ;;  %v1205_v56 = vpop.f32.mrf.mxu0 }
 0x122   : > { %v1088_v35 = vadd.f32 %v1057_v55, %v940_v22  ;;  %v1237_v39 = vadd.f32 %v2257_v54, %v1089_v24 }
 0x123   : > { %v2246_v57 = vpop.f32.mrf.mxu1  ;;  %v2260_v58 = vpop.f32.mrf.mxu0 }
 0x124   : > { %v1091_v37 = vadd.f32 %v2246_v57, %v943_v25  ;;  %v1236_v45 = vadd.f32 %v1205_v56, %v1088_v35  ;;  %v2810_v56 = vld [vmem:[%s2861_s2] ss:$0 sm:$0xff] }
 0x125   : > { %v1067_v59 = vpop.f32.mrf.mxu1  ;;  %v1215_v60 = vpop.f32.mrf.mxu0 }
 0x126   : > { %v1090_v43 = vadd.f32 %v1067_v59, %v942_v26  ;;  %v1239_v51 = vadd.f32 %v2260_v58, %v1091_v37 }
 0x127   : > { %v2249_v61 = vpop.f32.mrf.mxu1  ;;  %v2795_v62 = vpop.f32.mrf.mxu0 }
 0x128   : > { %v1093_v32 = vadd.f32 %v2249_v61, %v945_v41  ;;  %v1238_v46 = vadd.f32 %v1215_v60, %v1090_v43 }
 0x129   : > { %v1077_v63 = vpop.f32.mrf.mxu1  ;;  %v2797_v0 = vpop.f32.mrf.mxu0 }
 0x12a   : > { %v1092_v57 = vadd.f32 %v1077_v63, %v944_v44  ;;  %v1241_v61 = vadd.f32 %v2795_v62, %v1093_v32 }
 0x12b   : > { %v2268_v2 = vpop.f32.mrf.mxu1  ;;  %v2282_v3 = vpop.f32.mrf.mxu0 }
 0x12c   : > { %v1383_v31 = vadd.f32 %v2268_v2, %v1235_v23 }
 0x12d   : > { %v1343_v5 = vpop.f32.mrf.mxu1  ;;  %v1491_v6 = vpop.f32.mrf.mxu0 }
 0x12e   : > { %v1382_v40 = vadd.f32 %v1343_v5, %v1234_v34  ;;  %v1531_v49 = vadd.f32 %v2282_v3, %v1383_v31 }
 0x12f   : > { %v2271_v9 = vpop.f32.mrf.mxu1  ;;  %v2285_v10 = vpop.f32.mrf.mxu0 }
 0x130   : > { %v1385_v50 = vadd.f32 %v2271_v9, %v1237_v39  ;;  %v1530_v53 = vadd.f32 %v1491_v6, %v1382_v40  ;;  %v1240_v9 = vadd.f32 %v2797_v0, %v1092_v57 }
 0x131   : > { %v1353_v15 = vpop.f32.mrf.mxu1  ;;  %v1501_v16 = vpop.f32.mrf.mxu0 }
 0x132   : > { %v1384_v54 = vadd.f32 %v1353_v15, %v1236_v45  ;;  %v1533_v3 = vadd.f32 %v2285_v10, %v1385_v50 }
 0x133   : > { %v2274_v20 = vpop.f32.mrf.mxu1  ;;  %v2288_v21 = vpop.f32.mrf.mxu0 }
 0x134   : > { %v1387_v59 = vadd.f32 %v2274_v20, %v1239_v51  ;;  %v1532_v7 = vadd.f32 %v1501_v16, %v1384_v54 }
 0x135   : > { %v1363_v29 = vpop.f32.mrf.mxu1  ;;  %v1511_v33 = vpop.f32.mrf.mxu0 }
 0x136   : > { %v1386_v4 = vadd.f32 %v1363_v29, %v1238_v46  ;;  %v1535_v11 = vadd.f32 %v2288_v21, %v1387_v59 }
 0x137   : > { %v2277_v28 = vpop.f32.mrf.mxu1  ;;  %v2291_v38 = vpop.f32.mrf.mxu0 }
 0x138   : > { %v1389_v12 = vadd.f32 %v2277_v28, %v1241_v61  ;;  %v1534_v17 = vadd.f32 %v1511_v33, %v1386_v4 }
 0x139   : > { %v1373_v42 = vpop.f32.mrf.mxu1  ;;  %v1521_v30 = vpop.f32.mrf.mxu0 }
 0x13a   : > { %v1388_v18 = vadd.f32 %v1373_v42, %v1240_v9  ;;  %v1537_v24 = vadd.f32 %v2291_v38, %v1389_v12 }
 0x13b   : > { %v2296_v47 = vpop.f32.mrf.mxu1  ;;  %v2310_v52 = vpop.f32.mrf.mxu0 }
 0x13c   : > { %v1679_v55 = vadd.f32 %v2296_v47, %v1531_v49  ;;  %v1536_v31 = vadd.f32 %v1521_v30, %v1388_v18 }
 0x13d   : > { %v1639_v1 = vpop.f32.mrf.mxu1  ;;  %v1787_v2 = vpop.f32.mrf.mxu0 }
 0x13e   : > { %v1827_v48 = vadd.f32 %v2310_v52, %v1679_v55  ;;  %v1678_v58 = vadd.f32 %v1639_v1, %v1530_v53 }
 0x13f   : > { %v2299_v5 = vpop.f32.mrf.mxu1  ;;  %v2313_v6 = vpop.f32.mrf.mxu0 }
 0x140   : > { %v1842_v60 = vadd.f32 %v2810_v56, %v1827_v48  ;;  %v1826_v63 = vadd.f32 %v1787_v2, %v1678_v58  ;;  %v1681_v8 = vadd.f32 %v2299_v5, %v1533_v3 }
 0x141   : > { %v1649_v10 = vpop.f32.mrf.mxu1  ;;  %v1797_v62 = vpop.f32.mrf.mxu0 }
 0x142   : > { %v1850_v13 = vmax.f32 %v1842_v60, 0.0  ;;  %v1841_v14 = vadd.f32 %v2810_v56, %v1826_v63  ;;  %v1829_v15 = vadd.f32 %v2313_v6, %v1681_v8  ;;  %v1680_v16 = vadd.f32 %v1649_v10, %v1532_v7 }
 0x143   : > { %v2302_v19 = vpop.f32.mrf.mxu1  ;;  %v2316_v0 = vpop.f32.mrf.mxu0 }
 0x144   : > { %1858 = vst.msk [vmem:[%s2819_s14 + $0x8] sm:$0xff] %vm539_vm0, %v1850_v13  ;;  %v1849_v20 = vmax.f32 %v1841_v14, 0.0  ;;  %v1844_v21 = vadd.f32 %v2810_v56, %v1829_v15  ;;  %v1828_v22 = vadd.f32 %v1797_v62, %v1680_v16  ;;  %v1683_v23 = vadd.f32 %v2302_v19, %v1535_v11 }
 0x145   : > { %v1659_v25 = vpop.f32.mrf.mxu1  ;;  %v1807_v27 = vpop.f32.mrf.mxu0 }
 0x146   : > { %1857 = vst.msk [vmem:[%s2819_s14] sm:$0xff] %vm539_vm0, %v1849_v20  ;;  %v1852_v29 = vmax.f32 %v1844_v21, 0.0  ;;  %v1843_v33 = vadd.f32 %v2810_v56, %v1828_v22  ;;  %v1831_v34 = vadd.f32 %v2316_v0, %v1683_v23  ;;  %v1682_v35 = vadd.f32 %v1659_v25, %v1534_v17 }
 0x147   : > { %v2305_v26 = vpop.f32.mrf.mxu1  ;;  %v2319_v36 = vpop.f32.mrf.mxu0 }
 0x148   : > { %1860 = vst.msk [vmem:[%s2819_s14 + $0x18] sm:$0xff] %vm539_vm0, %v1852_v29  ;;  %v1851_v37 = vmax.f32 %v1843_v33, 0.0  ;;  %v1846_v28 = vadd.f32 %v2810_v56, %v1831_v34  ;;  %v1830_v38 = vadd.f32 %v1807_v27, %v1682_v35  ;;  %v1685_v39 = vadd.f32 %v2305_v26, %v1537_v24 }
 0x149   : > { %v1669_v40 = vpop.f32.mrf.mxu1  ;;  %v1817_v45 = vpop.f32.mrf.mxu0 }
 0x14a   : > { %1859 = vst.msk [vmem:[%s2819_s14 + $0x10] sm:$0xff] %vm539_vm0, %v1851_v37  ;;  %v1854_v41 = vmax.f32 %v1846_v28, 0.0  ;;  %v1845_v43 = vadd.f32 %v2810_v56, %v1830_v38  ;;  %v1833_v42 = vadd.f32 %v2319_v36, %v1685_v39  ;;  %v1684_v30 = vadd.f32 %v1669_v40, %v1536_v31 }
 0x14c   : > { %1862 = vst.msk [vmem:[%s2819_s14 + $0x28] sm:$0xff] %vm539_vm0, %v1854_v41  ;;  %v1853_v49 = vmax.f32 %v1845_v43, 0.0  ;;  %v1848_v50 = vadd.f32 %v2810_v56, %v1833_v42  ;;  %v1832_v44 = vadd.f32 %v1817_v45, %v1684_v30 }
 0x14e   : > { %1861 = vst.msk [vmem:[%s2819_s14 + $0x20] sm:$0xff] %vm539_vm0, %v1853_v49  ;;  %v1856_v51 = vmax.f32 %v1848_v50, 0.0  ;;  %v1847_v32 = vadd.f32 %v2810_v56, %v1832_v44 }
 0x150   : > { %1864 = vst.msk [vmem:[%s2819_s14 + $0x38] sm:$0xff] %vm539_vm0, %v1856_v51  ;;  %v1855_v47 = vmax.f32 %v1847_v32, 0.0 }
 0x152   : > { %1863 = vst.msk [vmem:[%s2819_s14 + $0x30] sm:$0xff] %vm539_vm0, %v1855_v47 }
 0x153 PF: > { %s13_s16 = sadd.s32 1, %s2402_s16   ;;  %s2863_s12 = smov %s2390_s13 }
 0x154   : > { %p10_p10 = scmp.ge.s32.totalorder %s13_s16, 4   ;;  %s2864_s13 = smov %s2459_s20 }
 0x155   : > { %s2865_s14 = smov %s2398_s15  ;;  %s2866_s15 = smov %s2868_s17 }
 0x156   :  { %12 = sbr.rel (!%p10_p10) target bundleno = 3 (0x3), region = 121 }

// kernel: downsample_forward.7
= control target key start
LH: loop header
LB: loop body
LE: loop exit
PB: predicated region body
PF: predicated region fallthrough
CT: control target
= control target key end

     0   :  { %vm409_vm0 = vcmask 64512   ;;  %vm260_vm1 = vcmask 1043456   ;;  %vm81_vm2 = vcmask 31744   ;;  %s1175_s2 = inlined_call_operand.vmem [shape: f32[8,4], index: 2, kind: input, shape index: {}]   ;;  %s1176_s0 = inlined_call_operand.vmem [shape: f32[128,8], index: 0, kind: input, shape index: {}]   ;;  %s1177_s3 = inlined_call_operand.vmem [shape: f32[4,4], index: 3, kind: input, shape index: {}]   ;;  %s1178_s1 = inlined_call_operand.vmem [shape: f32[4,128,4], index: 1, kind: input, shape index: {}]   ;;  %s1179_s4 = inlined_call_operand.vmem [shape: f32[128,4], index: 4, kind: output, shape index: {}]  }
   0x1   :  { %v210_v0 = vld [vmem:[%s1175_s2] sm:$0xff]  ;;  %v195_v3 = vld [vmem:[%s1176_s0 + $0x8] sm:$0xff]  ;;  %v196_v20 = vld [vmem:[%s1176_s0 + $0x10] sm:$0xff] }
   0x2   :  { %v194_v1 = vld [vmem:[%s1176_s0] sm:$0xff]  ;;  %716 = vmatprep.subr.mxu1 %v210_v0  ;;  %v18_v10 = vld [vmem:[%s1178_s1 + $0x8] sm:$0xff]  ;;  %v197_v21 = vld [vmem:[%s1176_s0 + $0x18] sm:$0xff] }
   0x3   :  { %v211_v2 = vld [vmem:[%s1177_s3] sm:$0xf]  ;;  %718 = vmatprep.mubr.msk.f32.mxu1 %vm409_vm0, %v194_v1  ;;  %717 = vmatpush3.msra.mxu1 %v210_v0  ;;  %v34_v13 = vld [vmem:[%s1178_s1 + $0x88] sm:$0xff]  ;;  %v89_v16 = vsel %vm81_vm2, %v18_v10, -inf  ;;  %v19_v22 = vld [vmem:[%s1178_s1 + $0x10] sm:$0xff] }
   0x4   :  { %v17_v4 = vld [vmem:[%s1178_s1] sm:$0xff]  ;;  %690 = vmatprep.subr.msk.mxu0 %vm260_vm1, %v211_v2  ;;  %719 = vmatmul.mubr.msk.f32.vlgmr.msra.gmra.mxu1 %vm409_vm0, %v195_v3  ;;  %v50_v14 = vld [vmem:[%s1178_s1 + $0x108] sm:$0xff]  ;;  %v90_v18 = vsel %vm81_vm2, %v34_v13, -inf  ;;  %v35_v26 = vld [vmem:[%s1178_s1 + $0x90] sm:$0xff]  ;;  %v96_v29 = vsel %vm81_vm2, %v19_v22, -inf }
   0x5   :  { %v33_v5 = vld [vmem:[%s1178_s1 + $0x80] sm:$0xff]  ;;  %v82_v8 = vsel %vm81_vm2, %v17_v4, -inf  ;;  %691 = vmatpush3.msk.msra.mxu0 %vm260_vm1, %v211_v2  ;;  %v66_v15 = vld [vmem:[%s1178_s1 + $0x188] sm:$0xff]  ;;  %v92_v19 = vsel %vm81_vm2, %v50_v14, -inf  ;;  %v91_v24 = vmax.f32 %v89_v16, %v90_v18  ;;  %721 = vmatprep.mubr.msk.f32.mxu1 %vm409_vm0, %v196_v20  ;;  %v51_v27 = vld [vmem:[%s1178_s1 + $0x110] sm:$0xff]  ;;  %v97_v30 = vsel %vm81_vm2, %v35_v26, -inf }
   0x6   :  { %v49_v6 = vld [vmem:[%s1178_s1 + $0x100] sm:$0xff]  ;;  %v83_v9 = vsel %vm81_vm2, %v33_v5, -inf  ;;  %v94_v25 = vsel %vm81_vm2, %v66_v15, -inf  ;;  %v67_v28 = vld [vmem:[%s1178_s1 + $0x190] sm:$0xff]  ;;  %v99_v31 = vsel %vm81_vm2, %v51_v27, -inf  ;;  %v20_v33 = vld [vmem:[%s1178_s1 + $0x18] sm:$0xff]  ;;  %v98_v38 = vmax.f32 %v96_v29, %v97_v30 }
   0x7   :  { %v65_v7 = vld [vmem:[%s1178_s1 + $0x180] sm:$0xff]  ;;  %v84_v11 = vmax.f32 %v82_v8, %v83_v9  ;;  %v85_v12 = vsel %vm81_vm2, %v49_v6, -inf  ;;  %v101_v32 = vsel %vm81_vm2, %v67_v28, -inf  ;;  %v36_v34 = vld [vmem:[%s1178_s1 + $0x98] sm:$0xff]  ;;  %v93_v37 = vmax.f32 %v91_v24, %v92_v19  ;;  %v199_v42 = vld [vmem:[%s1176_s0 + $0x28] sm:$0xff] }
   0x8   :  { %v87_v17 = vsel %vm81_vm2, %v65_v7, -inf  ;;  %v52_v35 = vld [vmem:[%s1178_s1 + $0x118] sm:$0xff]  ;;  %722 = vmatmul.mubr.msk.f32.gmra.mxu1 %vm409_vm0, %v197_v21  ;;  %v103_v40 = vsel %vm81_vm2, %v20_v33, -inf  ;;  %v198_v41 = vld [vmem:[%s1176_s0 + $0x20] sm:$0xff]  ;;  %v104_v43 = vsel %vm81_vm2, %v36_v34, -inf  ;;  %v100_v50 = vmax.f32 %v98_v38, %v99_v31  ;;  %v22_v54 = vld [vmem:[%s1178_s1 + $0x28] sm:$0xff] }
   0x9   :  { %v86_v23 = vmax.f32 %v84_v11, %v85_v12  ;;  %v68_v39 = vld [vmem:[%s1178_s1 + $0x198] sm:$0xff]  ;;  %v106_v44 = vsel %vm81_vm2, %v52_v35, -inf  ;;  %724 = vmatprep.mubr.msk.f32.mxu1 %vm409_vm0, %v198_v41  ;;  %v21_v46 = vld [vmem:[%s1178_s1 + $0x20] sm:$0xff]  ;;  %v95_v49 = vmax.f32 %v93_v37, %v94_v25  ;;  %v105_v51 = vmax.f32 %v103_v40, %v104_v43  ;;  %v38_v55 = vld [vmem:[%s1178_s1 + $0xa8] sm:$0xff] }
   0xa   :  { %v108_v45 = vsel %vm81_vm2, %v68_v39, -inf  ;;  %v37_v47 = vld [vmem:[%s1178_s1 + $0xa0] sm:$0xff]  ;;  %v110_v53 = vsel %vm81_vm2, %v21_v46, -inf  ;;  %v54_v59 = vld [vmem:[%s1178_s1 + $0x128] sm:$0xff]  ;;  %v117_v61 = vsel %vm81_vm2, %v22_v54, -inf  ;;  %v102_v62 = vmax.f32 %v100_v50, %v101_v32  ;;  %v200_v2 = vld [vmem:[%s1176_s0 + $0x30] sm:$0xff] }
   0xb   :  { %v88_v36 = vmax.f32 %v86_v23, %v87_v17  ;;  %v53_v48 = vld [vmem:[%s1178_s1 + $0x120] sm:$0xff]  ;;  %v111_v56 = vsel %vm81_vm2, %v37_v47, -inf  ;;  %v70_v60 = vld [vmem:[%s1178_s1 + $0x1a8] sm:$0xff]  ;;  %v107_v63 = vmax.f32 %v105_v51, %v106_v44  ;;  %v118_v1 = vsel %vm81_vm2, %v38_v55, -inf  ;;  %v201_v3 = vld [vmem:[%s1176_s0 + $0x38] sm:$0xff] }
   0xc   :  { %v69_v52 = vld [vmem:[%s1178_s1 + $0x1a0] sm:$0xff]  ;;  %v113_v57 = vsel %vm81_vm2, %v53_v48, -inf  ;;  %725 = vmatmul.mubr.msk.f32.gmra.mxu1 %vm409_vm0, %v199_v42  ;;  %v112_v0 = vmax.f32 %v110_v53, %v111_v56  ;;  %v23_v4 = vld [vmem:[%s1178_s1 + $0x30] sm:$0xff]  ;;  %v119_v5 = vmax.f32 %v117_v61, %v118_v1  ;;  %v120_v6 = vsel %vm81_vm2, %v54_v59, -inf  ;;  %v24_v16 = vld [vmem:[%s1178_s1 + $0x38] sm:$0xff] }
   0xd   :  { %692 = vmatprep.mubr.msk.f32.mxu0 %vm81_vm2, %v88_v36  ;;  %v115_v58 = vsel %vm81_vm2, %v69_v52, -inf  ;;  %v122_v7 = vsel %vm81_vm2, %v70_v60, -inf  ;;  %727 = vmatprep.mubr.msk.f32.mxu1 %vm409_vm0, %v200_v2  ;;  %v39_v8 = vld [vmem:[%s1178_s1 + $0xb0] sm:$0xff]  ;;  %v124_v11 = vsel %vm81_vm2, %v23_v4, -inf  ;;  %v109_v12 = vmax.f32 %v107_v63, %v108_v45  ;;  %v40_v17 = vld [vmem:[%s1178_s1 + $0xb8] sm:$0xff]  ;;  %v202_v24 = vld [vmem:[%s1176_s0 + $0x40] sm:$0xff] }
   0xe   :  { %693 = vmatmul.mubr.msk.f32.vlgmr.msra.gmra.mxu0 %vm81_vm2, %v95_v49  ;;  %v55_v9 = vld [vmem:[%s1178_s1 + $0x130] sm:$0xff]  ;;  %v114_v13 = vmax.f32 %v112_v0, %v113_v57  ;;  %v125_v14 = vsel %vm81_vm2, %v39_v8, -inf  ;;  %v56_v18 = vld [vmem:[%s1178_s1 + $0x138] sm:$0xff]  ;;  %v121_v19 = vmax.f32 %v119_v5, %v120_v6  ;;  %v131_v23 = vsel %vm81_vm2, %v24_v16, -inf  ;;  %v203_v25 = vld [vmem:[%s1176_s0 + $0x48] sm:$0xff] }
   0xf   :  { %v71_v10 = vld [vmem:[%s1178_s1 + $0x1b0] sm:$0xff]  ;;  %695 = vmatprep.mubr.msk.f32.mxu0 %vm81_vm2, %v102_v62  ;;  %v127_v15 = vsel %vm81_vm2, %v55_v9, -inf  ;;  %v126_v20 = vmax.f32 %v124_v11, %v125_v14  ;;  %v72_v22 = vld [vmem:[%s1178_s1 + $0x1b8] sm:$0xff]  ;;  %v132_v27 = vsel %vm81_vm2, %v40_v17, -inf  ;;  %v134_v28 = vsel %vm81_vm2, %v56_v18, -inf  ;;  %v25_v30 = vld [vmem:[%s1178_s1 + $0x40] sm:$0xff] }
  0x10   :  { %v129_v21 = vsel %vm81_vm2, %v71_v10, -inf  ;;  %v116_v26 = vmax.f32 %v114_v13, %v115_v58  ;;  %728 = vmatmul.mubr.msk.f32.gmra.mxu1 %vm409_vm0, %v201_v3  ;;  %v136_v29 = vsel %vm81_vm2, %v72_v22, -inf  ;;  %v41_v31 = vld [vmem:[%s1178_s1 + $0xc0] sm:$0xff]  ;;  %v123_v33 = vmax.f32 %v121_v19, %v122_v7  ;;  %v26_v38 = vld [vmem:[%s1178_s1 + $0x48] sm:$0xff]  ;;  %v204_v50 = vld [vmem:[%s1176_s0 + $0x50] sm:$0xff] }
  0x11   :  { %v57_v32 = vld [vmem:[%s1178_s1 + $0x140] sm:$0xff]  ;;  %v128_v34 = vmax.f32 %v126_v20, %v127_v15  ;;  %v133_v35 = vmax.f32 %v131_v23, %v132_v27  ;;  %730 = vmatprep.mubr.msk.f32.mxu1 %vm409_vm0, %v202_v24  ;;  %v138_v37 = vsel %vm81_vm2, %v25_v30, -inf  ;;  %v42_v39 = vld [vmem:[%s1178_s1 + $0xc8] sm:$0xff]  ;;  %v139_v40 = vsel %vm81_vm2, %v41_v31, -inf  ;;  %v205_v51 = vld [vmem:[%s1176_s0 + $0x58] sm:$0xff] }
  0x12   :  { %696 = vmatmul.mubr.msk.f32.gmra.mxu0 %vm81_vm2, %v109_v12  ;;  %v73_v36 = vld [vmem:[%s1178_s1 + $0x1c0] sm:$0xff]  ;;  %v141_v41 = vsel %vm81_vm2, %v57_v32, -inf  ;;  %v58_v43 = vld [vmem:[%s1178_s1 + $0x148] sm:$0xff]  ;;  %v145_v45 = vsel %vm81_vm2, %v26_v38, -inf  ;;  %v140_v48 = vmax.f32 %v138_v37, %v139_v40  ;;  %v146_v49 = vsel %vm81_vm2, %v42_v39, -inf  ;;  %v27_v52 = vld [vmem:[%s1178_s1 + $0x50] sm:$0xff] }
  0x13   :  { %698 = vmatprep.mubr.msk.f32.mxu0 %vm81_vm2, %v116_v26  ;;  %v143_v42 = vsel %vm81_vm2, %v73_v36, -inf  ;;  %v74_v44 = vld [vmem:[%s1178_s1 + $0x1c8] sm:$0xff]  ;;  %v130_v46 = vmax.f32 %v128_v34, %v129_v21  ;;  %v135_v47 = vmax.f32 %v133_v35, %v134_v28  ;;  %v147_v53 = vmax.f32 %v145_v45, %v146_v49  ;;  %v43_v56 = vld [vmem:[%s1178_s1 + $0xd0] sm:$0xff]  ;;  %v28_v0 = vld [vmem:[%s1178_s1 + $0x58] sm:$0xff] }
  0x14   :  { %731 = vmatmul.mubr.msk.f32.gmra.mxu1 %vm409_vm0, %v203_v25  ;;  %v148_v54 = vsel %vm81_vm2, %v58_v43, -inf  ;;  %v150_v55 = vsel %vm81_vm2, %v74_v44, -inf  ;;  %v59_v57 = vld [vmem:[%s1178_s1 + $0x150] sm:$0xff]  ;;  %v152_v59 = vsel %vm81_vm2, %v27_v52, -inf  ;;  %v142_v61 = vmax.f32 %v140_v48, %v141_v41  ;;  %v44_v1 = vld [vmem:[%s1178_s1 + $0xd8] sm:$0xff]  ;;  %v206_v7 = vld [vmem:[%s1176_s0 + $0x60] sm:$0xff] }
  0x15   :  { %v75_v58 = vld [vmem:[%s1178_s1 + $0x1d0] sm:$0xff]  ;;  %v137_v60 = vmax.f32 %v135_v47, %v136_v29  ;;  %733 = vmatprep.mubr.msk.f32.mxu1 %vm409_vm0, %v204_v50  ;;  %v153_v62 = vsel %vm81_vm2, %v43_v56, -inf  ;;  %v155_v63 = vsel %vm81_vm2, %v59_v57, -inf  ;;  %v60_v2 = vld [vmem:[%s1178_s1 + $0x158] sm:$0xff]  ;;  %v149_v3 = vmax.f32 %v147_v53, %v148_v54  ;;  %v29_v12 = vld [vmem:[%s1178_s1 + $0x60] sm:$0xff] }
  0x16   :  { %699 = vmatmul.mubr.msk.f32.gmra.mxu0 %vm81_vm2, %v123_v33  ;;  %v154_v4 = vmax.f32 %v152_v59, %v153_v62  ;;  %v76_v5 = vld [vmem:[%s1178_s1 + $0x1d8] sm:$0xff]  ;;  %v159_v6 = vsel %vm81_vm2, %v28_v0, -inf  ;;  %v144_v8 = vmax.f32 %v142_v61, %v143_v42  ;;  %v157_v9 = vsel %vm81_vm2, %v75_v58, -inf  ;;  %v45_v13 = vld [vmem:[%s1178_s1 + $0xe0] sm:$0xff]  ;;  %v30_v20 = vld [vmem:[%s1178_s1 + $0x68] sm:$0xff] }
  0x17   :  { %701 = vmatprep.mubr.msk.f32.mxu0 %vm81_vm2, %v130_v46  ;;  %v160_v10 = vsel %vm81_vm2, %v44_v1, -inf  ;;  %v162_v11 = vsel %vm81_vm2, %v60_v2, -inf  ;;  %v61_v14 = vld [vmem:[%s1178_s1 + $0x160] sm:$0xff]  ;;  %v151_v15 = vmax.f32 %v149_v3, %v150_v55  ;;  %v166_v19 = vsel %vm81_vm2, %v29_v12, -inf  ;;  %v46_v21 = vld [vmem:[%s1178_s1 + $0xe8] sm:$0xff]  ;;  %v208_v33 = vld [vmem:[%s1176_s0 + $0x70] sm:$0xff] }
  0x18   :  { %734 = vmatmul.mubr.msk.f32.gmra.mxu1 %vm409_vm0, %v205_v51  ;;  %v156_v16 = vmax.f32 %v154_v4, %v155_v63  ;;  %v161_v17 = vmax.f32 %v159_v6, %v160_v10  ;;  %v77_v18 = vld [vmem:[%s1178_s1 + $0x1e0] sm:$0xff]  ;;  %v164_v22 = vsel %vm81_vm2, %v76_v5, -inf  ;;  %v207_v23 = vld [vmem:[%s1176_s0 + $0x68] sm:$0xff]  ;;  %v167_v24 = vsel %vm81_vm2, %v45_v13, -inf  ;;  %v31_v34 = vld [vmem:[%s1178_s1 + $0x70] sm:$0xff] }
  0x19   :  { %736 = vmatprep.mubr.msk.f32.mxu1 %vm409_vm0, %v206_v7  ;;  %v169_v25 = vsel %vm81_vm2, %v61_v14, -inf  ;;  %v62_v26 = vld [vmem:[%s1178_s1 + $0x168] sm:$0xff]  ;;  %v173_v27 = vsel %vm81_vm2, %v30_v20, -inf  ;;  %v168_v30 = vmax.f32 %v166_v19, %v167_v24  ;;  %v174_v32 = vsel %vm81_vm2, %v46_v21, -inf  ;;  %v47_v38 = vld [vmem:[%s1178_s1 + $0xf0] sm:$0xff]  ;;  %v32_v46 = vld [vmem:[%s1178_s1 + $0x78] sm:$0xff] }
  0x1a   :  { %702 = vmatmul.mubr.msk.f32.gmra.mxu0 %vm81_vm2, %v137_v60  ;;  %v158_v28 = vmax.f32 %v156_v16, %v157_v9  ;;  %v163_v29 = vmax.f32 %v161_v17, %v162_v11  ;;  %v78_v31 = vld [vmem:[%s1178_s1 + $0x1e8] sm:$0xff]  ;;  %v171_v35 = vsel %vm81_vm2, %v77_v18, -inf  ;;  %v175_v36 = vmax.f32 %v173_v27, %v174_v32  ;;  %v63_v39 = vld [vmem:[%s1178_s1 + $0x170] sm:$0xff]  ;;  %v48_v47 = vld [vmem:[%s1178_s1 + $0xf8] sm:$0xff] }
  0x1b   :  { %704 = vmatprep.mubr.msk.f32.mxu0 %vm81_vm2, %v144_v8  ;;  %v176_v37 = vsel %vm81_vm2, %v62_v26, -inf  ;;  %v79_v40 = vld [vmem:[%s1178_s1 + $0x1f0] sm:$0xff]  ;;  %v180_v41 = vsel %vm81_vm2, %v31_v34, -inf  ;;  %v170_v43 = vmax.f32 %v168_v30, %v169_v25  ;;  %v181_v44 = vsel %vm81_vm2, %v47_v38, -inf  ;;  %v64_v48 = vld [vmem:[%s1178_s1 + $0x178] sm:$0xff] }
  0x1c   :  { %v165_v42 = vmax.f32 %v163_v29, %v164_v22  ;;  %737 = vmatmul.mubr.msk.f32.gmra.mxu1 %vm409_vm0, %v207_v23  ;;  %v183_v45 = vsel %vm81_vm2, %v63_v39, -inf  ;;  %v177_v49 = vmax.f32 %v175_v36, %v176_v37  ;;  %v178_v50 = vsel %vm81_vm2, %v78_v31, -inf  ;;  %v209_v51 = vld [vmem:[%s1176_s0 + $0x78] sm:$0xff] }
  0x1d   :  { %739 = vmatprep.mubr.msk.f32.mxu1 %vm409_vm0, %v208_v33  ;;  %v182_v52 = vmax.f32 %v180_v41, %v181_v44  ;;  %v187_v53 = vsel %vm81_vm2, %v32_v46, -inf  ;;  %v172_v54 = vmax.f32 %v170_v43, %v171_v35  ;;  %v185_v55 = vsel %vm81_vm2, %v79_v40, -inf  ;;  %v80_v56 = vld [vmem:[%s1178_s1 + $0x1f8] sm:$0xff] }
  0x1e   :  { %705 = vmatmul.mubr.msk.f32.gmra.mxu0 %vm81_vm2, %v151_v15  ;;  %v188_v57 = vsel %vm81_vm2, %v48_v47, -inf  ;;  %v190_v58 = vsel %vm81_vm2, %v64_v48, -inf  ;;  %v179_v61 = vmax.f32 %v177_v49, %v178_v50  ;;  %v192_v0 = vsel %vm81_vm2, %v80_v56, -inf }
  0x1f   :  { %707 = vmatprep.mubr.msk.f32.mxu0 %vm81_vm2, %v158_v28  ;;  %v184_v59 = vmax.f32 %v182_v52, %v183_v45  ;;  %v189_v60 = vmax.f32 %v187_v53, %v188_v57 }
  0x20   :  { %740 = vmatmul.mubr.msk.f32.gmra.mxu1 %vm409_vm0, %v209_v51 }
  0x21   :  { %v186_v62 = vmax.f32 %v184_v59, %v185_v55  ;;  %v191_v63 = vmax.f32 %v189_v60, %v190_v58 }
  0x22   :  { %708 = vmatmul.mubr.msk.f32.gmra.mxu0 %vm81_vm2, %v165_v42 }
  0x23   :  { %710 = vmatprep.mubr.msk.f32.mxu0 %vm81_vm2, %v172_v54  ;;  %v193_v1 = vmax.f32 %v191_v63, %v192_v0 }
  0x26   :  { %711 = vmatmul.mubr.msk.f32.gmra.mxu0 %vm81_vm2, %v179_v61 }
  0x27   :  { %713 = vmatprep.mubr.msk.f32.mxu0 %vm81_vm2, %v186_v62 }
  0x2a   :  { %714 = vmatmul.mubr.msk.f32.gmra.mxu0 %vm81_vm2, %v193_v1 }
  0xc4   :  { %v720_v2 = vpop.f32.mrf.mxu1 }
  0xc6   :  { %v524_v3 = vpop.f32.mrf.mxu1 }
  0xc8   :  { %v723_v4 = vpop.f32.mrf.mxu1 }
  0xca   :  { %v534_v5 = vpop.f32.mrf.mxu1 }
  0xcc   :  { %v726_v7 = vpop.f32.mrf.mxu1 }
  0xce   :  { %v694_v6 = vpop.f32.mrf.mxu0  ;;  %v544_v10 = vpop.f32.mrf.mxu1 }
  0xcf   :  { %v530_v8 = vadd.f32 %v720_v2, %v694_v6 }
  0xd0   :  { %v330_v9 = vpop.f32.mrf.mxu0  ;;  %v729_v13 = vpop.f32.mrf.mxu1 }
  0xd1   :  { %604 = vst.msk [vmem:[%s1179_s4 + $0x8] sm:$0xff] %vm81_vm2, %v530_v8  ;;  %v525_v11 = vadd.f32 %v524_v3, %v330_v9 }
  0xd2   :  { %v697_v12 = vpop.f32.mrf.mxu0  ;;  %v554_v16 = vpop.f32.mrf.mxu1 }
  0xd3   :  { %603 = vst.msk [vmem:[%s1179_s4] sm:$0xff] %vm81_vm2, %v525_v11  ;;  %v540_v14 = vadd.f32 %v723_v4, %v697_v12 }
  0xd4   :  { %v340_v15 = vpop.f32.mrf.mxu0  ;;  %v732_v19 = vpop.f32.mrf.mxu1 }
  0xd5   :  { %606 = vst.msk [vmem:[%s1179_s4 + $0x18] sm:$0xff] %vm81_vm2, %v540_v14  ;;  %v535_v17 = vadd.f32 %v534_v5, %v340_v15 }
  0xd6   :  { %v700_v18 = vpop.f32.mrf.mxu0  ;;  %v564_v22 = vpop.f32.mrf.mxu1 }
  0xd7   :  { %605 = vst.msk [vmem:[%s1179_s4 + $0x10] sm:$0xff] %vm81_vm2, %v535_v17  ;;  %v550_v20 = vadd.f32 %v726_v7, %v700_v18 }
  0xd8   :  { %v350_v21 = vpop.f32.mrf.mxu0  ;;  %v735_v25 = vpop.f32.mrf.mxu1 }
  0xd9   :  { %608 = vst.msk [vmem:[%s1179_s4 + $0x28] sm:$0xff] %vm81_vm2, %v550_v20  ;;  %v545_v23 = vadd.f32 %v544_v10, %v350_v21 }
  0xda   :  { %v703_v24 = vpop.f32.mrf.mxu0  ;;  %v574_v28 = vpop.f32.mrf.mxu1 }
  0xdb   :  { %607 = vst.msk [vmem:[%s1179_s4 + $0x20] sm:$0xff] %vm81_vm2, %v545_v23  ;;  %v560_v26 = vadd.f32 %v729_v13, %v703_v24 }
  0xdc   :  { %v360_v27 = vpop.f32.mrf.mxu0  ;;  %v738_v33 = vpop.f32.mrf.mxu1 }
  0xdd   :  { %610 = vst.msk [vmem:[%s1179_s4 + $0x38] sm:$0xff] %vm81_vm2, %v560_v26  ;;  %v555_v29 = vadd.f32 %v554_v16, %v360_v27 }
  0xde   :  { %v706_v30 = vpop.f32.mrf.mxu0  ;;  %v584_v38 = vpop.f32.mrf.mxu1 }
  0xdf   :  { %609 = vst.msk [vmem:[%s1179_s4 + $0x30] sm:$0xff] %vm81_vm2, %v555_v29  ;;  %v570_v31 = vadd.f32 %v732_v19, %v706_v30 }
  0xe0   :  { %v370_v32 = vpop.f32.mrf.mxu0  ;;  %v741_v43 = vpop.f32.mrf.mxu1 }
  0xe1   :  { %612 = vst.msk [vmem:[%s1179_s4 + $0x48] sm:$0xff] %vm81_vm2, %v570_v31  ;;  %v565_v34 = vadd.f32 %v564_v22, %v370_v32 }
  0xe2   :  { %v709_v35 = vpop.f32.mrf.mxu0  ;;  %v594_v47 = vpop.f32.mrf.mxu1 }
  0xe3   :  { %611 = vst.msk [vmem:[%s1179_s4 + $0x40] sm:$0xff] %vm81_vm2, %v565_v34  ;;  %v580_v36 = vadd.f32 %v735_v25, %v709_v35 }
  0xe4   :  { %v380_v37 = vpop.f32.mrf.mxu0 }
  0xe5   :  { %614 = vst.msk [vmem:[%s1179_s4 + $0x58] sm:$0xff] %vm81_vm2, %v580_v36  ;;  %v575_v39 = vadd.f32 %v574_v28, %v380_v37 }
  0xe6   :  { %v712_v40 = vpop.f32.mrf.mxu0 }
  0xe7   :  { %613 = vst.msk [vmem:[%s1179_s4 + $0x50] sm:$0xff] %vm81_vm2, %v575_v39  ;;  %v590_v41 = vadd.f32 %v738_v33, %v712_v40 }
  0xe8   :  { %v390_v42 = vpop.f32.mrf.mxu0 }
  0xe9   :  { %616 = vst.msk [vmem:[%s1179_s4 + $0x68] sm:$0xff] %vm81_vm2, %v590_v41  ;;  %v585_v44 = vadd.f32 %v584_v38, %v390_v42 }
  0xea   :  { %v715_v45 = vpop.f32.mrf.mxu0 }
  0xeb   :  { %615 = vst.msk [vmem:[%s1179_s4 + $0x60] sm:$0xff] %vm81_vm2, %v585_v44  ;;  %v600_v46 = vadd.f32 %v741_v43, %v715_v45 }
  0xec   :  { %v400_v48 = vpop.f32.mrf.mxu0 }
  0xed   :  { %618 = vst.msk [vmem:[%s1179_s4 + $0x78] sm:$0xff] %vm81_vm2, %v600_v46  ;;  %v595_v49 = vadd.f32 %v594_v47, %v400_v48 }
  0xef   :  { %617 = vst.msk [vmem:[%s1179_s4 + $0x70] sm:$0xff] %vm81_vm2, %v595_v49 }

</bundles_post_ra>
